<compile_context>
chip_gen: v7x
topology: tpu7x:2x2x1
jax: 0.10.0
libtpu: 0.0.40
codegen_flags: <defaults>
</compile_context>

<pallas_src>
import math

import jax
import jax.numpy as jnp
from jax.experimental import pallas as pl
from jax.experimental.pallas import tpu as pltpu

# ----------------------------- model hyper-parameters -----------------------------
D_MODEL = 32          # d_model
NHEAD = 4             # nhead
HEAD_DIM = D_MODEL // NHEAD
NUM_LAYERS = 2        # num_encoder_layers
SEQLEN = 8            # seqlen (T), also max_len of the positional encoding
BATCH = 2             # N
LN_EPS = 1e-5

_HIGHEST = jax.lax.Precision.HIGHEST


# --------------------------------- in-kernel math ---------------------------------
def _mm(a, b):
    # fp32-accurate MXU matmul (HIGHEST -> fp32 contract precision); DEFAULT bf16
    # passes would reintroduce the ~1e-2 parity gap vs the f32 reference.
    return jnp.dot(a, b, preferred_element_type=jnp.float32, precision=_HIGHEST)


def _layernorm(x, g, b):
    mu = jnp.mean(x, axis=-1, keepdims=True)
    var = jnp.mean((x - mu) ** 2, axis=-1, keepdims=True)
    return (x - mu) * jax.lax.rsqrt(var + LN_EPS) * g + b


def _gelu_exact(x):
    # PyTorch activation='gelu' is the exact (erf) variant.
    return 0.5 * x * (1.0 + jax.lax.erf(x * (1.0 / math.sqrt(2.0))))


def _softmax_lastdim(s):
    # Exact divide for PyTorch parity (approx EUP reciprocal adds ~1e-5 rel error).
    s = s - jnp.max(s, axis=-1, keepdims=True)
    p = jnp.exp(s)
    return p / jnp.sum(p, axis=-1, keepdims=True)


def transformer_kernel(
    x_ref,        # (Bblk, T, D)   block of batch rows
    pe_ref,       # (T, D)         positional encoding
    ln1g_ref, ln1b_ref,            # (L, 1, D)
    wq_ref, bq_ref,                # (L, D, D), (L, 1, D)   (scale folded in)
    wk_ref, bk_ref,                # (L, D, D), (L, 1, D)
    wv_ref, bv_ref,                # (L, D, D), (L, 1, D)
    wo_ref, bo_ref,                # (L, NHEAD, dh, D), (L, 1, D)
    ln2g_ref, ln2b_ref,            # (L, 1, D)
    w1_ref, b1_ref,                # (L, D, Dff), (L, 1, Dff)
    w2_ref, b2_ref,                # (L, Dff, D), (L, 1, D)
    o_ref,        # (Bblk, T, D)
):
    bblk, T, D = x_ref.shape
    M = bblk * T

    # x + positional encoding (PyTorch permute/broadcast absorbed), then fold
    # (batch, time) into the matmul M dimension.
    x = (x_ref[...] + pe_ref[...]).reshape(M, D)              # (M, D) f32

    for l in range(NUM_LAYERS):                               # static unroll
        # ---- self-attention block (pre-norm) ----
        h = _layernorm(x, ln1g_ref[l], ln1b_ref[l])           # (M, D)
        # Fused lane-dense projections (3 matmuls/layer); 1/sqrt(dh) already in Wq/bq.
        q = _mm(h, wq_ref[l]) + bq_ref[l]                     # (M, D)
        k = _mm(h, wk_ref[l]) + bk_ref[l]
        v = _mm(h, wv_ref[l]) + bv_ref[l]

        attn = jnp.zeros((M, D), jnp.float32)
        for hh in range(NHEAD):                               # static unroll
            lo, hi = hh * HEAD_DIM, (hh + 1) * HEAD_DIM       # static 8-lane slice
            q3 = q[:, lo:hi].reshape(bblk, T, HEAD_DIM)
            k3 = k[:, lo:hi].reshape(bblk, T, HEAD_DIM)
            v3 = v[:, lo:hi].reshape(bblk, T, HEAD_DIM)
            s = jnp.einsum('bqd,bkd->bqk', q3, k3,
                           preferred_element_type=jnp.float32,
                           precision=_HIGHEST)                # (Bblk, T, T)
            p = _softmax_lastdim(s)
            ctx = jnp.einsum('bqk,bkd->bqd', p, v3,
                             preferred_element_type=jnp.float32,
                             precision=_HIGHEST)              # (Bblk, T, dh)
            # Output projection folded per head: sum_h ctx_h @ Wo[h] == concat @ Wo.
            attn = attn + _mm(ctx.reshape(M, HEAD_DIM), wo_ref[l, hh])
        x = x + attn + bo_ref[l]

        # ---- feed-forward block (pre-norm) ----
        h2 = _layernorm(x, ln2g_ref[l], ln2b_ref[l])
        ff = _gelu_exact(_mm(h2, w1_ref[l]) + b1_ref[l])
        x = x + _mm(ff, w2_ref[l]) + b2_ref[l]

    o_ref[...] = x.reshape(bblk, T, D)


# ------------------------------------ wrapper --------------------------------------
def _const_spec(shape):
    n = len(shape)
    return pl.BlockSpec(shape, lambda b, _n=n: (0,) * _n)


def temporal_encoder_transformer(x, pe, params, *, num_batch_blocks=1):
    """x: (N, T, D) f32 -> (N, T, D) f32 (eval-mode forward)."""
    N, T, D = x.shape
    L, dh = NUM_LAYERS, HEAD_DIM
    assert D == D_MODEL and T == SEQLEN and D % NHEAD == 0
    assert pe.shape == (T, D)
    # Default = a single grid step: on single-TC v5e/v6e the grid is a serial loop and
    # splitting tiny batches only re-pays per-step overhead.  Pass >=2 on v7x only when
    # each block carries enough rows to hide the fixed per-step cost.
    assert N % num_batch_blocks == 0, "num_batch_blocks must divide N"
    bblk = N // num_batch_blocks

    # Trace-time re-layout of the PyTorch-style parameters (free at the JAX level):
    #  * q/k/v split and pre-transposed (input-dim first) -> no '.T' in the kernel,
    #  * attention scale 1/sqrt(head_dim) folded into Wq / bq,
    #  * Wo split along its input (head) axis -> per-head fold, no lane concatenate.
    scale = 1.0 / math.sqrt(dh)
    wqkv, bqkv = params["wqkv"], params["bqkv"]
    wq_t = wqkv[:, 0 * D:1 * D, :].transpose(0, 2, 1) * scale   # (L, D, D)
    wk_t = wqkv[:, 1 * D:2 * D, :].transpose(0, 2, 1)
    wv_t = wqkv[:, 2 * D:3 * D, :].transpose(0, 2, 1)
    bq = bqkv[:, :, 0 * D:1 * D] * scale                        # (L, 1, D)
    bk = bqkv[:, :, 1 * D:2 * D]
    bv = bqkv[:, :, 2 * D:3 * D]
    wo_t = params["wo"].transpose(0, 2, 1).reshape(L, NHEAD, dh, D)
    w1_t = params["w1"].transpose(0, 2, 1)                      # (L, D, Dff)
    w2_t = params["w2"].transpose(0, 2, 1)                      # (L, Dff, D)

    param_list = [
        params["ln1_g"], params["ln1_b"],
        wq_t, bq, wk_t, bk, wv_t, bv,
        wo_t, params["bo"],
        params["ln2_g"], params["ln2_b"],
        w1_t, params["b1"],
        w2_t, params["b2"],
    ]
    # Block shapes below span the full (T, D) extents (legal per the (8,128) rule);
    # constant index_maps mean Pallas DMAs the parameters only once.
    in_specs = [
        pl.BlockSpec((bblk, T, D), lambda b: (b, 0, 0)),   # x: Bblk rows per step
        pl.BlockSpec((T, D), lambda b: (0, 0)),            # pe: replicated
    ] + [_const_spec(p.shape) for p in param_list]

    return pl.pallas_call(
        transformer_kernel,
        out_shape=jax.ShapeDtypeStruct((N, T, D), jnp.float32),
        grid_spec=pltpu.PrefetchScalarGridSpec(
            num_scalar_prefetch=0,
            grid=(num_batch_blocks,),
            in_specs=in_specs,
            out_specs=pl.BlockSpec((bblk, T, D), lambda b: (b, 0, 0)),
        ),
        compiler_params=pltpu.CompilerParams(
            dimension_semantics=("parallel",)),
    )(x, pe, *param_list)


# -------------------------- parameter construction (deterministic) ------------------
def make_positional_encoding(max_len, d_model):
    position = jnp.arange(max_len, dtype=jnp.float32)[:, None]           # (T,1)
    div_term = jnp.exp(jnp.arange(0, d_model, 2, dtype=jnp.float32)
                       * (-math.log(10000.0) / d_model))                 # (D/2,)
    pe = jnp.zeros((max_len, d_model), dtype=jnp.float32)
    pe = pe.at[:, 0::2].set(jnp.sin(position * div_term))
    pe = pe.at[:, 1::2].set(jnp.cos(position * div_term))
    return pe                                                            # (T, D)


def _xavier_uniform(key, shape, gain=math.sqrt(2.0)):
    fan_out, fan_in = shape[-2], shape[-1]
    a = gain * math.sqrt(6.0 / (fan_in + fan_out))
    return jax.random.uniform(key, shape, jnp.float32, minval=-a, maxval=a)


def make_params(key):
    # Shapes follow nn.TransformerEncoderLayer(d_model, nhead, dim_feedforward=d_model),
    # stored in the PyTorch layout (out_features, in_features); the wrapper re-lays
    # them out for the kernel.  Matrices: xavier-uniform (relu gain) like _init_weights.
    # 1-D biases: 0 (like the module).  LayerNorm gammas: 1 instead of the module's 0,
    # which would otherwise collapse the encoder to an identity map (intentional
    # deviation so the test exercises real math).
    L, D, Dff = NUM_LAYERS, D_MODEL, D_MODEL
    keys = jax.random.split(key, 4 * L)
    wqkv = jnp.stack([_xavier_uniform(keys[4 * l + 0], (3 * D, D)) for l in range(L)])
    wo = jnp.stack([_xavier_uniform(keys[4 * l + 1], (D, D)) for l in range(L)])
    w1 = jnp.stack([_xavier_uniform(keys[4 * l + 2], (Dff, D)) for l in range(L)])
    w2 = jnp.stack([_xavier_uniform(keys[4 * l + 3], (D, Dff)) for l in range(L)])
    return {
        "ln1_g": jnp.ones((L, 1, D), jnp.float32),
        "ln1_b": jnp.zeros((L, 1, D), jnp.float32),
        "wqkv": wqkv,
        "bqkv": jnp.zeros((L, 1, 3 * D), jnp.float32),
        "wo": wo,
        "bo": jnp.zeros((L, 1, D), jnp.float32),
        "ln2_g": jnp.ones((L, 1, D), jnp.float32),
        "ln2_b": jnp.zeros((L, 1, D), jnp.float32),
        "w1": w1,
        "b1": jnp.zeros((L, 1, Dff), jnp.float32),
        "w2": w2,
        "b2": jnp.zeros((L, 1, D), jnp.float32),
    }


# ------------------------------- pure-JAX reference ---------------------------------
def reference_forward(x, pe, params):
    hp = _HIGHEST   # full f32 matmuls; DEFAULT (bf16) would break parity at ~1e-2

    def ln(v, g, b):
        mu = jnp.mean(v, -1, keepdims=True)
        var = jnp.mean((v - mu) ** 2, -1, keepdims=True)
        return (v - mu) * jax.lax.rsqrt(var + LN_EPS) * g + b

    D = D_MODEL
    y = x + pe[None, :, :]
    for l in range(NUM_LAYERS):
        h = ln(y, params["ln1_g"][l], params["ln1_b"][l])
        qkv = jnp.matmul(h, params["wqkv"][l].T, precision=hp) + params["bqkv"][l]
        q, k, v = qkv[..., :D], qkv[..., D:2 * D], qkv[..., 2 * D:]
        N, T, _ = q.shape
        qh = q.reshape(N, T, NHEAD, HEAD_DIM).transpose(0, 2, 1, 3)
        kh = k.reshape(N, T, NHEAD, HEAD_DIM).transpose(0, 2, 1, 3)
        vh = v.reshape(N, T, NHEAD, HEAD_DIM).transpose(0, 2, 1, 3)
        s = jnp.einsum("nhqd,nhkd->nhqk", qh, kh, precision=hp) / math.sqrt(HEAD_DIM)
        p = jax.nn.softmax(s, axis=-1)
        o = jnp.einsum("nhqk,nhkd->nhqd", p, vh, precision=hp)
        o = o.transpose(0, 2, 1, 3).reshape(N, T, D)
        y = y + (jnp.matmul(o, params["wo"][l].T, precision=hp) + params["bo"][l])
        h2 = ln(y, params["ln2_g"][l], params["ln2_b"][l])
        ff = jax.nn.gelu(jnp.matmul(h2, params["w1"][l].T, precision=hp) + params["b1"][l],
                         approximate=False)
        y = y + (jnp.matmul(ff, params["w2"][l].T, precision=hp) + params["b2"][l])
    return y


# ------------------------------------- main ------------------------------------------
if __name__ == "__main__":
    key = jax.random.PRNGKey(0)
    kx, kp = jax.random.split(key)

    x = jax.random.normal(kx, (BATCH, SEQLEN, D_MODEL), dtype=jnp.float32)
    pe = make_positional_encoding(SEQLEN, D_MODEL)
    params = make_params(kp)

    out = temporal_encoder_transformer(x, pe, params)
    out = jax.block_until_ready(out)

    ref = reference_forward(x, pe, params)
    assert out.shape == (BATCH, SEQLEN, D_MODEL)
    max_err = float(jnp.max(jnp.abs(out - ref)))
    # Both sides run f32-accurate matmuls; 2e-3 leaves headroom for MXU multi-pass
    # rounding on hardware while still catching any real bug (those are O(1)).
    assert jnp.allclose(out, ref, atol=2e-3, rtol=2e-3), f"max abs err {max_err}"

    print("KERNEL_OK")
</pallas_src>

<mosaic_0001>
module attributes {stable_mosaic.version = 11 : i64} {
  func.func @transformer_kernel(%arg0: i32, %arg1: memref<2x8x32xf32, #tpu.memory_space<vmem>>, %arg2: memref<8x32xf32, #tpu.memory_space<vmem>>, %arg3: memref<2x1x32xf32, #tpu.memory_space<vmem>>, %arg4: memref<2x1x32xf32, #tpu.memory_space<vmem>>, %arg5: memref<2x32x32xf32, #tpu.memory_space<vmem>>, %arg6: memref<2x1x32xf32, #tpu.memory_space<vmem>>, %arg7: memref<2x32x32xf32, #tpu.memory_space<vmem>>, %arg8: memref<2x1x32xf32, #tpu.memory_space<vmem>>, %arg9: memref<2x32x32xf32, #tpu.memory_space<vmem>>, %arg10: memref<2x1x32xf32, #tpu.memory_space<vmem>>, %arg11: memref<2x4x8x32xf32, #tpu.memory_space<vmem>>, %arg12: memref<2x1x32xf32, #tpu.memory_space<vmem>>, %arg13: memref<2x1x32xf32, #tpu.memory_space<vmem>>, %arg14: memref<2x1x32xf32, #tpu.memory_space<vmem>>, %arg15: memref<2x32x32xf32, #tpu.memory_space<vmem>>, %arg16: memref<2x1x32xf32, #tpu.memory_space<vmem>>, %arg17: memref<2x32x32xf32, #tpu.memory_space<vmem>>, %arg18: memref<2x1x32xf32, #tpu.memory_space<vmem>>, %arg19: memref<2x8x32xf32, #tpu.memory_space<vmem>>) attributes {dimension_semantics = [#tpu.dimension_semantics<parallel>], iteration_bounds = array<i64: 1>, scalar_prefetch = 0 : i64, scratch_operands = 0 : i64, tpu.core_type = #tpu.core_type<tc>, window_params = [{transform_indices = @transform_0, window_bounds = array<i64: 2, 8, 32>}, {pipeline_mode = #tpu.pipeline_mode<synchronous>, transform_indices = @transform_1, window_bounds = array<i64: 8, 32>}, {pipeline_mode = #tpu.pipeline_mode<synchronous>, transform_indices = @transform_2, window_bounds = array<i64: 2, 1, 32>}, {pipeline_mode = #tpu.pipeline_mode<synchronous>, transform_indices = @transform_3, window_bounds = array<i64: 2, 1, 32>}, {pipeline_mode = #tpu.pipeline_mode<synchronous>, transform_indices = @transform_4, window_bounds = array<i64: 2, 32, 32>}, {pipeline_mode = #tpu.pipeline_mode<synchronous>, transform_indices = @transform_5, window_bounds = array<i64: 2, 1, 32>}, {pipeline_mode = #tpu.pipeline_mode<synchronous>, transform_indices = @transform_6, window_bounds = array<i64: 2, 32, 32>}, {pipeline_mode = #tpu.pipeline_mode<synchronous>, transform_indices = @transform_7, window_bounds = array<i64: 2, 1, 32>}, {pipeline_mode = #tpu.pipeline_mode<synchronous>, transform_indices = @transform_8, window_bounds = array<i64: 2, 32, 32>}, {pipeline_mode = #tpu.pipeline_mode<synchronous>, transform_indices = @transform_9, window_bounds = array<i64: 2, 1, 32>}, {pipeline_mode = #tpu.pipeline_mode<synchronous>, transform_indices = @transform_10, window_bounds = array<i64: 2, 4, 8, 32>}, {pipeline_mode = #tpu.pipeline_mode<synchronous>, transform_indices = @transform_11, window_bounds = array<i64: 2, 1, 32>}, {pipeline_mode = #tpu.pipeline_mode<synchronous>, transform_indices = @transform_12, window_bounds = array<i64: 2, 1, 32>}, {pipeline_mode = #tpu.pipeline_mode<synchronous>, transform_indices = @transform_13, window_bounds = array<i64: 2, 1, 32>}, {pipeline_mode = #tpu.pipeline_mode<synchronous>, transform_indices = @transform_14, window_bounds = array<i64: 2, 32, 32>}, {pipeline_mode = #tpu.pipeline_mode<synchronous>, transform_indices = @transform_15, window_bounds = array<i64: 2, 1, 32>}, {pipeline_mode = #tpu.pipeline_mode<synchronous>, transform_indices = @transform_16, window_bounds = array<i64: 2, 32, 32>}, {pipeline_mode = #tpu.pipeline_mode<synchronous>, transform_indices = @transform_17, window_bounds = array<i64: 2, 1, 32>}, {transform_indices = @transform_18, window_bounds = array<i64: 2, 8, 32>}]} {
    %c0 = arith.constant 0 : index
    %c0_0 = arith.constant 0 : index
    %c0_1 = arith.constant 0 : index
    %0 = vector.load %arg1[%c0, %c0_0, %c0_1] : memref<2x8x32xf32, #tpu.memory_space<vmem>>, vector<2x8x32xf32>
    %c0_2 = arith.constant 0 : index
    %c0_3 = arith.constant 0 : index
    %1 = vector.load %arg2[%c0_2, %c0_3] : memref<8x32xf32, #tpu.memory_space<vmem>>, vector<8x32xf32>
    %2 = vector.shape_cast %1 : vector<8x32xf32> to vector<1x8x32xf32>
    %3 = vector.broadcast %2 : vector<1x8x32xf32> to vector<2x8x32xf32>
    %4 = arith.addf %0, %3 : vector<2x8x32xf32>
    %5 = vector.shape_cast %4 : vector<2x8x32xf32> to vector<16x32xf32>
    %c0_4 = arith.constant 0 : index
    %c0_5 = arith.constant 0 : index
    %c0_6 = arith.constant 0 : index
    %6 = vector.load %arg3[%c0_4, %c0_5, %c0_6] : memref<2x1x32xf32, #tpu.memory_space<vmem>>, vector<1x1x32xf32>
    %7 = vector.shape_cast %6 : vector<1x1x32xf32> to vector<1x32xf32>
    %c0_7 = arith.constant 0 : index
    %c0_8 = arith.constant 0 : index
    %c0_9 = arith.constant 0 : index
    %8 = vector.load %arg4[%c0_7, %c0_8, %c0_9] : memref<2x1x32xf32, #tpu.memory_space<vmem>>, vector<1x1x32xf32>
    %9 = vector.shape_cast %8 : vector<1x1x32xf32> to vector<1x32xf32>
    %cst = arith.constant dense<0.000000e+00> : vector<16xf32>
    %10 = vector.multi_reduction <add>, %5, %cst [1] : vector<16x32xf32> to vector<16xf32>
    %11 = vector.shape_cast %10 : vector<16xf32> to vector<16x1xf32>
    %cst_10 = arith.constant 3.200000e+01 : f32
    %12 = vector.broadcast %cst_10 : f32 to vector<16x1xf32>
    %13 = arith.divf %11, %12 : vector<16x1xf32>
    %14 = vector.broadcast %13 : vector<16x1xf32> to vector<16x32xf32>
    %15 = arith.subf %5, %14 : vector<16x32xf32>
    %16 = arith.mulf %15, %15 : vector<16x32xf32>
    %cst_11 = arith.constant dense<0.000000e+00> : vector<16xf32>
    %17 = vector.multi_reduction <add>, %16, %cst_11 [1] : vector<16x32xf32> to vector<16xf32>
    %18 = vector.shape_cast %17 : vector<16xf32> to vector<16x1xf32>
    %cst_12 = arith.constant 3.200000e+01 : f32
    %19 = vector.broadcast %cst_12 : f32 to vector<16x1xf32>
    %20 = arith.divf %18, %19 : vector<16x1xf32>
    %21 = vector.broadcast %13 : vector<16x1xf32> to vector<16x32xf32>
    %22 = arith.subf %5, %21 : vector<16x32xf32>
    %cst_13 = arith.constant 9.99999974E-6 : f32
    %23 = vector.broadcast %cst_13 : f32 to vector<16x1xf32>
    %24 = arith.addf %20, %23 : vector<16x1xf32>
    %25 = math.rsqrt %24 : vector<16x1xf32>
    %26 = vector.broadcast %25 : vector<16x1xf32> to vector<16x32xf32>
    %27 = arith.mulf %22, %26 : vector<16x32xf32>
    %28 = vector.broadcast %7 : vector<1x32xf32> to vector<16x32xf32>
    %29 = arith.mulf %27, %28 : vector<16x32xf32>
    %30 = vector.broadcast %9 : vector<1x32xf32> to vector<16x32xf32>
    %31 = arith.addf %29, %30 : vector<16x32xf32>
    %c0_14 = arith.constant 0 : index
    %c0_15 = arith.constant 0 : index
    %c0_16 = arith.constant 0 : index
    %32 = vector.load %arg5[%c0_14, %c0_15, %c0_16] : memref<2x32x32xf32, #tpu.memory_space<vmem>>, vector<1x32x32xf32>
    %33 = vector.shape_cast %32 : vector<1x32x32xf32> to vector<32x32xf32>
    %cst_17 = arith.constant dense<0.000000e+00> : vector<16x32xf32>
    %34 = tpu.matmul %31, %33, %cst_17 {dimension_numbers = #tpu.dot_dimension_numbers<[1], [0], [0], [1], [0, 0, 1, 1], [], []>, precision = #tpu.contract_precision<fp32>} : vector<16x32xf32>, vector<32x32xf32>, vector<16x32xf32> -> vector<16x32xf32>
    %c0_18 = arith.constant 0 : index
    %c0_19 = arith.constant 0 : index
    %c0_20 = arith.constant 0 : index
    %35 = vector.load %arg6[%c0_18, %c0_19, %c0_20] : memref<2x1x32xf32, #tpu.memory_space<vmem>>, vector<1x1x32xf32>
    %36 = vector.shape_cast %35 : vector<1x1x32xf32> to vector<1x32xf32>
    %37 = vector.broadcast %36 : vector<1x32xf32> to vector<16x32xf32>
    %38 = arith.addf %34, %37 : vector<16x32xf32>
    %c0_21 = arith.constant 0 : index
    %c0_22 = arith.constant 0 : index
    %c0_23 = arith.constant 0 : index
    %39 = vector.load %arg7[%c0_21, %c0_22, %c0_23] : memref<2x32x32xf32, #tpu.memory_space<vmem>>, vector<1x32x32xf32>
    %40 = vector.shape_cast %39 : vector<1x32x32xf32> to vector<32x32xf32>
    %cst_24 = arith.constant dense<0.000000e+00> : vector<16x32xf32>
    %41 = tpu.matmul %31, %40, %cst_24 {dimension_numbers = #tpu.dot_dimension_numbers<[1], [0], [0], [1], [0, 0, 1, 1], [], []>, precision = #tpu.contract_precision<fp32>} : vector<16x32xf32>, vector<32x32xf32>, vector<16x32xf32> -> vector<16x32xf32>
    %c0_25 = arith.constant 0 : index
    %c0_26 = arith.constant 0 : index
    %c0_27 = arith.constant 0 : index
    %42 = vector.load %arg8[%c0_25, %c0_26, %c0_27] : memref<2x1x32xf32, #tpu.memory_space<vmem>>, vector<1x1x32xf32>
    %43 = vector.shape_cast %42 : vector<1x1x32xf32> to vector<1x32xf32>
    %44 = vector.broadcast %43 : vector<1x32xf32> to vector<16x32xf32>
    %45 = arith.addf %41, %44 : vector<16x32xf32>
    %c0_28 = arith.constant 0 : index
    %c0_29 = arith.constant 0 : index
    %c0_30 = arith.constant 0 : index
    %46 = vector.load %arg9[%c0_28, %c0_29, %c0_30] : memref<2x32x32xf32, #tpu.memory_space<vmem>>, vector<1x32x32xf32>
    %47 = vector.shape_cast %46 : vector<1x32x32xf32> to vector<32x32xf32>
    %cst_31 = arith.constant dense<0.000000e+00> : vector<16x32xf32>
    %48 = tpu.matmul %31, %47, %cst_31 {dimension_numbers = #tpu.dot_dimension_numbers<[1], [0], [0], [1], [0, 0, 1, 1], [], []>, precision = #tpu.contract_precision<fp32>} : vector<16x32xf32>, vector<32x32xf32>, vector<16x32xf32> -> vector<16x32xf32>
    %c0_32 = arith.constant 0 : index
    %c0_33 = arith.constant 0 : index
    %c0_34 = arith.constant 0 : index
    %49 = vector.load %arg10[%c0_32, %c0_33, %c0_34] : memref<2x1x32xf32, #tpu.memory_space<vmem>>, vector<1x1x32xf32>
    %50 = vector.shape_cast %49 : vector<1x1x32xf32> to vector<1x32xf32>
    %51 = vector.broadcast %50 : vector<1x32xf32> to vector<16x32xf32>
    %52 = arith.addf %48, %51 : vector<16x32xf32>
    %cst_35 = arith.constant 0.000000e+00 : f32
    %53 = vector.broadcast %cst_35 : f32 to vector<16x32xf32>
    %54 = vector.extract_strided_slice %38 {offsets = [0, 0], sizes = [16, 8], strides = [1, 1]} : vector<16x32xf32> to vector<16x8xf32>
    %55 = vector.shape_cast %54 : vector<16x8xf32> to vector<2x8x8xf32>
    %56 = vector.extract_strided_slice %45 {offsets = [0, 0], sizes = [16, 8], strides = [1, 1]} : vector<16x32xf32> to vector<16x8xf32>
    %57 = vector.shape_cast %56 : vector<16x8xf32> to vector<2x8x8xf32>
    %58 = vector.extract_strided_slice %52 {offsets = [0, 0], sizes = [16, 8], strides = [1, 1]} : vector<16x32xf32> to vector<16x8xf32>
    %59 = vector.shape_cast %58 : vector<16x8xf32> to vector<2x8x8xf32>
    "tpu.trace_start"() <{level = 10 : i32, message = "bqd,bkd->bqk"}> : () -> ()
    %cst_36 = arith.constant dense<0.000000e+00> : vector<2x8x8xf32>
    %60 = tpu.matmul %55, %57, %cst_36 {dimension_numbers = #tpu.dot_dimension_numbers<[2], [2], [1], [1], [0, 0, 0, 1, 1, 1], [0], [0]>, precision = #tpu.contract_precision<fp32>} : vector<2x8x8xf32>, vector<2x8x8xf32>, vector<2x8x8xf32> -> vector<2x8x8xf32>
    "tpu.trace_stop"() : () -> ()
    %cst_37 = arith.constant dense<0xFF800000> : vector<2x8xf32>
    %61 = vector.multi_reduction <maximumf>, %60, %cst_37 [2] : vector<2x8x8xf32> to vector<2x8xf32>
    %62 = vector.shape_cast %61 : vector<2x8xf32> to vector<2x8x1xf32>
    %63 = vector.broadcast %62 : vector<2x8x1xf32> to vector<2x8x8xf32>
    %64 = arith.subf %60, %63 : vector<2x8x8xf32>
    %65 = math.exp %64 : vector<2x8x8xf32>
    %cst_38 = arith.constant dense<0.000000e+00> : vector<2x8xf32>
    %66 = vector.multi_reduction <add>, %65, %cst_38 [2] : vector<2x8x8xf32> to vector<2x8xf32>
    %67 = vector.shape_cast %66 : vector<2x8xf32> to vector<2x8x1xf32>
    %68 = vector.broadcast %67 : vector<2x8x1xf32> to vector<2x8x8xf32>
    %69 = arith.divf %65, %68 : vector<2x8x8xf32>
    "tpu.trace_start"() <{level = 10 : i32, message = "bqk,bkd->bqd"}> : () -> ()
    %cst_39 = arith.constant dense<0.000000e+00> : vector<2x8x8xf32>
    %70 = tpu.matmul %69, %59, %cst_39 {dimension_numbers = #tpu.dot_dimension_numbers<[2], [1], [1], [2], [0, 0, 0, 1, 1, 2], [0], [0]>, precision = #tpu.contract_precision<fp32>} : vector<2x8x8xf32>, vector<2x8x8xf32>, vector<2x8x8xf32> -> vector<2x8x8xf32>
    "tpu.trace_stop"() : () -> ()
    %71 = vector.shape_cast %70 : vector<2x8x8xf32> to vector<16x8xf32>
    %c0_40 = arith.constant 0 : index
    %c0_41 = arith.constant 0 : index
    %c0_42 = arith.constant 0 : index
    %c0_43 = arith.constant 0 : index
    %72 = vector.load %arg11[%c0_40, %c0_41, %c0_42, %c0_43] : memref<2x4x8x32xf32, #tpu.memory_space<vmem>>, vector<1x1x8x32xf32>
    %73 = vector.shape_cast %72 : vector<1x1x8x32xf32> to vector<8x32xf32>
    %cst_44 = arith.constant dense<0.000000e+00> : vector<16x32xf32>
    %74 = tpu.matmul %71, %73, %cst_44 {dimension_numbers = #tpu.dot_dimension_numbers<[1], [0], [0], [1], [0, 0, 1, 1], [], []>, precision = #tpu.contract_precision<fp32>} : vector<16x8xf32>, vector<8x32xf32>, vector<16x32xf32> -> vector<16x32xf32>
    %75 = arith.addf %53, %74 : vector<16x32xf32>
    %76 = vector.extract_strided_slice %38 {offsets = [0, 8], sizes = [16, 8], strides = [1, 1]} : vector<16x32xf32> to vector<16x8xf32>
    %77 = vector.shape_cast %76 : vector<16x8xf32> to vector<2x8x8xf32>
    %78 = vector.extract_strided_slice %45 {offsets = [0, 8], sizes = [16, 8], strides = [1, 1]} : vector<16x32xf32> to vector<16x8xf32>
    %79 = vector.shape_cast %78 : vector<16x8xf32> to vector<2x8x8xf32>
    %80 = vector.extract_strided_slice %52 {offsets = [0, 8], sizes = [16, 8], strides = [1, 1]} : vector<16x32xf32> to vector<16x8xf32>
    %81 = vector.shape_cast %80 : vector<16x8xf32> to vector<2x8x8xf32>
    "tpu.trace_start"() <{level = 10 : i32, message = "bqd,bkd->bqk"}> : () -> ()
    %cst_45 = arith.constant dense<0.000000e+00> : vector<2x8x8xf32>
    %82 = tpu.matmul %77, %79, %cst_45 {dimension_numbers = #tpu.dot_dimension_numbers<[2], [2], [1], [1], [0, 0, 0, 1, 1, 1], [0], [0]>, precision = #tpu.contract_precision<fp32>} : vector<2x8x8xf32>, vector<2x8x8xf32>, vector<2x8x8xf32> -> vector<2x8x8xf32>
    "tpu.trace_stop"() : () -> ()
    %cst_46 = arith.constant dense<0xFF800000> : vector<2x8xf32>
    %83 = vector.multi_reduction <maximumf>, %82, %cst_46 [2] : vector<2x8x8xf32> to vector<2x8xf32>
    %84 = vector.shape_cast %83 : vector<2x8xf32> to vector<2x8x1xf32>
    %85 = vector.broadcast %84 : vector<2x8x1xf32> to vector<2x8x8xf32>
    %86 = arith.subf %82, %85 : vector<2x8x8xf32>
    %87 = math.exp %86 : vector<2x8x8xf32>
    %cst_47 = arith.constant dense<0.000000e+00> : vector<2x8xf32>
    %88 = vector.multi_reduction <add>, %87, %cst_47 [2] : vector<2x8x8xf32> to vector<2x8xf32>
    %89 = vector.shape_cast %88 : vector<2x8xf32> to vector<2x8x1xf32>
    %90 = vector.broadcast %89 : vector<2x8x1xf32> to vector<2x8x8xf32>
    %91 = arith.divf %87, %90 : vector<2x8x8xf32>
    "tpu.trace_start"() <{level = 10 : i32, message = "bqk,bkd->bqd"}> : () -> ()
    %cst_48 = arith.constant dense<0.000000e+00> : vector<2x8x8xf32>
    %92 = tpu.matmul %91, %81, %cst_48 {dimension_numbers = #tpu.dot_dimension_numbers<[2], [1], [1], [2], [0, 0, 0, 1, 1, 2], [0], [0]>, precision = #tpu.contract_precision<fp32>} : vector<2x8x8xf32>, vector<2x8x8xf32>, vector<2x8x8xf32> -> vector<2x8x8xf32>
    "tpu.trace_stop"() : () -> ()
    %93 = vector.shape_cast %92 : vector<2x8x8xf32> to vector<16x8xf32>
    %c0_49 = arith.constant 0 : index
    %c1 = arith.constant 1 : index
    %c0_50 = arith.constant 0 : index
    %c0_51 = arith.constant 0 : index
    %94 = vector.load %arg11[%c0_49, %c1, %c0_50, %c0_51] : memref<2x4x8x32xf32, #tpu.memory_space<vmem>>, vector<1x1x8x32xf32>
    %95 = vector.shape_cast %94 : vector<1x1x8x32xf32> to vector<8x32xf32>
    %cst_52 = arith.constant dense<0.000000e+00> : vector<16x32xf32>
    %96 = tpu.matmul %93, %95, %cst_52 {dimension_numbers = #tpu.dot_dimension_numbers<[1], [0], [0], [1], [0, 0, 1, 1], [], []>, precision = #tpu.contract_precision<fp32>} : vector<16x8xf32>, vector<8x32xf32>, vector<16x32xf32> -> vector<16x32xf32>
    %97 = arith.addf %75, %96 : vector<16x32xf32>
    %98 = vector.extract_strided_slice %38 {offsets = [0, 16], sizes = [16, 8], strides = [1, 1]} : vector<16x32xf32> to vector<16x8xf32>
    %99 = vector.shape_cast %98 : vector<16x8xf32> to vector<2x8x8xf32>
    %100 = vector.extract_strided_slice %45 {offsets = [0, 16], sizes = [16, 8], strides = [1, 1]} : vector<16x32xf32> to vector<16x8xf32>
    %101 = vector.shape_cast %100 : vector<16x8xf32> to vector<2x8x8xf32>
    %102 = vector.extract_strided_slice %52 {offsets = [0, 16], sizes = [16, 8], strides = [1, 1]} : vector<16x32xf32> to vector<16x8xf32>
    %103 = vector.shape_cast %102 : vector<16x8xf32> to vector<2x8x8xf32>
    "tpu.trace_start"() <{level = 10 : i32, message = "bqd,bkd->bqk"}> : () -> ()
    %cst_53 = arith.constant dense<0.000000e+00> : vector<2x8x8xf32>
    %104 = tpu.matmul %99, %101, %cst_53 {dimension_numbers = #tpu.dot_dimension_numbers<[2], [2], [1], [1], [0, 0, 0, 1, 1, 1], [0], [0]>, precision = #tpu.contract_precision<fp32>} : vector<2x8x8xf32>, vector<2x8x8xf32>, vector<2x8x8xf32> -> vector<2x8x8xf32>
    "tpu.trace_stop"() : () -> ()
    %cst_54 = arith.constant dense<0xFF800000> : vector<2x8xf32>
    %105 = vector.multi_reduction <maximumf>, %104, %cst_54 [2] : vector<2x8x8xf32> to vector<2x8xf32>
    %106 = vector.shape_cast %105 : vector<2x8xf32> to vector<2x8x1xf32>
    %107 = vector.broadcast %106 : vector<2x8x1xf32> to vector<2x8x8xf32>
    %108 = arith.subf %104, %107 : vector<2x8x8xf32>
    %109 = math.exp %108 : vector<2x8x8xf32>
    %cst_55 = arith.constant dense<0.000000e+00> : vector<2x8xf32>
    %110 = vector.multi_reduction <add>, %109, %cst_55 [2] : vector<2x8x8xf32> to vector<2x8xf32>
    %111 = vector.shape_cast %110 : vector<2x8xf32> to vector<2x8x1xf32>
    %112 = vector.broadcast %111 : vector<2x8x1xf32> to vector<2x8x8xf32>
    %113 = arith.divf %109, %112 : vector<2x8x8xf32>
    "tpu.trace_start"() <{level = 10 : i32, message = "bqk,bkd->bqd"}> : () -> ()
    %cst_56 = arith.constant dense<0.000000e+00> : vector<2x8x8xf32>
    %114 = tpu.matmul %113, %103, %cst_56 {dimension_numbers = #tpu.dot_dimension_numbers<[2], [1], [1], [2], [0, 0, 0, 1, 1, 2], [0], [0]>, precision = #tpu.contract_precision<fp32>} : vector<2x8x8xf32>, vector<2x8x8xf32>, vector<2x8x8xf32> -> vector<2x8x8xf32>
    "tpu.trace_stop"() : () -> ()
    %115 = vector.shape_cast %114 : vector<2x8x8xf32> to vector<16x8xf32>
    %c0_57 = arith.constant 0 : index
    %c2 = arith.constant 2 : index
    %c0_58 = arith.constant 0 : index
    %c0_59 = arith.constant 0 : index
    %116 = vector.load %arg11[%c0_57, %c2, %c0_58, %c0_59] : memref<2x4x8x32xf32, #tpu.memory_space<vmem>>, vector<1x1x8x32xf32>
    %117 = vector.shape_cast %116 : vector<1x1x8x32xf32> to vector<8x32xf32>
    %cst_60 = arith.constant dense<0.000000e+00> : vector<16x32xf32>
    %118 = tpu.matmul %115, %117, %cst_60 {dimension_numbers = #tpu.dot_dimension_numbers<[1], [0], [0], [1], [0, 0, 1, 1], [], []>, precision = #tpu.contract_precision<fp32>} : vector<16x8xf32>, vector<8x32xf32>, vector<16x32xf32> -> vector<16x32xf32>
    %119 = arith.addf %97, %118 : vector<16x32xf32>
    %120 = vector.extract_strided_slice %38 {offsets = [0, 24], sizes = [16, 8], strides = [1, 1]} : vector<16x32xf32> to vector<16x8xf32>
    %121 = vector.shape_cast %120 : vector<16x8xf32> to vector<2x8x8xf32>
    %122 = vector.extract_strided_slice %45 {offsets = [0, 24], sizes = [16, 8], strides = [1, 1]} : vector<16x32xf32> to vector<16x8xf32>
    %123 = vector.shape_cast %122 : vector<16x8xf32> to vector<2x8x8xf32>
    %124 = vector.extract_strided_slice %52 {offsets = [0, 24], sizes = [16, 8], strides = [1, 1]} : vector<16x32xf32> to vector<16x8xf32>
    %125 = vector.shape_cast %124 : vector<16x8xf32> to vector<2x8x8xf32>
    "tpu.trace_start"() <{level = 10 : i32, message = "bqd,bkd->bqk"}> : () -> ()
    %cst_61 = arith.constant dense<0.000000e+00> : vector<2x8x8xf32>
    %126 = tpu.matmul %121, %123, %cst_61 {dimension_numbers = #tpu.dot_dimension_numbers<[2], [2], [1], [1], [0, 0, 0, 1, 1, 1], [0], [0]>, precision = #tpu.contract_precision<fp32>} : vector<2x8x8xf32>, vector<2x8x8xf32>, vector<2x8x8xf32> -> vector<2x8x8xf32>
    "tpu.trace_stop"() : () -> ()
    %cst_62 = arith.constant dense<0xFF800000> : vector<2x8xf32>
    %127 = vector.multi_reduction <maximumf>, %126, %cst_62 [2] : vector<2x8x8xf32> to vector<2x8xf32>
    %128 = vector.shape_cast %127 : vector<2x8xf32> to vector<2x8x1xf32>
    %129 = vector.broadcast %128 : vector<2x8x1xf32> to vector<2x8x8xf32>
    %130 = arith.subf %126, %129 : vector<2x8x8xf32>
    %131 = math.exp %130 : vector<2x8x8xf32>
    %cst_63 = arith.constant dense<0.000000e+00> : vector<2x8xf32>
    %132 = vector.multi_reduction <add>, %131, %cst_63 [2] : vector<2x8x8xf32> to vector<2x8xf32>
    %133 = vector.shape_cast %132 : vector<2x8xf32> to vector<2x8x1xf32>
    %134 = vector.broadcast %133 : vector<2x8x1xf32> to vector<2x8x8xf32>
    %135 = arith.divf %131, %134 : vector<2x8x8xf32>
    "tpu.trace_start"() <{level = 10 : i32, message = "bqk,bkd->bqd"}> : () -> ()
    %cst_64 = arith.constant dense<0.000000e+00> : vector<2x8x8xf32>
    %136 = tpu.matmul %135, %125, %cst_64 {dimension_numbers = #tpu.dot_dimension_numbers<[2], [1], [1], [2], [0, 0, 0, 1, 1, 2], [0], [0]>, precision = #tpu.contract_precision<fp32>} : vector<2x8x8xf32>, vector<2x8x8xf32>, vector<2x8x8xf32> -> vector<2x8x8xf32>
    "tpu.trace_stop"() : () -> ()
    %137 = vector.shape_cast %136 : vector<2x8x8xf32> to vector<16x8xf32>
    %c0_65 = arith.constant 0 : index
    %c3 = arith.constant 3 : index
    %c0_66 = arith.constant 0 : index
    %c0_67 = arith.constant 0 : index
    %138 = vector.load %arg11[%c0_65, %c3, %c0_66, %c0_67] : memref<2x4x8x32xf32, #tpu.memory_space<vmem>>, vector<1x1x8x32xf32>
    %139 = vector.shape_cast %138 : vector<1x1x8x32xf32> to vector<8x32xf32>
    %cst_68 = arith.constant dense<0.000000e+00> : vector<16x32xf32>
    %140 = tpu.matmul %137, %139, %cst_68 {dimension_numbers = #tpu.dot_dimension_numbers<[1], [0], [0], [1], [0, 0, 1, 1], [], []>, precision = #tpu.contract_precision<fp32>} : vector<16x8xf32>, vector<8x32xf32>, vector<16x32xf32> -> vector<16x32xf32>
    %141 = arith.addf %119, %140 : vector<16x32xf32>
    %142 = arith.addf %5, %141 : vector<16x32xf32>
    %c0_69 = arith.constant 0 : index
    %c0_70 = arith.constant 0 : index
    %c0_71 = arith.constant 0 : index
    %143 = vector.load %arg12[%c0_69, %c0_70, %c0_71] : memref<2x1x32xf32, #tpu.memory_space<vmem>>, vector<1x1x32xf32>
    %144 = vector.shape_cast %143 : vector<1x1x32xf32> to vector<1x32xf32>
    %145 = vector.broadcast %144 : vector<1x32xf32> to vector<16x32xf32>
    %146 = arith.addf %142, %145 : vector<16x32xf32>
    %c0_72 = arith.constant 0 : index
    %c0_73 = arith.constant 0 : index
    %c0_74 = arith.constant 0 : index
    %147 = vector.load %arg13[%c0_72, %c0_73, %c0_74] : memref<2x1x32xf32, #tpu.memory_space<vmem>>, vector<1x1x32xf32>
    %148 = vector.shape_cast %147 : vector<1x1x32xf32> to vector<1x32xf32>
    %c0_75 = arith.constant 0 : index
    %c0_76 = arith.constant 0 : index
    %c0_77 = arith.constant 0 : index
    %149 = vector.load %arg14[%c0_75, %c0_76, %c0_77] : memref<2x1x32xf32, #tpu.memory_space<vmem>>, vector<1x1x32xf32>
    %150 = vector.shape_cast %149 : vector<1x1x32xf32> to vector<1x32xf32>
    %cst_78 = arith.constant dense<0.000000e+00> : vector<16xf32>
    %151 = vector.multi_reduction <add>, %146, %cst_78 [1] : vector<16x32xf32> to vector<16xf32>
    %152 = vector.shape_cast %151 : vector<16xf32> to vector<16x1xf32>
    %cst_79 = arith.constant 3.200000e+01 : f32
    %153 = vector.broadcast %cst_79 : f32 to vector<16x1xf32>
    %154 = arith.divf %152, %153 : vector<16x1xf32>
    %155 = vector.broadcast %154 : vector<16x1xf32> to vector<16x32xf32>
    %156 = arith.subf %146, %155 : vector<16x32xf32>
    %157 = arith.mulf %156, %156 : vector<16x32xf32>
    %cst_80 = arith.constant dense<0.000000e+00> : vector<16xf32>
    %158 = vector.multi_reduction <add>, %157, %cst_80 [1] : vector<16x32xf32> to vector<16xf32>
    %159 = vector.shape_cast %158 : vector<16xf32> to vector<16x1xf32>
    %cst_81 = arith.constant 3.200000e+01 : f32
    %160 = vector.broadcast %cst_81 : f32 to vector<16x1xf32>
    %161 = arith.divf %159, %160 : vector<16x1xf32>
    %162 = vector.broadcast %154 : vector<16x1xf32> to vector<16x32xf32>
    %163 = arith.subf %146, %162 : vector<16x32xf32>
    %cst_82 = arith.constant 9.99999974E-6 : f32
    %164 = vector.broadcast %cst_82 : f32 to vector<16x1xf32>
    %165 = arith.addf %161, %164 : vector<16x1xf32>
    %166 = math.rsqrt %165 : vector<16x1xf32>
    %167 = vector.broadcast %166 : vector<16x1xf32> to vector<16x32xf32>
    %168 = arith.mulf %163, %167 : vector<16x32xf32>
    %169 = vector.broadcast %148 : vector<1x32xf32> to vector<16x32xf32>
    %170 = arith.mulf %168, %169 : vector<16x32xf32>
    %171 = vector.broadcast %150 : vector<1x32xf32> to vector<16x32xf32>
    %172 = arith.addf %170, %171 : vector<16x32xf32>
    %c0_83 = arith.constant 0 : index
    %c0_84 = arith.constant 0 : index
    %c0_85 = arith.constant 0 : index
    %173 = vector.load %arg15[%c0_83, %c0_84, %c0_85] : memref<2x32x32xf32, #tpu.memory_space<vmem>>, vector<1x32x32xf32>
    %174 = vector.shape_cast %173 : vector<1x32x32xf32> to vector<32x32xf32>
    %cst_86 = arith.constant dense<0.000000e+00> : vector<16x32xf32>
    %175 = tpu.matmul %172, %174, %cst_86 {dimension_numbers = #tpu.dot_dimension_numbers<[1], [0], [0], [1], [0, 0, 1, 1], [], []>, precision = #tpu.contract_precision<fp32>} : vector<16x32xf32>, vector<32x32xf32>, vector<16x32xf32> -> vector<16x32xf32>
    %c0_87 = arith.constant 0 : index
    %c0_88 = arith.constant 0 : index
    %c0_89 = arith.constant 0 : index
    %176 = vector.load %arg16[%c0_87, %c0_88, %c0_89] : memref<2x1x32xf32, #tpu.memory_space<vmem>>, vector<1x1x32xf32>
    %177 = vector.shape_cast %176 : vector<1x1x32xf32> to vector<1x32xf32>
    %178 = vector.broadcast %177 : vector<1x32xf32> to vector<16x32xf32>
    %179 = arith.addf %175, %178 : vector<16x32xf32>
    %cst_90 = arith.constant 5.000000e-01 : f32
    %180 = vector.broadcast %cst_90 : f32 to vector<16x32xf32>
    %181 = arith.mulf %180, %179 : vector<16x32xf32>
    %cst_91 = arith.constant 0.707106769 : f32
    %182 = vector.broadcast %cst_91 : f32 to vector<16x32xf32>
    %183 = arith.mulf %179, %182 : vector<16x32xf32>
    %184 = math.erf %183 : vector<16x32xf32>
    %cst_92 = arith.constant 1.000000e+00 : f32
    %185 = vector.broadcast %cst_92 : f32 to vector<16x32xf32>
    %186 = arith.addf %185, %184 : vector<16x32xf32>
    %187 = arith.mulf %181, %186 : vector<16x32xf32>
    %c0_93 = arith.constant 0 : index
    %c0_94 = arith.constant 0 : index
    %c0_95 = arith.constant 0 : index
    %188 = vector.load %arg17[%c0_93, %c0_94, %c0_95] : memref<2x32x32xf32, #tpu.memory_space<vmem>>, vector<1x32x32xf32>
    %189 = vector.shape_cast %188 : vector<1x32x32xf32> to vector<32x32xf32>
    %cst_96 = arith.constant dense<0.000000e+00> : vector<16x32xf32>
    %190 = tpu.matmul %187, %189, %cst_96 {dimension_numbers = #tpu.dot_dimension_numbers<[1], [0], [0], [1], [0, 0, 1, 1], [], []>, precision = #tpu.contract_precision<fp32>} : vector<16x32xf32>, vector<32x32xf32>, vector<16x32xf32> -> vector<16x32xf32>
    %191 = arith.addf %146, %190 : vector<16x32xf32>
    %c0_97 = arith.constant 0 : index
    %c0_98 = arith.constant 0 : index
    %c0_99 = arith.constant 0 : index
    %192 = vector.load %arg18[%c0_97, %c0_98, %c0_99] : memref<2x1x32xf32, #tpu.memory_space<vmem>>, vector<1x1x32xf32>
    %193 = vector.shape_cast %192 : vector<1x1x32xf32> to vector<1x32xf32>
    %194 = vector.broadcast %193 : vector<1x32xf32> to vector<16x32xf32>
    %195 = arith.addf %191, %194 : vector<16x32xf32>
    %c1_100 = arith.constant 1 : index
    %c0_101 = arith.constant 0 : index
    %c0_102 = arith.constant 0 : index
    %196 = vector.load %arg3[%c1_100, %c0_101, %c0_102] : memref<2x1x32xf32, #tpu.memory_space<vmem>>, vector<1x1x32xf32>
    %197 = vector.shape_cast %196 : vector<1x1x32xf32> to vector<1x32xf32>
    %c1_103 = arith.constant 1 : index
    %c0_104 = arith.constant 0 : index
    %c0_105 = arith.constant 0 : index
    %198 = vector.load %arg4[%c1_103, %c0_104, %c0_105] : memref<2x1x32xf32, #tpu.memory_space<vmem>>, vector<1x1x32xf32>
    %199 = vector.shape_cast %198 : vector<1x1x32xf32> to vector<1x32xf32>
    %cst_106 = arith.constant dense<0.000000e+00> : vector<16xf32>
    %200 = vector.multi_reduction <add>, %195, %cst_106 [1] : vector<16x32xf32> to vector<16xf32>
    %201 = vector.shape_cast %200 : vector<16xf32> to vector<16x1xf32>
    %cst_107 = arith.constant 3.200000e+01 : f32
    %202 = vector.broadcast %cst_107 : f32 to vector<16x1xf32>
    %203 = arith.divf %201, %202 : vector<16x1xf32>
    %204 = vector.broadcast %203 : vector<16x1xf32> to vector<16x32xf32>
    %205 = arith.subf %195, %204 : vector<16x32xf32>
    %206 = arith.mulf %205, %205 : vector<16x32xf32>
    %cst_108 = arith.constant dense<0.000000e+00> : vector<16xf32>
    %207 = vector.multi_reduction <add>, %206, %cst_108 [1] : vector<16x32xf32> to vector<16xf32>
    %208 = vector.shape_cast %207 : vector<16xf32> to vector<16x1xf32>
    %cst_109 = arith.constant 3.200000e+01 : f32
    %209 = vector.broadcast %cst_109 : f32 to vector<16x1xf32>
    %210 = arith.divf %208, %209 : vector<16x1xf32>
    %211 = vector.broadcast %203 : vector<16x1xf32> to vector<16x32xf32>
    %212 = arith.subf %195, %211 : vector<16x32xf32>
    %cst_110 = arith.constant 9.99999974E-6 : f32
    %213 = vector.broadcast %cst_110 : f32 to vector<16x1xf32>
    %214 = arith.addf %210, %213 : vector<16x1xf32>
    %215 = math.rsqrt %214 : vector<16x1xf32>
    %216 = vector.broadcast %215 : vector<16x1xf32> to vector<16x32xf32>
    %217 = arith.mulf %212, %216 : vector<16x32xf32>
    %218 = vector.broadcast %197 : vector<1x32xf32> to vector<16x32xf32>
    %219 = arith.mulf %217, %218 : vector<16x32xf32>
    %220 = vector.broadcast %199 : vector<1x32xf32> to vector<16x32xf32>
    %221 = arith.addf %219, %220 : vector<16x32xf32>
    %c1_111 = arith.constant 1 : index
    %c0_112 = arith.constant 0 : index
    %c0_113 = arith.constant 0 : index
    %222 = vector.load %arg5[%c1_111, %c0_112, %c0_113] : memref<2x32x32xf32, #tpu.memory_space<vmem>>, vector<1x32x32xf32>
    %223 = vector.shape_cast %222 : vector<1x32x32xf32> to vector<32x32xf32>
    %cst_114 = arith.constant dense<0.000000e+00> : vector<16x32xf32>
    %224 = tpu.matmul %221, %223, %cst_114 {dimension_numbers = #tpu.dot_dimension_numbers<[1], [0], [0], [1], [0, 0, 1, 1], [], []>, precision = #tpu.contract_precision<fp32>} : vector<16x32xf32>, vector<32x32xf32>, vector<16x32xf32> -> vector<16x32xf32>
    %c1_115 = arith.constant 1 : index
    %c0_116 = arith.constant 0 : index
    %c0_117 = arith.constant 0 : index
    %225 = vector.load %arg6[%c1_115, %c0_116, %c0_117] : memref<2x1x32xf32, #tpu.memory_space<vmem>>, vector<1x1x32xf32>
    %226 = vector.shape_cast %225 : vector<1x1x32xf32> to vector<1x32xf32>
    %227 = vector.broadcast %226 : vector<1x32xf32> to vector<16x32xf32>
    %228 = arith.addf %224, %227 : vector<16x32xf32>
    %c1_118 = arith.constant 1 : index
    %c0_119 = arith.constant 0 : index
    %c0_120 = arith.constant 0 : index
    %229 = vector.load %arg7[%c1_118, %c0_119, %c0_120] : memref<2x32x32xf32, #tpu.memory_space<vmem>>, vector<1x32x32xf32>
    %230 = vector.shape_cast %229 : vector<1x32x32xf32> to vector<32x32xf32>
    %cst_121 = arith.constant dense<0.000000e+00> : vector<16x32xf32>
    %231 = tpu.matmul %221, %230, %cst_121 {dimension_numbers = #tpu.dot_dimension_numbers<[1], [0], [0], [1], [0, 0, 1, 1], [], []>, precision = #tpu.contract_precision<fp32>} : vector<16x32xf32>, vector<32x32xf32>, vector<16x32xf32> -> vector<16x32xf32>
    %c1_122 = arith.constant 1 : index
    %c0_123 = arith.constant 0 : index
    %c0_124 = arith.constant 0 : index
    %232 = vector.load %arg8[%c1_122, %c0_123, %c0_124] : memref<2x1x32xf32, #tpu.memory_space<vmem>>, vector<1x1x32xf32>
    %233 = vector.shape_cast %232 : vector<1x1x32xf32> to vector<1x32xf32>
    %234 = vector.broadcast %233 : vector<1x32xf32> to vector<16x32xf32>
    %235 = arith.addf %231, %234 : vector<16x32xf32>
    %c1_125 = arith.constant 1 : index
    %c0_126 = arith.constant 0 : index
    %c0_127 = arith.constant 0 : index
    %236 = vector.load %arg9[%c1_125, %c0_126, %c0_127] : memref<2x32x32xf32, #tpu.memory_space<vmem>>, vector<1x32x32xf32>
    %237 = vector.shape_cast %236 : vector<1x32x32xf32> to vector<32x32xf32>
    %cst_128 = arith.constant dense<0.000000e+00> : vector<16x32xf32>
    %238 = tpu.matmul %221, %237, %cst_128 {dimension_numbers = #tpu.dot_dimension_numbers<[1], [0], [0], [1], [0, 0, 1, 1], [], []>, precision = #tpu.contract_precision<fp32>} : vector<16x32xf32>, vector<32x32xf32>, vector<16x32xf32> -> vector<16x32xf32>
    %c1_129 = arith.constant 1 : index
    %c0_130 = arith.constant 0 : index
    %c0_131 = arith.constant 0 : index
    %239 = vector.load %arg10[%c1_129, %c0_130, %c0_131] : memref<2x1x32xf32, #tpu.memory_space<vmem>>, vector<1x1x32xf32>
    %240 = vector.shape_cast %239 : vector<1x1x32xf32> to vector<1x32xf32>
    %241 = vector.broadcast %240 : vector<1x32xf32> to vector<16x32xf32>
    %242 = arith.addf %238, %241 : vector<16x32xf32>
    %cst_132 = arith.constant 0.000000e+00 : f32
    %243 = vector.broadcast %cst_132 : f32 to vector<16x32xf32>
    %244 = vector.extract_strided_slice %228 {offsets = [0, 0], sizes = [16, 8], strides = [1, 1]} : vector<16x32xf32> to vector<16x8xf32>
    %245 = vector.shape_cast %244 : vector<16x8xf32> to vector<2x8x8xf32>
    %246 = vector.extract_strided_slice %235 {offsets = [0, 0], sizes = [16, 8], strides = [1, 1]} : vector<16x32xf32> to vector<16x8xf32>
    %247 = vector.shape_cast %246 : vector<16x8xf32> to vector<2x8x8xf32>
    %248 = vector.extract_strided_slice %242 {offsets = [0, 0], sizes = [16, 8], strides = [1, 1]} : vector<16x32xf32> to vector<16x8xf32>
    %249 = vector.shape_cast %248 : vector<16x8xf32> to vector<2x8x8xf32>
    "tpu.trace_start"() <{level = 10 : i32, message = "bqd,bkd->bqk"}> : () -> ()
    %cst_133 = arith.constant dense<0.000000e+00> : vector<2x8x8xf32>
    %250 = tpu.matmul %245, %247, %cst_133 {dimension_numbers = #tpu.dot_dimension_numbers<[2], [2], [1], [1], [0, 0, 0, 1, 1, 1], [0], [0]>, precision = #tpu.contract_precision<fp32>} : vector<2x8x8xf32>, vector<2x8x8xf32>, vector<2x8x8xf32> -> vector<2x8x8xf32>
    "tpu.trace_stop"() : () -> ()
    %cst_134 = arith.constant dense<0xFF800000> : vector<2x8xf32>
    %251 = vector.multi_reduction <maximumf>, %250, %cst_134 [2] : vector<2x8x8xf32> to vector<2x8xf32>
    %252 = vector.shape_cast %251 : vector<2x8xf32> to vector<2x8x1xf32>
    %253 = vector.broadcast %252 : vector<2x8x1xf32> to vector<2x8x8xf32>
    %254 = arith.subf %250, %253 : vector<2x8x8xf32>
    %255 = math.exp %254 : vector<2x8x8xf32>
    %cst_135 = arith.constant dense<0.000000e+00> : vector<2x8xf32>
    %256 = vector.multi_reduction <add>, %255, %cst_135 [2] : vector<2x8x8xf32> to vector<2x8xf32>
    %257 = vector.shape_cast %256 : vector<2x8xf32> to vector<2x8x1xf32>
    %258 = vector.broadcast %257 : vector<2x8x1xf32> to vector<2x8x8xf32>
    %259 = arith.divf %255, %258 : vector<2x8x8xf32>
    "tpu.trace_start"() <{level = 10 : i32, message = "bqk,bkd->bqd"}> : () -> ()
    %cst_136 = arith.constant dense<0.000000e+00> : vector<2x8x8xf32>
    %260 = tpu.matmul %259, %249, %cst_136 {dimension_numbers = #tpu.dot_dimension_numbers<[2], [1], [1], [2], [0, 0, 0, 1, 1, 2], [0], [0]>, precision = #tpu.contract_precision<fp32>} : vector<2x8x8xf32>, vector<2x8x8xf32>, vector<2x8x8xf32> -> vector<2x8x8xf32>
    "tpu.trace_stop"() : () -> ()
    %261 = vector.shape_cast %260 : vector<2x8x8xf32> to vector<16x8xf32>
    %c1_137 = arith.constant 1 : index
    %c0_138 = arith.constant 0 : index
    %c0_139 = arith.constant 0 : index
    %c0_140 = arith.constant 0 : index
    %262 = vector.load %arg11[%c1_137, %c0_138, %c0_139, %c0_140] : memref<2x4x8x32xf32, #tpu.memory_space<vmem>>, vector<1x1x8x32xf32>
    %263 = vector.shape_cast %262 : vector<1x1x8x32xf32> to vector<8x32xf32>
    %cst_141 = arith.constant dense<0.000000e+00> : vector<16x32xf32>
    %264 = tpu.matmul %261, %263, %cst_141 {dimension_numbers = #tpu.dot_dimension_numbers<[1], [0], [0], [1], [0, 0, 1, 1], [], []>, precision = #tpu.contract_precision<fp32>} : vector<16x8xf32>, vector<8x32xf32>, vector<16x32xf32> -> vector<16x32xf32>
    %265 = arith.addf %243, %264 : vector<16x32xf32>
    %266 = vector.extract_strided_slice %228 {offsets = [0, 8], sizes = [16, 8], strides = [1, 1]} : vector<16x32xf32> to vector<16x8xf32>
    %267 = vector.shape_cast %266 : vector<16x8xf32> to vector<2x8x8xf32>
    %268 = vector.extract_strided_slice %235 {offsets = [0, 8], sizes = [16, 8], strides = [1, 1]} : vector<16x32xf32> to vector<16x8xf32>
    %269 = vector.shape_cast %268 : vector<16x8xf32> to vector<2x8x8xf32>
    %270 = vector.extract_strided_slice %242 {offsets = [0, 8], sizes = [16, 8], strides = [1, 1]} : vector<16x32xf32> to vector<16x8xf32>
    %271 = vector.shape_cast %270 : vector<16x8xf32> to vector<2x8x8xf32>
    "tpu.trace_start"() <{level = 10 : i32, message = "bqd,bkd->bqk"}> : () -> ()
    %cst_142 = arith.constant dense<0.000000e+00> : vector<2x8x8xf32>
    %272 = tpu.matmul %267, %269, %cst_142 {dimension_numbers = #tpu.dot_dimension_numbers<[2], [2], [1], [1], [0, 0, 0, 1, 1, 1], [0], [0]>, precision = #tpu.contract_precision<fp32>} : vector<2x8x8xf32>, vector<2x8x8xf32>, vector<2x8x8xf32> -> vector<2x8x8xf32>
    "tpu.trace_stop"() : () -> ()
    %cst_143 = arith.constant dense<0xFF800000> : vector<2x8xf32>
    %273 = vector.multi_reduction <maximumf>, %272, %cst_143 [2] : vector<2x8x8xf32> to vector<2x8xf32>
    %274 = vector.shape_cast %273 : vector<2x8xf32> to vector<2x8x1xf32>
    %275 = vector.broadcast %274 : vector<2x8x1xf32> to vector<2x8x8xf32>
    %276 = arith.subf %272, %275 : vector<2x8x8xf32>
    %277 = math.exp %276 : vector<2x8x8xf32>
    %cst_144 = arith.constant dense<0.000000e+00> : vector<2x8xf32>
    %278 = vector.multi_reduction <add>, %277, %cst_144 [2] : vector<2x8x8xf32> to vector<2x8xf32>
    %279 = vector.shape_cast %278 : vector<2x8xf32> to vector<2x8x1xf32>
    %280 = vector.broadcast %279 : vector<2x8x1xf32> to vector<2x8x8xf32>
    %281 = arith.divf %277, %280 : vector<2x8x8xf32>
    "tpu.trace_start"() <{level = 10 : i32, message = "bqk,bkd->bqd"}> : () -> ()
    %cst_145 = arith.constant dense<0.000000e+00> : vector<2x8x8xf32>
    %282 = tpu.matmul %281, %271, %cst_145 {dimension_numbers = #tpu.dot_dimension_numbers<[2], [1], [1], [2], [0, 0, 0, 1, 1, 2], [0], [0]>, precision = #tpu.contract_precision<fp32>} : vector<2x8x8xf32>, vector<2x8x8xf32>, vector<2x8x8xf32> -> vector<2x8x8xf32>
    "tpu.trace_stop"() : () -> ()
    %283 = vector.shape_cast %282 : vector<2x8x8xf32> to vector<16x8xf32>
    %c1_146 = arith.constant 1 : index
    %c1_147 = arith.constant 1 : index
    %c0_148 = arith.constant 0 : index
    %c0_149 = arith.constant 0 : index
    %284 = vector.load %arg11[%c1_146, %c1_147, %c0_148, %c0_149] : memref<2x4x8x32xf32, #tpu.memory_space<vmem>>, vector<1x1x8x32xf32>
    %285 = vector.shape_cast %284 : vector<1x1x8x32xf32> to vector<8x32xf32>
    %cst_150 = arith.constant dense<0.000000e+00> : vector<16x32xf32>
    %286 = tpu.matmul %283, %285, %cst_150 {dimension_numbers = #tpu.dot_dimension_numbers<[1], [0], [0], [1], [0, 0, 1, 1], [], []>, precision = #tpu.contract_precision<fp32>} : vector<16x8xf32>, vector<8x32xf32>, vector<16x32xf32> -> vector<16x32xf32>
    %287 = arith.addf %265, %286 : vector<16x32xf32>
    %288 = vector.extract_strided_slice %228 {offsets = [0, 16], sizes = [16, 8], strides = [1, 1]} : vector<16x32xf32> to vector<16x8xf32>
    %289 = vector.shape_cast %288 : vector<16x8xf32> to vector<2x8x8xf32>
    %290 = vector.extract_strided_slice %235 {offsets = [0, 16], sizes = [16, 8], strides = [1, 1]} : vector<16x32xf32> to vector<16x8xf32>
    %291 = vector.shape_cast %290 : vector<16x8xf32> to vector<2x8x8xf32>
    %292 = vector.extract_strided_slice %242 {offsets = [0, 16], sizes = [16, 8], strides = [1, 1]} : vector<16x32xf32> to vector<16x8xf32>
    %293 = vector.shape_cast %292 : vector<16x8xf32> to vector<2x8x8xf32>
    "tpu.trace_start"() <{level = 10 : i32, message = "bqd,bkd->bqk"}> : () -> ()
    %cst_151 = arith.constant dense<0.000000e+00> : vector<2x8x8xf32>
    %294 = tpu.matmul %289, %291, %cst_151 {dimension_numbers = #tpu.dot_dimension_numbers<[2], [2], [1], [1], [0, 0, 0, 1, 1, 1], [0], [0]>, precision = #tpu.contract_precision<fp32>} : vector<2x8x8xf32>, vector<2x8x8xf32>, vector<2x8x8xf32> -> vector<2x8x8xf32>
    "tpu.trace_stop"() : () -> ()
    %cst_152 = arith.constant dense<0xFF800000> : vector<2x8xf32>
    %295 = vector.multi_reduction <maximumf>, %294, %cst_152 [2] : vector<2x8x8xf32> to vector<2x8xf32>
    %296 = vector.shape_cast %295 : vector<2x8xf32> to vector<2x8x1xf32>
    %297 = vector.broadcast %296 : vector<2x8x1xf32> to vector<2x8x8xf32>
    %298 = arith.subf %294, %297 : vector<2x8x8xf32>
    %299 = math.exp %298 : vector<2x8x8xf32>
    %cst_153 = arith.constant dense<0.000000e+00> : vector<2x8xf32>
    %300 = vector.multi_reduction <add>, %299, %cst_153 [2] : vector<2x8x8xf32> to vector<2x8xf32>
    %301 = vector.shape_cast %300 : vector<2x8xf32> to vector<2x8x1xf32>
    %302 = vector.broadcast %301 : vector<2x8x1xf32> to vector<2x8x8xf32>
    %303 = arith.divf %299, %302 : vector<2x8x8xf32>
    "tpu.trace_start"() <{level = 10 : i32, message = "bqk,bkd->bqd"}> : () -> ()
    %cst_154 = arith.constant dense<0.000000e+00> : vector<2x8x8xf32>
    %304 = tpu.matmul %303, %293, %cst_154 {dimension_numbers = #tpu.dot_dimension_numbers<[2], [1], [1], [2], [0, 0, 0, 1, 1, 2], [0], [0]>, precision = #tpu.contract_precision<fp32>} : vector<2x8x8xf32>, vector<2x8x8xf32>, vector<2x8x8xf32> -> vector<2x8x8xf32>
    "tpu.trace_stop"() : () -> ()
    %305 = vector.shape_cast %304 : vector<2x8x8xf32> to vector<16x8xf32>
    %c1_155 = arith.constant 1 : index
    %c2_156 = arith.constant 2 : index
    %c0_157 = arith.constant 0 : index
    %c0_158 = arith.constant 0 : index
    %306 = vector.load %arg11[%c1_155, %c2_156, %c0_157, %c0_158] : memref<2x4x8x32xf32, #tpu.memory_space<vmem>>, vector<1x1x8x32xf32>
    %307 = vector.shape_cast %306 : vector<1x1x8x32xf32> to vector<8x32xf32>
    %cst_159 = arith.constant dense<0.000000e+00> : vector<16x32xf32>
    %308 = tpu.matmul %305, %307, %cst_159 {dimension_numbers = #tpu.dot_dimension_numbers<[1], [0], [0], [1], [0, 0, 1, 1], [], []>, precision = #tpu.contract_precision<fp32>} : vector<16x8xf32>, vector<8x32xf32>, vector<16x32xf32> -> vector<16x32xf32>
    %309 = arith.addf %287, %308 : vector<16x32xf32>
    %310 = vector.extract_strided_slice %228 {offsets = [0, 24], sizes = [16, 8], strides = [1, 1]} : vector<16x32xf32> to vector<16x8xf32>
    %311 = vector.shape_cast %310 : vector<16x8xf32> to vector<2x8x8xf32>
    %312 = vector.extract_strided_slice %235 {offsets = [0, 24], sizes = [16, 8], strides = [1, 1]} : vector<16x32xf32> to vector<16x8xf32>
    %313 = vector.shape_cast %312 : vector<16x8xf32> to vector<2x8x8xf32>
    %314 = vector.extract_strided_slice %242 {offsets = [0, 24], sizes = [16, 8], strides = [1, 1]} : vector<16x32xf32> to vector<16x8xf32>
    %315 = vector.shape_cast %314 : vector<16x8xf32> to vector<2x8x8xf32>
    "tpu.trace_start"() <{level = 10 : i32, message = "bqd,bkd->bqk"}> : () -> ()
    %cst_160 = arith.constant dense<0.000000e+00> : vector<2x8x8xf32>
    %316 = tpu.matmul %311, %313, %cst_160 {dimension_numbers = #tpu.dot_dimension_numbers<[2], [2], [1], [1], [0, 0, 0, 1, 1, 1], [0], [0]>, precision = #tpu.contract_precision<fp32>} : vector<2x8x8xf32>, vector<2x8x8xf32>, vector<2x8x8xf32> -> vector<2x8x8xf32>
    "tpu.trace_stop"() : () -> ()
    %cst_161 = arith.constant dense<0xFF800000> : vector<2x8xf32>
    %317 = vector.multi_reduction <maximumf>, %316, %cst_161 [2] : vector<2x8x8xf32> to vector<2x8xf32>
    %318 = vector.shape_cast %317 : vector<2x8xf32> to vector<2x8x1xf32>
    %319 = vector.broadcast %318 : vector<2x8x1xf32> to vector<2x8x8xf32>
    %320 = arith.subf %316, %319 : vector<2x8x8xf32>
    %321 = math.exp %320 : vector<2x8x8xf32>
    %cst_162 = arith.constant dense<0.000000e+00> : vector<2x8xf32>
    %322 = vector.multi_reduction <add>, %321, %cst_162 [2] : vector<2x8x8xf32> to vector<2x8xf32>
    %323 = vector.shape_cast %322 : vector<2x8xf32> to vector<2x8x1xf32>
    %324 = vector.broadcast %323 : vector<2x8x1xf32> to vector<2x8x8xf32>
    %325 = arith.divf %321, %324 : vector<2x8x8xf32>
    "tpu.trace_start"() <{level = 10 : i32, message = "bqk,bkd->bqd"}> : () -> ()
    %cst_163 = arith.constant dense<0.000000e+00> : vector<2x8x8xf32>
    %326 = tpu.matmul %325, %315, %cst_163 {dimension_numbers = #tpu.dot_dimension_numbers<[2], [1], [1], [2], [0, 0, 0, 1, 1, 2], [0], [0]>, precision = #tpu.contract_precision<fp32>} : vector<2x8x8xf32>, vector<2x8x8xf32>, vector<2x8x8xf32> -> vector<2x8x8xf32>
    "tpu.trace_stop"() : () -> ()
    %327 = vector.shape_cast %326 : vector<2x8x8xf32> to vector<16x8xf32>
    %c1_164 = arith.constant 1 : index
    %c3_165 = arith.constant 3 : index
    %c0_166 = arith.constant 0 : index
    %c0_167 = arith.constant 0 : index
    %328 = vector.load %arg11[%c1_164, %c3_165, %c0_166, %c0_167] : memref<2x4x8x32xf32, #tpu.memory_space<vmem>>, vector<1x1x8x32xf32>
    %329 = vector.shape_cast %328 : vector<1x1x8x32xf32> to vector<8x32xf32>
    %cst_168 = arith.constant dense<0.000000e+00> : vector<16x32xf32>
    %330 = tpu.matmul %327, %329, %cst_168 {dimension_numbers = #tpu.dot_dimension_numbers<[1], [0], [0], [1], [0, 0, 1, 1], [], []>, precision = #tpu.contract_precision<fp32>} : vector<16x8xf32>, vector<8x32xf32>, vector<16x32xf32> -> vector<16x32xf32>
    %331 = arith.addf %309, %330 : vector<16x32xf32>
    %332 = arith.addf %195, %331 : vector<16x32xf32>
    %c1_169 = arith.constant 1 : index
    %c0_170 = arith.constant 0 : index
    %c0_171 = arith.constant 0 : index
    %333 = vector.load %arg12[%c1_169, %c0_170, %c0_171] : memref<2x1x32xf32, #tpu.memory_space<vmem>>, vector<1x1x32xf32>
    %334 = vector.shape_cast %333 : vector<1x1x32xf32> to vector<1x32xf32>
    %335 = vector.broadcast %334 : vector<1x32xf32> to vector<16x32xf32>
    %336 = arith.addf %332, %335 : vector<16x32xf32>
    %c1_172 = arith.constant 1 : index
    %c0_173 = arith.constant 0 : index
    %c0_174 = arith.constant 0 : index
    %337 = vector.load %arg13[%c1_172, %c0_173, %c0_174] : memref<2x1x32xf32, #tpu.memory_space<vmem>>, vector<1x1x32xf32>
    %338 = vector.shape_cast %337 : vector<1x1x32xf32> to vector<1x32xf32>
    %c1_175 = arith.constant 1 : index
    %c0_176 = arith.constant 0 : index
    %c0_177 = arith.constant 0 : index
    %339 = vector.load %arg14[%c1_175, %c0_176, %c0_177] : memref<2x1x32xf32, #tpu.memory_space<vmem>>, vector<1x1x32xf32>
    %340 = vector.shape_cast %339 : vector<1x1x32xf32> to vector<1x32xf32>
    %cst_178 = arith.constant dense<0.000000e+00> : vector<16xf32>
    %341 = vector.multi_reduction <add>, %336, %cst_178 [1] : vector<16x32xf32> to vector<16xf32>
    %342 = vector.shape_cast %341 : vector<16xf32> to vector<16x1xf32>
    %cst_179 = arith.constant 3.200000e+01 : f32
    %343 = vector.broadcast %cst_179 : f32 to vector<16x1xf32>
    %344 = arith.divf %342, %343 : vector<16x1xf32>
    %345 = vector.broadcast %344 : vector<16x1xf32> to vector<16x32xf32>
    %346 = arith.subf %336, %345 : vector<16x32xf32>
    %347 = arith.mulf %346, %346 : vector<16x32xf32>
    %cst_180 = arith.constant dense<0.000000e+00> : vector<16xf32>
    %348 = vector.multi_reduction <add>, %347, %cst_180 [1] : vector<16x32xf32> to vector<16xf32>
    %349 = vector.shape_cast %348 : vector<16xf32> to vector<16x1xf32>
    %cst_181 = arith.constant 3.200000e+01 : f32
    %350 = vector.broadcast %cst_181 : f32 to vector<16x1xf32>
    %351 = arith.divf %349, %350 : vector<16x1xf32>
    %352 = vector.broadcast %344 : vector<16x1xf32> to vector<16x32xf32>
    %353 = arith.subf %336, %352 : vector<16x32xf32>
    %cst_182 = arith.constant 9.99999974E-6 : f32
    %354 = vector.broadcast %cst_182 : f32 to vector<16x1xf32>
    %355 = arith.addf %351, %354 : vector<16x1xf32>
    %356 = math.rsqrt %355 : vector<16x1xf32>
    %357 = vector.broadcast %356 : vector<16x1xf32> to vector<16x32xf32>
    %358 = arith.mulf %353, %357 : vector<16x32xf32>
    %359 = vector.broadcast %338 : vector<1x32xf32> to vector<16x32xf32>
    %360 = arith.mulf %358, %359 : vector<16x32xf32>
    %361 = vector.broadcast %340 : vector<1x32xf32> to vector<16x32xf32>
    %362 = arith.addf %360, %361 : vector<16x32xf32>
    %c1_183 = arith.constant 1 : index
    %c0_184 = arith.constant 0 : index
    %c0_185 = arith.constant 0 : index
    %363 = vector.load %arg15[%c1_183, %c0_184, %c0_185] : memref<2x32x32xf32, #tpu.memory_space<vmem>>, vector<1x32x32xf32>
    %364 = vector.shape_cast %363 : vector<1x32x32xf32> to vector<32x32xf32>
    %cst_186 = arith.constant dense<0.000000e+00> : vector<16x32xf32>
    %365 = tpu.matmul %362, %364, %cst_186 {dimension_numbers = #tpu.dot_dimension_numbers<[1], [0], [0], [1], [0, 0, 1, 1], [], []>, precision = #tpu.contract_precision<fp32>} : vector<16x32xf32>, vector<32x32xf32>, vector<16x32xf32> -> vector<16x32xf32>
    %c1_187 = arith.constant 1 : index
    %c0_188 = arith.constant 0 : index
    %c0_189 = arith.constant 0 : index
    %366 = vector.load %arg16[%c1_187, %c0_188, %c0_189] : memref<2x1x32xf32, #tpu.memory_space<vmem>>, vector<1x1x32xf32>
    %367 = vector.shape_cast %366 : vector<1x1x32xf32> to vector<1x32xf32>
    %368 = vector.broadcast %367 : vector<1x32xf32> to vector<16x32xf32>
    %369 = arith.addf %365, %368 : vector<16x32xf32>
    %cst_190 = arith.constant 5.000000e-01 : f32
    %370 = vector.broadcast %cst_190 : f32 to vector<16x32xf32>
    %371 = arith.mulf %370, %369 : vector<16x32xf32>
    %cst_191 = arith.constant 0.707106769 : f32
    %372 = vector.broadcast %cst_191 : f32 to vector<16x32xf32>
    %373 = arith.mulf %369, %372 : vector<16x32xf32>
    %374 = math.erf %373 : vector<16x32xf32>
    %cst_192 = arith.constant 1.000000e+00 : f32
    %375 = vector.broadcast %cst_192 : f32 to vector<16x32xf32>
    %376 = arith.addf %375, %374 : vector<16x32xf32>
    %377 = arith.mulf %371, %376 : vector<16x32xf32>
    %c1_193 = arith.constant 1 : index
    %c0_194 = arith.constant 0 : index
    %c0_195 = arith.constant 0 : index
    %378 = vector.load %arg17[%c1_193, %c0_194, %c0_195] : memref<2x32x32xf32, #tpu.memory_space<vmem>>, vector<1x32x32xf32>
    %379 = vector.shape_cast %378 : vector<1x32x32xf32> to vector<32x32xf32>
    %cst_196 = arith.constant dense<0.000000e+00> : vector<16x32xf32>
    %380 = tpu.matmul %377, %379, %cst_196 {dimension_numbers = #tpu.dot_dimension_numbers<[1], [0], [0], [1], [0, 0, 1, 1], [], []>, precision = #tpu.contract_precision<fp32>} : vector<16x32xf32>, vector<32x32xf32>, vector<16x32xf32> -> vector<16x32xf32>
    %381 = arith.addf %336, %380 : vector<16x32xf32>
    %c1_197 = arith.constant 1 : index
    %c0_198 = arith.constant 0 : index
    %c0_199 = arith.constant 0 : index
    %382 = vector.load %arg18[%c1_197, %c0_198, %c0_199] : memref<2x1x32xf32, #tpu.memory_space<vmem>>, vector<1x1x32xf32>
    %383 = vector.shape_cast %382 : vector<1x1x32xf32> to vector<1x32xf32>
    %384 = vector.broadcast %383 : vector<1x32xf32> to vector<16x32xf32>
    %385 = arith.addf %381, %384 : vector<16x32xf32>
    %386 = vector.shape_cast %385 : vector<16x32xf32> to vector<2x8x32xf32>
    %c0_200 = arith.constant 0 : index
    %c0_201 = arith.constant 0 : index
    %c0_202 = arith.constant 0 : index
    %387 = vector.load %arg19[%c0_200, %c0_201, %c0_202] : memref<2x8x32xf32, #tpu.memory_space<vmem>>, vector<2x8x32xf32>
    tpu.vector_store %arg19[%c0_200, %c0_201, %c0_202], %386 {strides = array<i32>} : memref<2x8x32xf32, #tpu.memory_space<vmem>>, vector<2x8x32xf32>,
    return
  }
  func.func @transform_0(%arg0: i32) -> (i32, i32, i32) {
    %c0_i32 = arith.constant 0 : i32
    %c0_i32_0 = arith.constant 0 : i32
    %c0_i32_1 = arith.constant 0 : i32
    return %arg0, %c0_i32, %c0_i32_0 : i32, i32, i32
  }
  func.func @transform_1(%arg0: i32) -> (i32, i32) {
    %c0_i32 = arith.constant 0 : i32
    %c0_i32_0 = arith.constant 0 : i32
    %c0_i32_1 = arith.constant 0 : i32
    return %c0_i32, %c0_i32_0 : i32, i32
  }
  func.func @transform_2(%arg0: i32) -> (i32, i32, i32) {
    %c0_i32 = arith.constant 0 : i32
    %c0_i32_0 = arith.constant 0 : i32
    %c0_i32_1 = arith.constant 0 : i32
    %c0_i32_2 = arith.constant 0 : i32
    return %c0_i32, %c0_i32_0, %c0_i32_1 : i32, i32, i32
  }
  func.func @transform_3(%arg0: i32) -> (i32, i32, i32) {
    %c0_i32 = arith.constant 0 : i32
    %c0_i32_0 = arith.constant 0 : i32
    %c0_i32_1 = arith.constant 0 : i32
    %c0_i32_2 = arith.constant 0 : i32
    return %c0_i32, %c0_i32_0, %c0_i32_1 : i32, i32, i32
  }
  func.func @transform_4(%arg0: i32) -> (i32, i32, i32) {
    %c0_i32 = arith.constant 0 : i32
    %c0_i32_0 = arith.constant 0 : i32
    %c0_i32_1 = arith.constant 0 : i32
    %c0_i32_2 = arith.constant 0 : i32
    return %c0_i32, %c0_i32_0, %c0_i32_1 : i32, i32, i32
  }
  func.func @transform_5(%arg0: i32) -> (i32, i32, i32) {
    %c0_i32 = arith.constant 0 : i32
    %c0_i32_0 = arith.constant 0 : i32
    %c0_i32_1 = arith.constant 0 : i32
    %c0_i32_2 = arith.constant 0 : i32
    return %c0_i32, %c0_i32_0, %c0_i32_1 : i32, i32, i32
  }
  func.func @transform_6(%arg0: i32) -> (i32, i32, i32) {
    %c0_i32 = arith.constant 0 : i32
    %c0_i32_0 = arith.constant 0 : i32
    %c0_i32_1 = arith.constant 0 : i32
    %c0_i32_2 = arith.constant 0 : i32
    return %c0_i32, %c0_i32_0, %c0_i32_1 : i32, i32, i32
  }
  func.func @transform_7(%arg0: i32) -> (i32, i32, i32) {
    %c0_i32 = arith.constant 0 : i32
    %c0_i32_0 = arith.constant 0 : i32
    %c0_i32_1 = arith.constant 0 : i32
    %c0_i32_2 = arith.constant 0 : i32
    return %c0_i32, %c0_i32_0, %c0_i32_1 : i32, i32, i32
  }
  func.func @transform_8(%arg0: i32) -> (i32, i32, i32) {
    %c0_i32 = arith.constant 0 : i32
    %c0_i32_0 = arith.constant 0 : i32
    %c0_i32_1 = arith.constant 0 : i32
    %c0_i32_2 = arith.constant 0 : i32
    return %c0_i32, %c0_i32_0, %c0_i32_1 : i32, i32, i32
  }
  func.func @transform_9(%arg0: i32) -> (i32, i32, i32) {
    %c0_i32 = arith.constant 0 : i32
    %c0_i32_0 = arith.constant 0 : i32
    %c0_i32_1 = arith.constant 0 : i32
    %c0_i32_2 = arith.constant 0 : i32
    return %c0_i32, %c0_i32_0, %c0_i32_1 : i32, i32, i32
  }
  func.func @transform_10(%arg0: i32) -> (i32, i32, i32, i32) {
    %c0_i32 = arith.constant 0 : i32
    %c0_i32_0 = arith.constant 0 : i32
    %c0_i32_1 = arith.constant 0 : i32
    %c0_i32_2 = arith.constant 0 : i32
    %c0_i32_3 = arith.constant 0 : i32
    return %c0_i32, %c0_i32_0, %c0_i32_1, %c0_i32_2 : i32, i32, i32, i32
  }
  func.func @transform_11(%arg0: i32) -> (i32, i32, i32) {
    %c0_i32 = arith.constant 0 : i32
    %c0_i32_0 = arith.constant 0 : i32
    %c0_i32_1 = arith.constant 0 : i32
    %c0_i32_2 = arith.constant 0 : i32
    return %c0_i32, %c0_i32_0, %c0_i32_1 : i32, i32, i32
  }
  func.func @transform_12(%arg0: i32) -> (i32, i32, i32) {
    %c0_i32 = arith.constant 0 : i32
    %c0_i32_0 = arith.constant 0 : i32
    %c0_i32_1 = arith.constant 0 : i32
    %c0_i32_2 = arith.constant 0 : i32
    return %c0_i32, %c0_i32_0, %c0_i32_1 : i32, i32, i32
  }
  func.func @transform_13(%arg0: i32) -> (i32, i32, i32) {
    %c0_i32 = arith.constant 0 : i32
    %c0_i32_0 = arith.constant 0 : i32
    %c0_i32_1 = arith.constant 0 : i32
    %c0_i32_2 = arith.constant 0 : i32
    return %c0_i32, %c0_i32_0, %c0_i32_1 : i32, i32, i32
  }
  func.func @transform_14(%arg0: i32) -> (i32, i32, i32) {
    %c0_i32 = arith.constant 0 : i32
    %c0_i32_0 = arith.constant 0 : i32
    %c0_i32_1 = arith.constant 0 : i32
    %c0_i32_2 = arith.constant 0 : i32
    return %c0_i32, %c0_i32_0, %c0_i32_1 : i32, i32, i32
  }
  func.func @transform_15(%arg0: i32) -> (i32, i32, i32) {
    %c0_i32 = arith.constant 0 : i32
    %c0_i32_0 = arith.constant 0 : i32
    %c0_i32_1 = arith.constant 0 : i32
    %c0_i32_2 = arith.constant 0 : i32
    return %c0_i32, %c0_i32_0, %c0_i32_1 : i32, i32, i32
  }
  func.func @transform_16(%arg0: i32) -> (i32, i32, i32) {
    %c0_i32 = arith.constant 0 : i32
    %c0_i32_0 = arith.constant 0 : i32
    %c0_i32_1 = arith.constant 0 : i32
    %c0_i32_2 = arith.constant 0 : i32
    return %c0_i32, %c0_i32_0, %c0_i32_1 : i32, i32, i32
  }
  func.func @transform_17(%arg0: i32) -> (i32, i32, i32) {
    %c0_i32 = arith.constant 0 : i32
    %c0_i32_0 = arith.constant 0 : i32
    %c0_i32_1 = arith.constant 0 : i32
    %c0_i32_2 = arith.constant 0 : i32
    return %c0_i32, %c0_i32_0, %c0_i32_1 : i32, i32, i32
  }
  func.func @transform_18(%arg0: i32) -> (i32, i32, i32) {
    %c0_i32 = arith.constant 0 : i32
    %c0_i32_0 = arith.constant 0 : i32
    %c0_i32_1 = arith.constant 0 : i32
    return %arg0, %c0_i32, %c0_i32_0 : i32, i32, i32
  }
}

</mosaic_0001>

<bundles_post_ra>
// kernel: tpu_custom_call.1
= control target key start
LH: loop header
LB: loop body
LE: loop exit
PB: predicated region body
PF: predicated region fallthrough
CT: control target
= control target key end

     0   :  { %s30266_s0 = inlined_call_operand.hbm [shape: f32[2,8,32], index: 0, kind: input, shape index: {}]   ;;  %s30267_s1 = inlined_call_operand.hbm [shape: f32[8,32], index: 1, kind: input, shape index: {}]   ;;  %s30268_s2 = inlined_call_operand.vmem [shape: f32[2,1,32], index: 2, kind: input, shape index: {}]   ;;  %s30269_s3 = inlined_call_operand.vmem [shape: f32[2,1,32], index: 3, kind: input, shape index: {}]   ;;  %s30270_s4 = inlined_call_operand.hbm [shape: f32[2,32,32], index: 4, kind: input, shape index: {}]   ;;  %s30271_s5 = inlined_call_operand.vmem [shape: f32[2,1,32], index: 5, kind: input, shape index: {}]   ;;  %s30272_s6 = inlined_call_operand.hbm [shape: f32[2,32,32], index: 6, kind: input, shape index: {}]   ;;  %s30273_s7 = inlined_call_operand.vmem [shape: f32[2,1,32], index: 7, kind: input, shape index: {}]   ;;  %s30274_s8 = inlined_call_operand.hbm [shape: f32[2,32,32], index: 8, kind: input, shape index: {}]   ;;  %s30275_s9 = inlined_call_operand.vmem [shape: f32[2,1,32], index: 9, kind: input, shape index: {}]   ;;  %s30276_s10 = inlined_call_operand.hbm [shape: f32[2,4,8,32], index: 10, kind: input, shape index: {}]   ;;  %s30277_s11 = inlined_call_operand.vmem [shape: f32[2,1,32], index: 11, kind: input, shape index: {}]   ;;  %s30278_s12 = inlined_call_operand.vmem [shape: f32[2,1,32], index: 12, kind: input, shape index: {}]   ;;  %s30279_s13 = inlined_call_operand.vmem [shape: f32[2,1,32], index: 13, kind: input, shape index: {}]   ;;  %s30280_s14 = inlined_call_operand.hbm [shape: f32[2,32,32], index: 14, kind: input, shape index: {}]   ;;  %s30281_s15 = inlined_call_operand.vmem [shape: f32[2,1,32], index: 15, kind: input, shape index: {}]   ;;  %s30282_s16 = inlined_call_operand.hbm [shape: f32[2,32,32], index: 16, kind: input, shape index: {}]   ;;  %s30283_s17 = inlined_call_operand.vmem [shape: f32[2,1,32], index: 17, kind: input, shape index: {}]   ;;  %s30284_s18 = inlined_call_operand.hbm [shape: f32[2,8,32], index: 18, kind: output, shape index: {}]  }
   0x1   :  { %30289 = sst [smem:[#allocation23_spill]] %s30266_s0 }
   0x2   :  { %30290 = sst [smem:[#allocation24_spill]] %s30267_s1 }
   0x3   :  { %30291 = sst [smem:[#allocation25_spill]] %s30268_s2 }
   0x4   :  { %30292 = sst [smem:[#allocation26_spill]] %s30284_s18 }
   0x5   :  { %23 = vsyncpa [#allocation3], 0 }
   0x6   :  { %24 = vsyncpa [#allocation6], 0 }
   0x7   :  { %25 = vsyncpa [#allocation9], 0 }
   0x8   :  { %26 = vsyncpa [#allocation12], 0 }
   0x9   :  { %27 = vsyncpa [#allocation15], 0 }
   0xa   :  { %28 = vsyncpa [#allocation4], 0  ;;  %s28604_s27 = smov [#allocation5]   ;;  %s30293_s0 = sld [smem:[#allocation24_spill]] }
   0xb   :  { %s47_s28 = sshll.u32 %s28604_s27, 4  ;;  %s48_s28 = int_to_ptr.vmem [resolvable:$true] %s47_s28 }
  0x10   :  { %s28394_s19 = scalar_lea.hbm %s30293_s0, 128 }
  0x11   :  { %p28395_p0 = scmp.ne.s32.totalorder %s30293_s0, %s28394_s19  ;;  %p28398_p1 = scmp.lt.u32.totalorder %s28394_s19, %s30293_s0 }
  0x13   :  { %p28400_p2 = pnand %p28398_p1, %p28395_p0 }
  0x15   :  { %28403 = shalt.err (!%p28400_p2)
}
  0x16   :  { %s28404_s2 = scalar_lea.vmem %s48_s28, 128  ;;  %p28409_p4 = scmp.lt.s32.totalorder %s48_s28, %s48_s28 }
  0x17   :  { %p28405_p3 = scmp.ne.s32.totalorder %s48_s28, %s28404_s2  ;;  %p28410_p5 = scmp.lt.s32.totalorder %s28404_s2, %s28404_s2 }
  0x19   :  { %p28411_p6 = por %p28410_p5, %p28409_p4 }
  0x1b   :  { %p28412_p7 = pnand %p28411_p6, %p28405_p3 }
  0x1d   :  { %28415 = shalt.err (!%p28412_p7)
}
  0x1e   :  { %50 = dma.hbm_to_vmem [thread:$0]  %s30293_s0, 128, %s48_s28, [#allocation6]  }
  0x1f   :  { %s28605_s25 = smov [#allocation8]   ;;  %s28606_s27 = smov [#allocation11]  }
  0x20   :  { %s74_s26 = sshll.u32 %s28605_s25, 4  ;;  %s102_s29 = sshll.u32 %s28606_s27, 4  ;;  %s75_s26 = int_to_ptr.vmem [resolvable:$true] %s74_s26  ;;  %s103_s29 = int_to_ptr.vmem [resolvable:$true] %s102_s29 }
  0x21   :  { %s28416_s1 = scalar_lea.hbm %s30272_s6, 1024 }
  0x22   :  { %p28417_p8 = scmp.ne.s32.totalorder %s30272_s6, %s28416_s1  ;;  %p28420_p9 = scmp.lt.u32.totalorder %s28416_s1, %s30272_s6 }
  0x24   :  { %p28422_p10 = pnand %p28420_p9, %p28417_p8 }
  0x26   :  { %28425 = shalt.err (!%p28422_p10)
}
  0x27   :  { %s28426_s28 = scalar_lea.vmem %s75_s26, 1024  ;;  %p28431_p12 = scmp.lt.s32.totalorder %s75_s26, %s75_s26 }
  0x28   :  { %p28427_p11 = scmp.ne.s32.totalorder %s75_s26, %s28426_s28  ;;  %p28432_p13 = scmp.lt.s32.totalorder %s28426_s28, %s28426_s28 }
  0x2a   :  { %p28433_p0 = por %p28432_p13, %p28431_p12 }
  0x2c   :  { %p28434_p1 = pnand %p28433_p0, %p28427_p11 }
  0x2e   :  { %28437 = shalt.err (!%p28434_p1)
}
  0x2f   :  { %s28607_s0 = smov 128   ;;  %s28608_s23 = smov 8  }
  0x30   :  { %80 = dma.hbm_to_vmem [thread:$0]  %s30272_s6, 1024, %s75_s26, [#allocation9], %s28607_s0, %s28607_s0, %s28608_s23  }
  0x31   :  { %s28438_s19 = scalar_lea.hbm %s30276_s10, 1024 }
  0x32   :  { %p28439_p2 = scmp.ne.s32.totalorder %s30276_s10, %s28438_s19  ;;  %p28442_p3 = scmp.lt.u32.totalorder %s28438_s19, %s30276_s10 }
  0x34   :  { %p28444_p4 = pnand %p28442_p3, %p28439_p2 }
  0x36   :  { %28447 = shalt.err (!%p28444_p4)
}
  0x37   :  { %s28448_s2 = scalar_lea.vmem %s103_s29, 1024  ;;  %p28453_p6 = scmp.lt.s32.totalorder %s103_s29, %s103_s29 }
  0x38   :  { %p28449_p5 = scmp.ne.s32.totalorder %s103_s29, %s28448_s2  ;;  %p28454_p7 = scmp.lt.s32.totalorder %s28448_s2, %s28448_s2 }
  0x3a   :  { %p28455_p8 = por %p28454_p7, %p28453_p6 }
  0x3c   :  { %p28456_p9 = pnand %p28455_p8, %p28449_p5 }
  0x3e   :  { %28459 = shalt.err (!%p28456_p9)
}
  0x3f   :  { %108 = dma.hbm_to_vmem [thread:$0]  %s30276_s10, 1024, %s103_s29, [#allocation12], %s28607_s0, %s28607_s0, %s28608_s23  }
  0x40   :  { %s28609_s28 = smov [#allocation2]   ;;  %s28610_s25 = smov [#allocation7]  }
  0x41   :  { %s34_s24 = sshll.u32 %s28609_s28, 4  ;;  %s60_s27 = sshll.u32 %s28610_s25, 4  ;;  %s35_s24 = int_to_ptr.vmem [resolvable:$true] %s34_s24  ;;  %s61_s27 = int_to_ptr.vmem [resolvable:$true] %s60_s27 }
  0x42   :  { %s30294_s1 = sld [smem:[#allocation23_spill]] }
  0x48   :  { %s28460_s20 = scalar_lea.hbm %s30294_s1, 256 }
  0x49   :  { %p28461_p10 = scmp.ne.s32.totalorder %s30294_s1, %s28460_s20  ;;  %p28464_p11 = scmp.lt.u32.totalorder %s28460_s20, %s30294_s1 }
  0x4b   :  { %p28466_p12 = pnand %p28464_p11, %p28461_p10 }
  0x4d   :  { %28469 = shalt.err (!%p28466_p12)
}
  0x4e   :  { %s28470_s10 = scalar_lea.vmem %s35_s24, 256  ;;  %p28475_p0 = scmp.lt.s32.totalorder %s35_s24, %s35_s24 }
  0x4f   :  { %p28471_p13 = scmp.ne.s32.totalorder %s35_s24, %s28470_s10  ;;  %p28476_p1 = scmp.lt.s32.totalorder %s28470_s10, %s28470_s10 }
  0x51   :  { %p28477_p2 = por %p28476_p1, %p28475_p0 }
  0x53   :  { %p28478_p3 = pnand %p28477_p2, %p28471_p13 }
  0x55   :  { %28481 = shalt.err (!%p28478_p3)
}
  0x56   :  { %40 = dma.hbm_to_vmem [thread:$0]  %s30294_s1, 256, %s35_s24, [#allocation3], %s28607_s0, %s28607_s0, %s28608_s23  }
  0x57   :  { %s28482_s28 = scalar_lea.hbm %s30270_s4, 1024 }
  0x58   :  { %p28483_p4 = scmp.ne.s32.totalorder %s30270_s4, %s28482_s28  ;;  %p28486_p5 = scmp.lt.u32.totalorder %s28482_s28, %s30270_s4 }
  0x5a   :  { %p28488_p6 = pnand %p28486_p5, %p28483_p4 }
  0x5c   :  { %28491 = shalt.err (!%p28488_p6)
}
  0x5d   :  { %s28492_s21 = scalar_lea.vmem %s61_s27, 1024  ;;  %p28497_p8 = scmp.lt.s32.totalorder %s61_s27, %s61_s27 }
  0x5e   :  { %p28493_p7 = scmp.ne.s32.totalorder %s61_s27, %s28492_s21  ;;  %p28498_p9 = scmp.lt.s32.totalorder %s28492_s21, %s28492_s21 }
  0x60   :  { %p28499_p10 = por %p28498_p9, %p28497_p8 }
  0x62   :  { %p28500_p11 = pnand %p28499_p10, %p28493_p7 }
  0x64   :  { %28503 = shalt.err (!%p28500_p11)
}
  0x65   :  { %66 = dma.hbm_to_vmem [thread:$0]  %s30270_s4, 1024, %s61_s27, [#allocation6], %s28607_s0, %s28607_s0, %s28608_s23  }
  0x66   :  { %s28611_s22 = smov [#allocation10]   ;;  %s28612_s10 = smov [#allocation13]  }
  0x67   :  { %s88_s2 = sshll.u32 %s28611_s22, 4  ;;  %s120_s29 = sshll.u32 %s28612_s10, 4  ;;  %s89_s2 = int_to_ptr.vmem [resolvable:$true] %s88_s2  ;;  %s121_s29 = int_to_ptr.vmem [resolvable:$true] %s120_s29 }
  0x68   :  { %s28504_s18 = scalar_lea.hbm %s30274_s8, 1024 }
  0x69   :  { %p28505_p12 = scmp.ne.s32.totalorder %s30274_s8, %s28504_s18  ;;  %p28508_p13 = scmp.lt.u32.totalorder %s28504_s18, %s30274_s8 }
  0x6b   :  { %p28510_p0 = pnand %p28508_p13, %p28505_p12 }
  0x6d   :  { %28513 = shalt.err (!%p28510_p0)
}
  0x6e   :  { %s28514_s4 = scalar_lea.vmem %s89_s2, 1024  ;;  %p28519_p2 = scmp.lt.s32.totalorder %s89_s2, %s89_s2 }
  0x6f   :  { %p28515_p1 = scmp.ne.s32.totalorder %s89_s2, %s28514_s4  ;;  %p28520_p3 = scmp.lt.s32.totalorder %s28514_s4, %s28514_s4 }
  0x71   :  { %p28521_p4 = por %p28520_p3, %p28519_p2 }
  0x73   :  { %p28522_p5 = pnand %p28521_p4, %p28515_p1 }
  0x75   :  { %28525 = shalt.err (!%p28522_p5)
}
  0x76   :  { %94 = dma.hbm_to_vmem [thread:$0]  %s30274_s8, 1024, %s89_s2, [#allocation9], %s28607_s0, %s28607_s0, %s28608_s23  }
  0x77   :  { %s28526_s1 = scalar_lea.hbm %s30280_s14, 1024 }
  0x78   :  { %p28527_p6 = scmp.ne.s32.totalorder %s30280_s14, %s28526_s1  ;;  %p28530_p7 = scmp.lt.u32.totalorder %s28526_s1, %s30280_s14 }
  0x7a   :  { %p28532_p8 = pnand %p28530_p7, %p28527_p6 }
  0x7c   :  { %28535 = shalt.err (!%p28532_p8)
}
  0x7d   :  { %s28536_s18 = scalar_lea.vmem %s121_s29, 1024  ;;  %p28541_p10 = scmp.lt.s32.totalorder %s121_s29, %s121_s29 }
  0x7e   :  { %p28537_p9 = scmp.ne.s32.totalorder %s121_s29, %s28536_s18  ;;  %p28542_p11 = scmp.lt.s32.totalorder %s28536_s18, %s28536_s18 }
  0x80   :  { %p28543_p12 = por %p28542_p11, %p28541_p10 }
  0x82   :  { %p28544_p13 = pnand %p28543_p12, %p28537_p9 }
  0x84   :  { %28547 = shalt.err (!%p28544_p13)
}
  0x85   :  { %126 = dma.hbm_to_vmem [thread:$0]  %s30280_s14, 1024, %s121_s29, [#allocation12], %s28607_s0, %s28607_s0, %s28608_s23  }
  0x86   :  { %s28613_s28 = smov [#allocation14]   ;;  %s28548_s4 = scalar_lea.hbm %s30282_s16, 1024 }
  0x87   :  { %s134_s25 = sshll.u32 %s28613_s28, 4  ;;  %p28549_p0 = scmp.ne.s32.totalorder %s30282_s16, %s28548_s4  ;;  %s135_s25 = int_to_ptr.vmem [resolvable:$true] %s134_s25 }
  0x88   :  { %p28552_p1 = scmp.lt.u32.totalorder %s28548_s4, %s30282_s16 }
  0x8a   :  { %p28554_p2 = pnand %p28552_p1, %p28549_p0 }
  0x8c   :  { %28557 = shalt.err (!%p28554_p2)
}
  0x8d   :  { %s28558_s1 = scalar_lea.vmem %s135_s25, 1024  ;;  %p28563_p4 = scmp.lt.s32.totalorder %s135_s25, %s135_s25 }
  0x8e   :  { %p28559_p3 = scmp.ne.s32.totalorder %s135_s25, %s28558_s1  ;;  %p28564_p5 = scmp.lt.s32.totalorder %s28558_s1, %s28558_s1 }
  0x90   :  { %p28565_p6 = por %p28564_p5, %p28563_p4 }
  0x92   :  { %p28566_p7 = pnand %p28565_p6, %p28559_p3 }
  0x94   :  { %28569 = shalt.err (!%p28566_p7)
}
  0x95   :  { %140 = dma.hbm_to_vmem [thread:$0]  %s30282_s16, 1024, %s135_s25, [#allocation15], %s28607_s0, %s28607_s0, %s28608_s23  }
  0x96   :  { %28592 = dma.done.wait [#allocation3], 256  }
  0x97   :  { %28593 = vsyncadd [#allocation3], 4294967040 }
  0x98   :  { %28594 = dma.done.wait [#allocation6], 1152  }
  0x99   :  { %28595 = vsyncadd [#allocation6], 4294966144 }
  0x9a   :  { %28596 = dma.done.wait [#allocation9], 2048  }
  0x9b   :  { %28597 = vsyncadd [#allocation9], 4294965248 }
  0x9c   :  { %28598 = dma.done.wait [#allocation12], 2048  }
  0x9d   :  { %28599 = vsyncadd [#allocation12], 4294965248 }
  0x9e   :  { %28600 = dma.done.wait [#allocation15], 1024  }
  0x9f   :  { %28601 = vsyncadd [#allocation15], 4294966272  ;;  %v167_v0 = vld [vmem:[#allocation2] sm:$0xff]  ;;  %v169_v1 = vld [vmem:[#allocation5] sm:$0xff]  ;;  %vm174_vm0 = vcmask 261120   ;;  %s30295_s10 = sld [smem:[#allocation25_spill]] }
  0xa0   :  { %v168_v2 = vld [vmem:[#allocation2 + $0x8] sm:$0xff]  ;;  %v28832_v3 = vadd.f32 %v169_v1, %v167_v0  ;;  %v218_v17 = vld [vmem:[#allocation7] sm:$0xff]  ;;  %v219_v18 = vld [vmem:[#allocation7 + $0x8] sm:$0xff]  ;;  %vm28615_vm1 = vmmov 0   ;;  %vm1841_vm2 = vcmask 64512   ;;  %s28616_s19 = smov 120  }
  0xa1   :  { %v28834_v4 = vadd.f32 %v169_v1, %v168_v2  ;;  %v236_v19 = vand.u32 4294901760, %v218_v17  ;;  %v239_v20 = vand.u32 4294901760, %v219_v18  ;;  %v220_v22 = vld [vmem:[#allocation7 + $0x10] sm:$0xff]  ;;  %v221_v23 = vld [vmem:[#allocation7 + $0x18] sm:$0xff]  ;;  %v24505_v58 = vld [vmem:[%s30269_s3] ss:$0 sm:$0xff] }
  0xa2   :  { %v175_v5 = vsel %vm174_vm0, %v28832_v3, 0.0  ;;  %v242_v24 = vand.u32 4294901760, %v220_v22  ;;  %v245_v25 = vand.u32 4294901760, %v221_v23  ;;  %s28617_s4 = smov 112   ;;  %s28618_s27 = smov 104  }
  0xa3   :  { %176 = vadd.xlane.f32.xlu0 %v175_v5  ;;  %v178_v6 = vsel %vm174_vm0, %v28834_v4, 0.0  ;;  %v28848_v21 = vpack.c.bf16 %v239_v20, %v236_v19  ;;  %v326_v27 = vsub.f32 %v218_v17, %v236_v19  ;;  %v333_v28 = vsub.f32 %v219_v18, %v239_v20  ;;  %v763_v17 = vld [vmem:[#allocation8] sm:$0xff]  ;;  %v764_v18 = vld [vmem:[#allocation8 + $0x8] sm:$0xff]  ;;  %v1304_v20 = vld [vmem:[#allocation10 + $0x10] sm:$0xff]  ;;  %s28619_s24 = smov [#allocation16]  }
  0xa4   :  { %v28854_v26 = vpack.c.bf16 %v245_v25, %v242_v24  ;;  %v340_v34 = vsub.f32 %v220_v22, %v242_v24  ;;  %v347_v35 = vsub.f32 %v221_v23, %v245_v25  ;;  %v1305_v22 = vld [vmem:[#allocation10 + $0x18] sm:$0xff]  ;;  %v775_v24 = vand.u32 4294901760, %v763_v17  ;;  %s24488_s1 = sshll.u32 %s28619_s24, 4  ;;  %s24489_s1 = int_to_ptr.vmem [resolvable:$true] %s24488_s1 }
  0xa5   :  { %27307 = vmatprep.subr.bf16.mxu0 %v28848_v21  ;;  %27283 = vmatprep.subr.bf16.mxu1 %v28848_v21  ;;  %v327_v29 = vand.u32 4294901760, %v326_v27  ;;  %v334_v30 = vand.u32 4294901760, %v333_v28  ;;  %v28862_v47 = vpack.c.bf16 %v333_v28, %v326_v27  ;;  %v24504_v56 = vld [vmem:[%s30295_s10] ss:$0 sm:$0xff]  ;;  %v778_v25 = vand.u32 4294901760, %v764_v18  ;;  %s28570_s14 = scalar_lea.vmem %s24489_s1, 256  ;;  %p28575_p9 = scmp.lt.s32.totalorder %s24489_s1, %s24489_s1 }
  0xa6   :  { %27309 = vmatpush3.bf16.msra.mxu0 %v28848_v21  ;;  %27285 = vmatpush3.bf16.msra.mxu1 %v28848_v21  ;;  %v341_v38 = vand.u32 4294901760, %v340_v34  ;;  %v348_v39 = vand.u32 4294901760, %v347_v35  ;;  %v28864_v48 = vpack.c.bf16 %v347_v35, %v340_v34  ;;  %p28571_p8 = scmp.ne.s32.totalorder %s24489_s1, %s28570_s14  ;;  %p28576_p10 = scmp.lt.s32.totalorder %s28570_s14, %s28570_s14 }
  0xa7   :  { %179 = vadd.xlane.f32.xlu0 %v178_v6  ;;  %27311 = vmatprep.subr.bf16.mxu0 %v28854_v26  ;;  %v27314_v31 = vpack.c.bf16 %v334_v30, %v327_v29  ;;  %v328_v32 = vsub.f32 %v326_v27, %v327_v29  ;;  %v335_v33 = vsub.f32 %v333_v28, %v334_v30  ;;  %v1320_v27 = vand.u32 4294901760, %v1304_v20  ;;  %v765_v29 = vld [vmem:[#allocation8 + $0x10] sm:$0xff]  ;;  %v766_v30 = vld [vmem:[#allocation8 + $0x18] sm:$0xff] }
  0xa8   :  { %27287 = vmatprep.subr.bf16.mxu1 %v28854_v26  ;;  %v27318_v41 = vpack.c.bf16 %v348_v39, %v341_v38  ;;  %v342_v42 = vsub.f32 %v340_v34, %v341_v38  ;;  %v349_v43 = vsub.f32 %v347_v35, %v348_v39  ;;  %v1323_v28 = vand.u32 4294901760, %v1305_v22  ;;  %p28577_p11 = por %p28576_p10, %p28575_p9 }
  0xa9   :  { %v329_v36 = vand.u32 4294901760, %v328_v32  ;;  %v336_v37 = vand.u32 4294901760, %v335_v33  ;;  %v784_v34 = vand.u32 4294901760, %v766_v30  ;;  %v28910_v35 = vsub.f32 %v763_v17, %v775_v24 }
  0xaa   :  { %27313 = vmatpush3.bf16.msra.mxu0 %v28854_v26  ;;  %27289 = vmatpush3.bf16.msra.mxu1 %v28854_v26  ;;  %v343_v44 = vand.u32 4294901760, %v342_v42  ;;  %v350_v45 = vand.u32 4294901760, %v349_v43  ;;  %v28917_v39 = vsub.f32 %v1304_v20, %v1320_v27  ;;  %p28578_p12 = pnand %p28577_p11, %p28571_p8 }
  0xab   :  { %27315 = vmatprep.subr.bf16.mxu0 %v27314_v31  ;;  %v27290_v40 = vpack.c.bf16 %v336_v37, %v329_v36  ;;  %v28912_v36 = vsub.f32 %v764_v18, %v778_v25  ;;  %v866_v42 = vand.u32 4294901760, %v28910_v35 }
  0xac   :  { %v28860_v46 = vpack.c.bf16 %v350_v45, %v343_v44  ;;  %v28932_v45 = vsub.f32 %v766_v30, %v784_v34 }
  0xad   :  { %27291 = vmatprep.subr.bf16.mxu1 %v27290_v40  ;;  %v873_v43 = vand.u32 4294901760, %v28912_v36 }
 0x130   :  { %v177_v7 = vpop.xlane.xlu0 %176 }
 0x131   :  { %v182_v8 = vmul.f32 0.03125, %v177_v7 }
 0x133   :  { %v184_v9 = vsub.f32 %v28832_v3, %v182_v8 }
 0x134   :  { %v180_v10 = vpop.xlane.xlu0 %179 }
 0x135   :  { %v183_v11 = vmul.f32 0.03125, %v180_v10  ;;  %v186_v12 = vmul.f32 %v184_v9, %v184_v9 }
 0x137   :  { %v28842_v13 = vsub.f32 %v28834_v4, %v183_v11  ;;  %v188_v14 = vsel %vm174_vm0, %v186_v12, 0.0  ;;  %v1302_v11 = vld [vmem:[#allocation10] sm:$0xff]  ;;  %v1303_v12 = vld [vmem:[#allocation10 + $0x8] sm:$0xff] }
 0x138   :  { %189 = vadd.xlane.f32.xlu1 %v188_v14 }
 0x139   :  { %v187_v15 = vmul.f32 %v28842_v13, %v28842_v13 }
 0x13b   :  { %v191_v16 = vsel %vm174_vm0, %v187_v15, 0.0  ;;  %v1314_v15 = vand.u32 4294901760, %v1302_v11 }
 0x13c   :  { %192 = vadd.xlane.f32.xlu1 %v191_v16  ;;  %v1317_v16 = vand.u32 4294901760, %v1303_v12 }
 0x13d   :  { %v28903_v32 = vsub.f32 %v1302_v11, %v1314_v15 }
 0x13e   :  { %v28905_v33 = vsub.f32 %v1303_v12, %v1317_v16 }
 0x13f   :  { %v1405_v37 = vand.u32 4294901760, %v28903_v32 }
 0x140   :  { %v1412_v38 = vand.u32 4294901760, %v28905_v33 }
 0x1c5   :  { %v190_v49 = vpop.xlane.xlu1 %189 }
 0x1c6   :  { %v194_v50 = vmul.f32 0.03125, %v190_v49  ;;  %v1419_v49 = vand.u32 4294901760, %v28917_v39 }
 0x1c8   :  { %v196_v51 = vadd.f32 1e-05, %v194_v50 }
 0x1c9   :  { %v193_v52 = vpop.xlane.xlu1 %192 }
 0x1ca   :  { %28306 = vrsqrt.f32 %v196_v51  ;;  %v195_v53 = vmul.f32 0.03125, %v193_v52  ;;  %v28946_v51 = vpack.c.bf16 %v778_v25, %v775_v24  ;;  %v28948_v52 = vpack.c.bf16 %v1323_v28, %v1320_v27 }
 0x1cc   :  { %v197_v54 = vadd.f32 1e-05, %v195_v53  ;;  %v867_v53 = vsub.f32 %v28910_v35, %v866_v42 }
 0x1ce   :  { %28308 = vrsqrt.f32 %v197_v54  ;;  %v874_v54 = vsub.f32 %v28912_v36, %v873_v43 }
 0x1d4   :  { %v28307_v55 = vpop.eup %28306 }
 0x1d5   :  { %v200_v57 = vmul.f32 %v28307_v55, %v184_v9 }
 0x1d7   :  { %v208_v59 = vmul.f32 %v24504_v56, %v200_v57  ;;  %v1420_v57 = vsub.f32 %v28917_v39, %v1419_v49 }
 0x1d8   :  { %v28309_v60 = vpop.eup %28308 }
 0x1d9   :  { %v216_v61 = vadd.f32 %v24505_v58, %v208_v59  ;;  %v201_v62 = vmul.f32 %v28309_v60, %v28842_v13  ;;  %v868_v60 = vand.u32 4294901760, %v867_v53 }
 0x1db   :  { %v230_v63 = vsel %vm174_vm0, %v216_v61, 0  ;;  %v209_v0 = vmul.f32 %v24504_v56, %v201_v62  ;;  %v875_v61 = vand.u32 4294901760, %v874_v54 }
 0x1dc   :  { %v28874_v1 = vand.u32 4294901760, %v230_v63 }
 0x1dd   :  { %v217_v2 = vadd.f32 %v24505_v58, %v209_v0  ;;  %v1421_v0 = vand.u32 4294901760, %v1420_v57 }
 0x1de   :  { %v28877_v5 = vsub.f32 %v230_v63, %v28874_v1 }
 0x1df   :  { %v233_v6 = vsel %vm174_vm0, %v217_v2, 0 }
 0x1e0   :  { %v28880_v7 = vand.u32 4294901760, %v233_v6  ;;  %v28883_v8 = vand.u32 4294901760, %v28877_v5 }
 0x1e2   :  { %v28886_v9 = vsub.f32 %v233_v6, %v28880_v7  ;;  %25463 = vmatprep.mubr.f32.mxu0 %v28883_v8  ;;  %v307_v10 = vsub.f32 %v28877_v5, %v28883_v8  ;;  %v27338_v6 = vpack.c.bf16 %v875_v61, %v868_v60 }
 0x1e4   :  { %v28891_v13 = vand.u32 4294901760, %v307_v10  ;;  %v28894_v14 = vand.u32 4294901760, %v28886_v9 }
 0x1e6   :  { %25430 = vmatprep.mubr.f32.mxu1 %v28891_v13  ;;  %25464 = vmatmul.mubr.f32.vlgmr.msra.gmra.mrb[0].mxu0 %v28894_v14  ;;  %v317_v19 = vsub.f32 %v28886_v9, %v28894_v14 }
 0x1e7   :  { %27317 = vmatpush3.bf16.msra.mxu0 %v27314_v31  ;;  %25474 = vmatprep.mubr.f32.mxu0 %v28874_v1  ;;  %v781_v31 = vand.u32 4294901760, %v765_v29 }
 0x1e8   :  { %27319 = vmatprep.subr.bf16.mxu0 %v27318_v41  ;;  %v28901_v23 = vand.u32 4294901760, %v317_v19  ;;  %v27362_v19 = vpack.c.bf16 %v873_v43, %v866_v42 }
 0x1e9   :  { %v28930_v44 = vsub.f32 %v765_v29, %v781_v31  ;;  %v28970_v59 = vpack.c.bf16 %v784_v34, %v781_v31 }
 0x1ea   :  { %25431 = vmatmul.mubr.f32.vlgmr.msra.gmra.mrb[0].mxu1 %v28901_v23 }
 0x1eb   :  { %27293 = vmatpush3.bf16.msra.mxu1 %v27290_v40  ;;  %27321 = vmatpush3.bf16.msra.mxu0 %v27318_v41  ;;  %v28919_v40 = vsub.f32 %v1305_v22, %v1323_v28  ;;  %v28924_v41 = vpack.c.bf16 %v1317_v16, %v1314_v15  ;;  %v27346_v16 = vpack.c.bf16 %v28912_v36, %v28910_v35  ;;  %v24506_v22 = vld [vmem:[%s30271_s5] ss:$0 sm:$0xff] }
 0x1ec   :  { %25441 = vmatprep.mubr.f32.mxu1 %v28874_v1  ;;  %27295 = vmatprep.subr.bf16.mxu1 %v28860_v46  ;;  %v27350_v18 = vpack.c.bf16 %v28932_v45, %v28930_v44 }
 0x1ed   :  { %27323 = vmatprep.subr.bf16.mxu0 %v28848_v21  ;;  %v1426_v50 = vand.u32 4294901760, %v28919_v40  ;;  %v27398_v17 = vpack.c.bf16 %v28919_v40, %v28917_v39 }
 0x1ee   :  { %25475 = vmatmul.mubr.f32.vlgmr.msra.gmra.mrb[0].mxu0 %v28880_v7 }
 0x1ef   :  { %27297 = vmatpush3.bf16.msra.mxu1 %v28860_v46  ;;  %27325 = vmatpush3.bf16.msra.mxu0 %v28848_v21  ;;  %v1406_v21 = vsub.f32 %v28903_v32, %v1405_v37  ;;  %v1413_v46 = vsub.f32 %v28905_v33, %v1412_v38  ;;  %v1427_v58 = vsub.f32 %v28919_v40, %v1426_v50 }
 0x1f0   :  { %25485 = vmatprep.mubr.f32.mxu0 %v28874_v1  ;;  %27299 = vmatprep.subr.bf16.mxu1 %v28862_v47  ;;  %v27414_v20 = vpack.c.bf16 %v1426_v50, %v1419_v49 }
 0x1f1   :  { %27327 = vmatprep.subr.bf16.mxu0 %v28854_v26  ;;  %v1407_v55 = vand.u32 4294901760, %v1406_v21  ;;  %v1414_v56 = vand.u32 4294901760, %v1413_v46  ;;  %v1428_v2 = vand.u32 4294901760, %v1427_v58 }
 0x1f2   :  { %25442 = vmatmul.mubr.f32.vlgmr.msra.gmra.mrb[0].mxu1 %v28880_v7 }
 0x1f3   :  { %27301 = vmatpush3.bf16.msra.mxu1 %v28862_v47  ;;  %27329 = vmatpush3.bf16.msra.mxu0 %v28854_v26  ;;  %v880_v47 = vand.u32 4294901760, %v28930_v44  ;;  %v887_v26 = vand.u32 4294901760, %v28932_v45  ;;  %v27390_v12 = vpack.c.bf16 %v1428_v2, %v1421_v0 }
 0x1f4   :  { %25452 = vmatprep.mubr.f32.mxu1 %v28877_v5  ;;  %27303 = vmatprep.subr.bf16.mxu1 %v28864_v48 }
 0x1f5   :  { %27379 = vmatprep.subr.bf16.mxu0 %v28924_v41  ;;  %v881_v62 = vsub.f32 %v28930_v44, %v880_v47  ;;  %v888_v63 = vsub.f32 %v28932_v45, %v887_v26 }
 0x1f6   :  { %25486 = vmatmul.mubr.f32.vlgmr.msra.gmra.mrb[0].mxu0 %v28880_v7 }
 0x1f7   :  { %27305 = vmatpush3.bf16.msra.mxu1 %v28864_v48  ;;  %27381 = vmatpush3.bf16.msra.mxu0 %v28924_v41  ;;  %v27386_v48 = vpack.c.bf16 %v1414_v56, %v1407_v55  ;;  %v882_v10 = vand.u32 4294901760, %v881_v62  ;;  %v889_v11 = vand.u32 4294901760, %v888_v63 }
 0x1f8   :  { %25562 = vmatprep.mubr.f32.mxu0 %v28891_v13  ;;  %27331 = vmatprep.subr.bf16.mxu1 %v28946_v51 }
 0x1f9   :  { %27383 = vmatprep.subr.bf16.mxu0 %v28948_v52  ;;  %v27342_v15 = vpack.c.bf16 %v889_v11, %v882_v10 }
 0x1fa   :  { %25453 = vmatmul.mubr.f32.vlgmr.msra.gmra.mrb[0].mxu1 %v28886_v9 }
 0x1fb   :  { %27333 = vmatpush3.bf16.msra.mxu1 %v28946_v51  ;;  %27385 = vmatpush3.bf16.msra.mxu0 %v28948_v52 }
 0x1fc   :  { %25496 = vmatprep.mubr.f32.mxu1 %v28891_v13  ;;  %27335 = vmatprep.subr.bf16.mxu1 %v28970_v59  ;;  %v27394_v13 = vpack.c.bf16 %v28905_v33, %v28903_v32  ;;  %v24508_v32 = vld [vmem:[%s30275_s9] ss:$0 sm:$0xff] }
 0x1fd   :  { %27387 = vmatprep.subr.bf16.mxu0 %v27386_v48 }
 0x1fe   :  { %25563 = vmatmul.mubr.f32.vlgmr.msra.gmra.mrb[2].mxu0 %v28901_v23 }
 0x1ff   :  { %27337 = vmatpush3.bf16.msra.mxu1 %v28970_v59  ;;  %27389 = vmatpush3.bf16.msra.mxu0 %v27386_v48 }
 0x200   :  { %25573 = vmatprep.mubr.f32.mxu0 %v28874_v1  ;;  %27339 = vmatprep.subr.bf16.mxu1 %v27338_v6 }
 0x201   :  { %27391 = vmatprep.subr.bf16.mxu0 %v27390_v12 }
 0x202   :  { %25497 = vmatmul.mubr.f32.vlgmr.msra.gmra.mrb[2].mxu1 %v28901_v23 }
 0x203   :  { %27341 = vmatpush3.bf16.msra.mxu1 %v27338_v6  ;;  %25507 = vmatprep.mubr.f32.mxu1 %v28874_v1 }
 0x204   :  { %27393 = vmatpush3.bf16.msra.mxu0 %v27390_v12  ;;  %27343 = vmatprep.subr.bf16.mxu1 %v27342_v15 }
 0x205   :  { %27395 = vmatprep.subr.bf16.mxu0 %v27394_v13 }
 0x207   :  { %25574 = vmatmul.mubr.f32.vlgmr.msra.gmra.mrb[2].mxu0 %v28880_v7  ;;  %27345 = vmatpush3.bf16.msra.mxu1 %v27342_v15 }
 0x208   :  { %27397 = vmatpush3.bf16.msra.mxu0 %v27394_v13  ;;  %25584 = vmatprep.mubr.f32.mxu0 %v28877_v5 }
 0x209   :  { %27347 = vmatprep.subr.bf16.mxu1 %v27346_v16  ;;  %27399 = vmatprep.subr.bf16.mxu0 %v27398_v17 }
 0x20a   :  { %25508 = vmatmul.mubr.f32.vlgmr.msra.gmra.mrb[2].mxu1 %v28880_v7 }
 0x20b   :  { %27349 = vmatpush3.bf16.msra.mxu1 %v27346_v16  ;;  %25518 = vmatprep.mubr.f32.mxu1 %v28877_v5  ;;  %v27410_v5 = vpack.c.bf16 %v1412_v38, %v1405_v37  ;;  %v24507_v37 = vld [vmem:[%s30273_s7] ss:$0 sm:$0xff] }
 0x20c   :  { %27401 = vmatpush3.bf16.msra.mxu0 %v27398_v17  ;;  %27351 = vmatprep.subr.bf16.mxu1 %v27350_v18 }
 0x20d   :  { %27403 = vmatprep.subr.bf16.mxu0 %v28924_v41 }
 0x20f   :  { %25585 = vmatmul.mubr.f32.vlgmr.msra.gmra.mrb[2].mxu0 %v28886_v9  ;;  %27353 = vmatpush3.bf16.msra.mxu1 %v27350_v18 }
 0x210   :  { %27405 = vmatpush3.bf16.msra.mxu0 %v28924_v41  ;;  %25595 = vmatprep.mubr.f32.mxu0 %v28883_v8 }
 0x211   :  { %27355 = vmatprep.subr.bf16.mxu1 %v28946_v51  ;;  %27407 = vmatprep.subr.bf16.mxu0 %v28948_v52 }
 0x212   :  { %25519 = vmatmul.mubr.f32.vlgmr.msra.gmra.mrb[2].mxu1 %v28886_v9  ;;  %v28614_v9 = vmov 0.0  }
 0x213   :  { %27357 = vmatpush3.bf16.msra.mxu1 %v28946_v51  ;;  %25529 = vmatprep.mubr.f32.mxu1 %v28883_v8  ;;  %v27366_v8 = vpack.c.bf16 %v887_v26, %v880_v47 }
 0x214   :  { %27409 = vmatpush3.bf16.msra.mxu0 %v28948_v52  ;;  %27359 = vmatprep.subr.bf16.mxu1 %v28970_v59 }
 0x215   :  { %27411 = vmatprep.subr.bf16.mxu0 %v27410_v5 }
 0x217   :  { %25596 = vmatmul.mubr.f32.vlgmr.msra.gmra.mrb[2].mxu0 %v28894_v14  ;;  %27361 = vmatpush3.bf16.msra.mxu1 %v28970_v59 }
 0x218   :  { %27413 = vmatpush3.bf16.msra.mxu0 %v27410_v5  ;;  %25606 = vmatprep.mubr.f32.mxu0 %v28874_v1 }
 0x219   :  { %27363 = vmatprep.subr.bf16.mxu1 %v27362_v19  ;;  %27415 = vmatprep.subr.bf16.mxu0 %v27414_v20 }
 0x21a   :  { %25530 = vmatmul.mubr.f32.vlgmr.msra.gmra.mrb[2].mxu1 %v28894_v14 }
 0x21b   :  { %27365 = vmatpush3.bf16.msra.mxu1 %v27362_v19  ;;  %25540 = vmatprep.mubr.f32.mxu1 %v28874_v1 }
 0x21c   :  { %27417 = vmatpush3.bf16.msra.mxu0 %v27414_v20  ;;  %27367 = vmatprep.subr.bf16.mxu1 %v27366_v8 }
 0x21d   :  { %27419 = vmatprep.subr.bf16.mxu0 %v28924_v41 }
 0x21f   :  { %25607 = vmatmul.mubr.f32.vlgmr.msra.gmra.mrb[2].mxu0 %v28880_v7  ;;  %27369 = vmatpush3.bf16.msra.mxu1 %v27366_v8 }
 0x220   :  { %27421 = vmatpush3.bf16.msra.mxu0 %v28924_v41  ;;  %25617 = vmatprep.mubr.f32.mxu0 %v28874_v1 }
 0x221   :  { %27371 = vmatprep.subr.bf16.mxu1 %v28946_v51  ;;  %27423 = vmatprep.subr.bf16.mxu0 %v28948_v52 }
 0x222   :  { %25541 = vmatmul.mubr.f32.vlgmr.msra.gmra.mrb[2].mxu1 %v28880_v7 }
 0x223   :  { %27373 = vmatpush3.bf16.msra.mxu1 %v28946_v51  ;;  %25551 = vmatprep.mubr.f32.mxu1 %v28874_v1 }
 0x224   :  { %27425 = vmatpush3.bf16.msra.mxu0 %v28948_v52  ;;  %27375 = vmatprep.subr.bf16.mxu1 %v28970_v59 }
 0x225   :  { %25680 = vmatprep.subr.mxu0 %v28614_v9 }
 0x227   :  { %25618 = vmatmul.mubr.f32.vlgmr.msra.gmra.mrb[2].mxu0 %v28880_v7  ;;  %27377 = vmatpush3.bf16.msra.mxu1 %v28970_v59 }
 0x228   :  { %25620 = vmatprep.subr.mxu1 %v28614_v9  ;;  %25682 = vmatprep.mubr.msk.f32.mxu0 %vm28615_vm1, %v28614_v9 }
 0x22a   :  { %25552 = vmatmul.mubr.f32.vlgmr.msra.gmra.mrb[2].mxu1 %v28880_v7 }
 0x22b   :  { %25622 = vmatprep.mubr.msk.f32.mxu1 %vm28615_vm1, %v28614_v9 }
 0x2c9   :  { %v25487_v1 = vpop.f32.mrb[0].mxu0 }
 0x2ca   :  { %v753_v14 = vpop.f32.mrb[1].mxu0 }
 0x2cd   :  { %v25454_v23 = vpop.f32.mrb[0].mxu1 }
 0x2ce   :  { %v27762_v7 = vadd.f32 %v25454_v23, %v24506_v22  ;;  %v497_v24 = vpop.f32.mrb[1].mxu1 }
 0x2cf   :  { %v27764_v25 = vadd.f32 %v24506_v22, %v497_v24 }
 0x2d0   :  { %v29058_v27 = vadd.f32 %v27762_v7, %v25487_v1 }
 0x2d1   :  { %v29060_v28 = vadd.f32 %v27764_v25, %v753_v14 }
 0x2d2   :  { %v2295_v53 = vsel %vm1841_vm2, %v29058_v27, 0 }
 0x2d3   :  { %v1843_v29 = vsel %vm1841_vm2, %v29060_v28, 0  ;;  %v2366_v47 = vand.u32 4294901760, %v2295_v53 }
 0x2d4   :  { %v1914_v30 = vand.u32 4294901760, %v1843_v29 }
 0x2d5   :  { %v2367_v55 = vsub.f32 %v2295_v53, %v2366_v47 }
 0x2d6   :  { %v1915_v33 = vsub.f32 %v1843_v29, %v1914_v30 }
 0x2d7   :  { %v2368_v57 = vand.u32 4294901760, %v2367_v55 }
 0x2d8   :  { %v1916_v39 = vand.u32 4294901760, %v1915_v33 }
 0x2d9   :  { %v2369_v59 = vsub.f32 %v2367_v55, %v2368_v57 }
 0x2da   :  { %v1917_v44 = vsub.f32 %v1915_v33, %v1916_v39 }
 0x2db   :  { %v2370_v61 = vand.u32 4294901760, %v2369_v59 }
 0x2dc   :  { %v1918_v46 = vand.u32 4294901760, %v1917_v44 }
 0x2fa   :  { %v25619_v31 = vpop.f32.mrb[2].mxu0 }
 0x2fb   :  { %v29067_v34 = vadd.f32 %v25619_v31, %v24508_v32  ;;  %v1831_v35 = vpop.f32.mrb[3].mxu0 }
 0x2fc   :  { %v29069_v36 = vadd.f32 %v24508_v32, %v1831_v35 }
 0x2fd   :  { %v25553_v38 = vpop.f32.mrb[2].mxu1  ;;  %v29124_v63 = vand.u32 4294901760, %v29067_v34 }
 0x2fe   :  { %v1292_v40 = vpop.f32.mrb[3].mxu1  ;;  %v29075_v41 = vand.u32 4294901760, %v29069_v36  ;;  %v29093_v52 = vadd.f32 %v25553_v38, %v24507_v37 }
 0x2ff   :  { %v29077_v42 = vadd.f32 %v24507_v37, %v1292_v40  ;;  %v3298_v20 = vsub.f32 %v29067_v34, %v29124_v63 }
 0x300   :  { %25681 = vmatpush3.msra.mxu0 %v29075_v41  ;;  %v2298_v54 = vsel %vm1841_vm2, %v29093_v52, 0 }
 0x301   :  { %v1846_v43 = vsel %vm1841_vm2, %v29077_v42, 0  ;;  %25685 = vmatprep.subr.mxu0 %v28614_v9  ;;  %v2301_v26 = vand.u32 4294901760, %v2298_v54  ;;  %v3299_v14 = vand.u32 4294901760, %v3298_v20 }
 0x302   :  { %v1849_v45 = vand.u32 4294901760, %v1846_v43 }
 0x303   :  { %v2378_v56 = vsub.f32 %v2298_v54, %v2301_v26  ;;  %v3300_v7 = vsub.f32 %v3298_v20, %v3299_v14 }
 0x304   :  { %25621 = vmatpush3.xpose.msra.mxu1 %v1849_v45  ;;  %v1926_v21 = vsub.f32 %v1846_v43, %v1849_v45 }
 0x305   :  { %25625 = vmatprep.subr.mxu1 %v28614_v9  ;;  %v2379_v58 = vand.u32 4294901760, %v2378_v56  ;;  %v3301_v29 = vand.u32 4294901760, %v3300_v7 }
 0x306   :  { %v1927_v49 = vand.u32 4294901760, %v1926_v21 }
 0x307   :  { %25623 = vmatmul.mubr.f32.vlgmr.msra.gmra.mrb[4].mxu1 %v1918_v46  ;;  %v2380_v60 = vsub.f32 %v2378_v56, %v2379_v58 }
 0x308   :  { %v1928_v50 = vsub.f32 %v1926_v21, %v1927_v49  ;;  %25627 = vmatprep.mubr.msk.f32.mxu1 %vm28615_vm1, %v28614_v9 }
 0x309   :  { %v2381_v62 = vand.u32 4294901760, %v2380_v60 }
 0x30a   :  { %v1929_v51 = vand.u32 4294901760, %v1928_v50 }
 0x30c   :  { %25626 = vmatpush3.xpose.msra.mxu1 %v1929_v51 }
 0x30d   :  { %25630 = vmatprep.subr.mxu1 %v28614_v9 }
 0x30f   :  { %25628 = vmatmul.mubr.f32.vlgmr.msra.gmra.mrb[4].mxu1 %v1914_v30 }
 0x310   :  { %25631 = vmatpush3.xpose.msra.mxu1 %v1926_v21  ;;  %25632 = vmatprep.mubr.msk.f32.mxu1 %vm28615_vm1, %v28614_v9 }
 0x311   :  { %25635 = vmatprep.subr.mxu1 %v28614_v9 }
 0x317   :  { %25633 = vmatmul.mubr.f32.vlgmr.msra.gmra.mrb[4].mxu1 %v1915_v33 }
 0x318   :  { %25636 = vmatpush3.xpose.msra.mxu1 %v1849_v45  ;;  %25637 = vmatprep.mubr.msk.f32.mxu1 %vm28615_vm1, %v28614_v9 }
 0x319   :  { %25640 = vmatprep.subr.mxu1 %v28614_v9 }
 0x31f   :  { %25638 = vmatmul.mubr.f32.vlgmr.msra.gmra.mrb[4].mxu1 %v1916_v39 }
 0x320   :  { %25641 = vmatpush3.xpose.msra.mxu1 %v1927_v49  ;;  %25642 = vmatprep.mubr.msk.f32.mxu1 %vm28615_vm1, %v28614_v9 }
 0x321   :  { %25645 = vmatprep.subr.mxu1 %v28614_v9 }
 0x327   :  { %25643 = vmatmul.mubr.f32.vlgmr.msra.gmra.mrb[4].mxu1 %v1914_v30 }
 0x328   :  { %25646 = vmatpush3.xpose.msra.mxu1 %v1849_v45  ;;  %25647 = vmatprep.mubr.msk.f32.mxu1 %vm28615_vm1, %v28614_v9 }
 0x329   :  { %25650 = vmatprep.subr.mxu1 %v28614_v9 }
 0x32f   :  { %25648 = vmatmul.mubr.f32.vlgmr.msra.gmra.mrb[4].mxu1 %v1914_v30 }
 0x330   :  { %25651 = vmatpush3.xpose.msra.mxu1 %v2301_v26  ;;  %25652 = vmatprep.mubr.msk.f32.mxu1 %vm28615_vm1, %v28614_v9 }
 0x331   :  { %25655 = vmatprep.subr.mxu1 %v28614_v9 }
 0x333   :  { %25653 = vmatmul.mubr.f32.vlgmr.msra.gmra.mrb[6].mxu1 %v2370_v61 }
 0x334   :  { %25656 = vmatpush3.xpose.msra.mxu1 %v2381_v62  ;;  %25657 = vmatprep.mubr.msk.f32.mxu1 %vm28615_vm1, %v28614_v9 }
 0x335   :  { %25660 = vmatprep.subr.mxu1 %v28614_v9 }
 0x33b   :  { %25658 = vmatmul.mubr.f32.vlgmr.msra.gmra.mrb[6].mxu1 %v2366_v47 }
 0x33c   :  { %25661 = vmatpush3.xpose.msra.mxu1 %v2378_v56  ;;  %25662 = vmatprep.mubr.msk.f32.mxu1 %vm28615_vm1, %v28614_v9  ;;  %v2849_v56 = vsub.f32 %v29069_v36, %v29075_v41 }
 0x33d   :  { %25665 = vmatprep.subr.mxu1 %v28614_v9 }
 0x33e   :  { %v2850_v59 = vand.u32 4294901760, %v2849_v56 }
 0x340   :  { %v2851_v62 = vsub.f32 %v2849_v56, %v2850_v59 }
 0x343   :  { %25663 = vmatmul.mubr.f32.vlgmr.msra.gmra.mrb[6].mxu1 %v2367_v55 }
 0x344   :  { %25666 = vmatpush3.xpose.msra.mxu1 %v2301_v26  ;;  %25667 = vmatprep.mubr.msk.f32.mxu1 %vm28615_vm1, %v28614_v9 }
 0x345   :  { %25670 = vmatprep.subr.mxu1 %v28614_v9 }
 0x34b   :  { %25668 = vmatmul.mubr.f32.vlgmr.msra.gmra.mrb[6].mxu1 %v2368_v57 }
 0x34c   :  { %25671 = vmatpush3.xpose.msra.mxu1 %v2379_v58  ;;  %25672 = vmatprep.mubr.msk.f32.mxu1 %vm28615_vm1, %v28614_v9 }
 0x34d   :  { %25675 = vmatprep.subr.mxu1 %v28614_v9 }
 0x353   :  { %25673 = vmatmul.mubr.f32.vlgmr.msra.gmra.mrb[6].mxu1 %v2366_v47 }
 0x354   :  { %25676 = vmatpush3.xpose.msra.mxu1 %v2301_v26  ;;  %25677 = vmatprep.mubr.msk.f32.mxu1 %vm28615_vm1, %v28614_v9 }
 0x355   :  { %25710 = vmatprep.subr.mxu1 %v28614_v9 }
 0x35b   :  { %25678 = vmatmul.mubr.f32.vlgmr.msra.gmra.mrb[6].mxu1 %v2366_v47 }
 0x35c   :  { %25711 = vmatpush3.msra.mxu1 %v29124_v63  ;;  %25712 = vmatprep.mubr.msk.f32.mxu1 %vm28615_vm1, %v28614_v9 }
 0x35d   :  { %25715 = vmatprep.subr.mxu1 %v28614_v9 }
 0x402   :  { %v2290_v48 = vpop.f32.mrb[4].mxu1 }
 0x403   :  { %v25649_v0 = vpop.f32.mrb[5].mxu1  ;;  %v2746_v17 = vsel %vm1841_vm2, %v2290_v48, -inf }
 0x404   :  { %v2852_v0 = vand.u32 4294901760, %v2851_v62 }
 0x42e   :  { %v2742_v2 = vpop.f32.mrb[6].mxu1 }
 0x42f   :  { %v25679_v6 = vpop.f32.mrb[7].mxu1  ;;  %v2749_v10 = vsel %vm1841_vm2, %v2742_v2, -inf }
 0x430   :  { %2750 = vmax.xlane.f32.xlu0 %v2749_v10 }
 0x446   :  { %4121 = vrot.lane.b32.xlu0 %v29058_v27, %s28616_s19 }
 0x4bd   :  { %v2751_v11 = vpop.xlane.xlu0 %2750 }
 0x4be   :  { %v2753_v12 = vsub.f32 %v2742_v2, %v2751_v11 }
 0x4c0   :  { %v2756_v15 = vmul.f32 1.442695, %v2753_v12 }
 0x4c1   :  { %v4122_v30 = vpop.permute.xlu0 %4121 }
 0x4c2   :  { %28310 = vpow2.f32 %v2756_v15  ;;  %v4125_v33 = vsel %vm1841_vm2, %v4122_v30, 0 }
 0x4c3   :  { %v4195_v35 = vand.u32 4294901760, %v4125_v33 }
 0x4c5   :  { %v4196_v40 = vsub.f32 %v4125_v33, %v4195_v35 }
 0x4c7   :  { %v4197_v45 = vand.u32 4294901760, %v4196_v40 }
 0x4c9   :  { %v4198_v46 = vsub.f32 %v4196_v40, %v4197_v45 }
 0x4cb   :  { %v4199_v50 = vand.u32 4294901760, %v4198_v46 }
 0x4cc   :  { %v28311_v13 = vpop.eup %28310 }
 0x4cd   :  { %v2761_v16 = vsel %vm1841_vm2, %v28311_v13, 0.0 }
 0x4ce   :  { %2762 = vadd.xlane.f32.xlu1 %v2761_v16 }
 0x4df   :  { %4123 = vrot.lane.b32.xlu1 %v29093_v52, %s28616_s19 }
 0x503   :  { %2747 = vmax.xlane.f32.xlu1 %v2746_v17 }
 0x514   :  { %3669 = vrot.lane.b32.xlu1 %v29077_v42, %s28616_s19 }
 0x55b   :  { %v2763_v18 = vpop.xlane.xlu1 %2762 }
 0x55c   :  { %28312 = vrcp.f32 %v2763_v18 }
 0x55f   :  { %v4124_v32 = vpop.permute.xlu1 %4123 }
 0x560   :  { %v4127_v31 = vsel %vm1841_vm2, %v4124_v32, 0 }
 0x561   :  { %v4130_v37 = vand.u32 4294901760, %v4127_v31 }
 0x563   :  { %v4207_v43 = vsub.f32 %v4127_v31, %v4130_v37 }
 0x565   :  { %v4208_v21 = vand.u32 4294901760, %v4207_v43 }
 0x566   :  { %v28313_v5 = vpop.eup %28312 }
 0x567   :  { %v2767_v19 = vmul.f32 %v28313_v5, %v28311_v13  ;;  %v4209_v49 = vsub.f32 %v4207_v43, %v4208_v21 }
 0x569   :  { %v3218_v8 = vsel %vm1841_vm2, %v2767_v19, 0  ;;  %v4210_v53 = vand.u32 4294901760, %v4209_v49 }
 0x56a   :  { %v3286_v1 = vand.u32 4294901760, %v3218_v8 }
 0x56c   :  { %v3287_v22 = vsub.f32 %v3218_v8, %v3286_v1 }
 0x56e   :  { %v3288_v23 = vand.u32 4294901760, %v3287_v22 }
 0x570   :  { %v3289_v24 = vsub.f32 %v3287_v22, %v3288_v23 }
 0x572   :  { %v3290_v25 = vand.u32 4294901760, %v3289_v24 }
 0x574   :  { %25713 = vmatmul.mubr.f32.vlgmr.msra.gmra.mrb[8].mxu1 %v3290_v25 }
 0x575   :  { %25716 = vmatpush3.msra.mxu1 %v3301_v29  ;;  %25717 = vmatprep.mubr.msk.f32.mxu1 %vm28615_vm1, %v28614_v9 }
 0x576   :  { %25720 = vmatprep.subr.mxu1 %v28614_v9 }
 0x57c   :  { %25718 = vmatmul.mubr.f32.vlgmr.msra.gmra.mrb[8].mxu1 %v3286_v1 }
 0x57d   :  { %25721 = vmatpush3.msra.mxu1 %v3298_v20  ;;  %25722 = vmatprep.mubr.msk.f32.mxu1 %vm28615_vm1, %v28614_v9 }
 0x57e   :  { %25725 = vmatprep.subr.mxu1 %v28614_v9 }
 0x584   :  { %25723 = vmatmul.mubr.f32.vlgmr.msra.gmra.mrb[8].mxu1 %v3287_v22 }
 0x585   :  { %25726 = vmatpush3.msra.mxu1 %v29124_v63  ;;  %25727 = vmatprep.mubr.msk.f32.mxu1 %vm28615_vm1, %v28614_v9 }
 0x586   :  { %25730 = vmatprep.subr.mxu1 %v28614_v9 }
 0x58c   :  { %25728 = vmatmul.mubr.f32.vlgmr.msra.gmra.mrb[8].mxu1 %v3288_v23 }
 0x58d   :  { %25731 = vmatpush3.msra.mxu1 %v3299_v14  ;;  %25732 = vmatprep.mubr.msk.f32.mxu1 %vm28615_vm1, %v28614_v9 }
 0x58e   :  { %25735 = vmatprep.subr.mxu1 %v28614_v9 }
 0x590   :  { %v2748_v38 = vpop.xlane.xlu1 %2747 }
 0x591   :  { %v2752_v39 = vsub.f32 %v2290_v48, %v2748_v38 }
 0x593   :  { %v2754_v44 = vmul.f32 1.442695, %v2752_v39 }
 0x594   :  { %25733 = vmatmul.mubr.f32.vlgmr.msra.gmra.mrb[8].mxu1 %v3286_v1  ;;  %v3670_v6 = vpop.permute.xlu1 %3669 }
 0x595   :  { %28314 = vpow2.f32 %v2754_v44  ;;  %25736 = vmatpush3.msra.mxu1 %v29124_v63  ;;  %25737 = vmatprep.mubr.msk.f32.mxu1 %vm28615_vm1, %v28614_v9  ;;  %v3673_v11 = vsel %vm1841_vm2, %v3670_v6, 0 }
 0x596   :  { %25770 = vmatprep.subr.mxu1 %v28614_v9  ;;  %v3676_v15 = vand.u32 4294901760, %v3673_v11 }
 0x598   :  { %v3753_v16 = vsub.f32 %v3673_v11, %v3676_v15 }
 0x59a   :  { %v3754_v18 = vand.u32 4294901760, %v3753_v16 }
 0x59c   :  { %25738 = vmatmul.mubr.f32.vlgmr.msra.gmra.mrb[8].mxu1 %v3286_v1  ;;  %v3755_v19 = vsub.f32 %v3753_v16, %v3754_v18 }
 0x59d   :  { %25771 = vmatpush3.xpose.msra.mxu1 %v4130_v37  ;;  %25772 = vmatprep.mubr.msk.f32.mxu1 %vm28615_vm1, %v28614_v9 }
 0x59e   :  { %25775 = vmatprep.subr.mxu1 %v28614_v9 }
 0x59f   :  { %v28315_v51 = vpop.eup %28314 }
 0x5a0   :  { %25773 = vmatmul.mubr.f32.vlgmr.msra.gmra.mrb[10].mxu1 %v4199_v50  ;;  %v2758_v54 = vsel %vm1841_vm2, %v28315_v51, 0.0 }
 0x5a1   :  { %25776 = vmatpush3.xpose.msra.mxu1 %v4210_v53  ;;  %2759 = vadd.xlane.f32.xlu0 %v2758_v54 }
 0x5a2   :  { %25777 = vmatprep.mubr.msk.f32.mxu1 %vm28615_vm1, %v28614_v9  ;;  %25780 = vmatprep.subr.mxu1 %v28614_v9 }
 0x5a8   :  { %25778 = vmatmul.mubr.f32.vlgmr.msra.gmra.mrb[10].mxu1 %v4195_v35 }
 0x5a9   :  { %25781 = vmatpush3.xpose.msra.mxu1 %v4207_v43  ;;  %25782 = vmatprep.mubr.msk.f32.mxu1 %vm28615_vm1, %v28614_v9 }
 0x5aa   :  { %25785 = vmatprep.subr.mxu1 %v28614_v9 }
 0x5b0   :  { %25783 = vmatmul.mubr.f32.vlgmr.msra.gmra.mrb[10].mxu1 %v4196_v40 }
 0x5b1   :  { %25786 = vmatpush3.xpose.msra.mxu1 %v4130_v37  ;;  %25787 = vmatprep.mubr.msk.f32.mxu1 %vm28615_vm1, %v28614_v9 }
 0x5b2   :  { %25790 = vmatprep.subr.mxu1 %v28614_v9 }
 0x5b7   :  { %3667 = vrot.lane.b32.xlu0 %v29060_v28, %s28616_s19 }
 0x5b8   :  { %25788 = vmatmul.mubr.f32.vlgmr.msra.gmra.mrb[10].mxu1 %v4197_v45 }
 0x5b9   :  { %25791 = vmatpush3.xpose.msra.mxu1 %v4208_v21  ;;  %25792 = vmatprep.mubr.msk.f32.mxu1 %vm28615_vm1, %v28614_v9 }
 0x5ba   :  { %25795 = vmatprep.subr.mxu1 %v28614_v9 }
 0x5c0   :  { %25793 = vmatmul.mubr.f32.vlgmr.msra.gmra.mrb[10].mxu1 %v4195_v35 }
 0x5c1   :  { %25796 = vmatpush3.xpose.msra.mxu1 %v4130_v37  ;;  %25797 = vmatprep.mubr.msk.f32.mxu1 %vm28615_vm1, %v28614_v9 }
 0x5c2   :  { %25830 = vmatprep.subr.mxu1 %v28614_v9 }
 0x5c8   :  { %25798 = vmatmul.mubr.f32.vlgmr.msra.gmra.mrb[10].mxu1 %v4195_v35 }
 0x5c9   :  { %25832 = vmatprep.mubr.msk.f32.mxu1 %vm28615_vm1, %v28614_v9 }
 0x62e   :  { %v2760_v47 = vpop.xlane.xlu0 %2759 }
 0x62f   :  { %28316 = vrcp.f32 %v2760_v47 }
 0x632   :  { %v3668_v2 = vpop.permute.xlu0 %3667 }
 0x633   :  { %v3671_v10 = vsel %vm1841_vm2, %v3668_v2, 0 }
 0x634   :  { %v3741_v12 = vand.u32 4294901760, %v3671_v10 }
 0x636   :  { %v3742_v13 = vsub.f32 %v3671_v10, %v3741_v12 }
 0x638   :  { %v3743_v17 = vand.u32 4294901760, %v3742_v13 }
 0x639   :  { %v28317_v26 = vpop.eup %28316 }
 0x63a   :  { %v2765_v55 = vmul.f32 %v28317_v26, %v28315_v51  ;;  %v3744_v5 = vsub.f32 %v3742_v13, %v3743_v17 }
 0x63c   :  { %v2769_v57 = vsel %vm1841_vm2, %v2765_v55, 0  ;;  %v3745_v1 = vand.u32 4294901760, %v3744_v5 }
 0x63d   :  { %v2837_v58 = vand.u32 4294901760, %v2769_v57 }
 0x63f   :  { %v2838_v60 = vsub.f32 %v2769_v57, %v2837_v58 }
 0x641   :  { %v2839_v61 = vand.u32 4294901760, %v2838_v60 }
 0x643   :  { %v2840_v63 = vsub.f32 %v2838_v60, %v2839_v61 }
 0x645   :  { %v2841_v48 = vand.u32 4294901760, %v2840_v63 }
 0x647   :  { %25683 = vmatmul.mubr.f32.vlgmr.msra.gmra.mrb[4].mxu0 %v2841_v48 }
 0x648   :  { %25686 = vmatpush3.msra.mxu0 %v2852_v0  ;;  %25687 = vmatprep.mubr.msk.f32.mxu0 %vm28615_vm1, %v28614_v9 }
 0x649   :  { %25690 = vmatprep.subr.mxu0 %v28614_v9 }
 0x64f   :  { %25688 = vmatmul.mubr.f32.vlgmr.msra.gmra.mrb[4].mxu0 %v2837_v58 }
 0x650   :  { %25691 = vmatpush3.msra.mxu0 %v2849_v56  ;;  %25692 = vmatprep.mubr.msk.f32.mxu0 %vm28615_vm1, %v28614_v9 }
 0x651   :  { %25695 = vmatprep.subr.mxu0 %v28614_v9 }
 0x657   :  { %25693 = vmatmul.mubr.f32.vlgmr.msra.gmra.mrb[4].mxu0 %v2838_v60 }
 0x658   :  { %25696 = vmatpush3.msra.mxu0 %v29075_v41  ;;  %25697 = vmatprep.mubr.msk.f32.mxu0 %vm28615_vm1, %v28614_v9 }
 0x659   :  { %25700 = vmatprep.subr.mxu0 %v28614_v9 }
 0x65f   :  { %25698 = vmatmul.mubr.f32.vlgmr.msra.gmra.mrb[4].mxu0 %v2839_v61 }
 0x660   :  { %25701 = vmatpush3.msra.mxu0 %v2850_v59  ;;  %25702 = vmatprep.mubr.msk.f32.mxu0 %vm28615_vm1, %v28614_v9 }
 0x661   :  { %25705 = vmatprep.subr.mxu0 %v28614_v9 }
 0x667   :  { %25703 = vmatmul.mubr.f32.vlgmr.msra.gmra.mrb[4].mxu0 %v2837_v58 }
 0x668   :  { %25706 = vmatpush3.msra.mxu0 %v29075_v41  ;;  %25707 = vmatprep.mubr.msk.f32.mxu0 %vm28615_vm1, %v28614_v9  ;;  %v3756_v41 = vand.u32 4294901760, %v3755_v19 }
 0x669   :  { %25740 = vmatprep.subr.mxu0 %v28614_v9 }
 0x66f   :  { %25708 = vmatmul.mubr.f32.vlgmr.msra.gmra.mrb[4].mxu0 %v2837_v58  ;;  %v29206_v20 = vpop.f32.mrb[8].mxu1 }
 0x670   :  { %25741 = vmatpush3.xpose.msra.mxu0 %v3676_v15  ;;  %v25739_v8 = vpop.f32.mrb[9].mxu1  ;;  %25742 = vmatprep.mubr.msk.f32.mxu0 %vm28615_vm1, %v28614_v9 }
 0x671   :  { %25745 = vmatprep.subr.mxu0 %v28614_v9 }
 0x673   :  { %25743 = vmatmul.mubr.f32.vlgmr.msra.gmra.mrb[6].mxu0 %v3745_v1 }
 0x674   :  { %25746 = vmatpush3.xpose.msra.mxu0 %v3756_v41  ;;  %25747 = vmatprep.mubr.msk.f32.mxu0 %vm28615_vm1, %v28614_v9 }
 0x675   :  { %25750 = vmatprep.subr.mxu0 %v28614_v9 }
 0x67b   :  { %25748 = vmatmul.mubr.f32.vlgmr.msra.gmra.mrb[6].mxu0 %v3741_v12 }
 0x67c   :  { %25751 = vmatpush3.xpose.msra.mxu0 %v3753_v16  ;;  %25752 = vmatprep.mubr.msk.f32.mxu0 %vm28615_vm1, %v28614_v9 }
 0x67d   :  { %25755 = vmatprep.subr.mxu0 %v28614_v9 }
 0x683   :  { %25753 = vmatmul.mubr.f32.vlgmr.msra.gmra.mrb[6].mxu0 %v3742_v13 }
 0x684   :  { %25756 = vmatpush3.xpose.msra.mxu0 %v3676_v15  ;;  %25757 = vmatprep.mubr.msk.f32.mxu0 %vm28615_vm1, %v28614_v9 }
 0x685   :  { %25760 = vmatprep.subr.mxu0 %v28614_v9 }
 0x68b   :  { %25758 = vmatmul.mubr.f32.vlgmr.msra.gmra.mrb[6].mxu0 %v3743_v17 }
 0x68c   :  { %25761 = vmatpush3.xpose.msra.mxu0 %v3754_v18  ;;  %25762 = vmatprep.mubr.msk.f32.mxu0 %vm28615_vm1, %v28614_v9 }
 0x68d   :  { %25765 = vmatprep.subr.mxu0 %v28614_v9 }
 0x693   :  { %25763 = vmatmul.mubr.f32.vlgmr.msra.gmra.mrb[6].mxu0 %v3741_v12 }
 0x694   :  { %25766 = vmatpush3.xpose.msra.mxu0 %v3676_v15  ;;  %25767 = vmatprep.mubr.msk.f32.mxu0 %vm28615_vm1, %v28614_v9 }
 0x695   :  { %25800 = vmatprep.subr.mxu0 %v28614_v9 }
 0x69b   :  { %25768 = vmatmul.mubr.f32.vlgmr.msra.gmra.mrb[6].mxu0 %v3741_v12  ;;  %v4571_v14 = vpop.f32.mrb[10].mxu1 }
 0x69c   :  { %v25799_v22 = vpop.f32.mrb[11].mxu1  ;;  %v4578_v23 = vsel %vm1841_vm2, %v4571_v14, -inf  ;;  %25802 = vmatprep.mubr.msk.f32.mxu0 %vm28615_vm1, %v28614_v9 }
 0x69d   :  { %4579 = vmax.xlane.f32.xlu1 %v4578_v23 }
 0x6ae   :  { %6495 = vrot.lane.b32.xlu1 %v29060_v28, %s28617_s4 }
 0x6b2   :  { %6497 = vrot.lane.b32.xlu1 %v29077_v42, %s28617_s4 }
 0x72a   :  { %v4580_v7 = vpop.xlane.xlu1 %4579 }
 0x72b   :  { %v4582_v24 = vsub.f32 %v4571_v14, %v4580_v7 }
 0x72d   :  { %v4585_v25 = vmul.f32 1.442695, %v4582_v24 }
 0x72e   :  { %v6496_v53 = vpop.permute.xlu1 %6495 }
 0x72f   :  { %28318 = vpow2.f32 %v4585_v25  ;;  %v6499_v47 = vsel %vm1841_vm2, %v6496_v53, 0 }
 0x730   :  { %v6569_v55 = vand.u32 4294901760, %v6499_v47 }
 0x732   :  { %v6498_v54 = vpop.permute.xlu1 %6497  ;;  %v6570_v59 = vsub.f32 %v6499_v47, %v6569_v55 }
 0x733   :  { %v6501_v26 = vsel %vm1841_vm2, %v6498_v54, 0 }
 0x734   :  { %v6504_v56 = vand.u32 4294901760, %v6501_v26  ;;  %v6571_v48 = vand.u32 4294901760, %v6570_v59 }
 0x736   :  { %v6581_v60 = vsub.f32 %v6501_v26, %v6504_v56  ;;  %v6572_v2 = vsub.f32 %v6570_v59, %v6571_v48 }
 0x738   :  { %v6582_v0 = vand.u32 4294901760, %v6581_v60  ;;  %v6573_v10 = vand.u32 4294901760, %v6572_v2 }
 0x739   :  { %v28319_v29 = vpop.eup %28318 }
 0x73a   :  { %v4590_v30 = vsel %vm1841_vm2, %v28319_v29, 0.0  ;;  %v6583_v6 = vsub.f32 %v6581_v60, %v6582_v0 }
 0x73b   :  { %4591 = vadd.xlane.f32.xlu0 %v4590_v30 }
 0x73c   :  { %v6584_v12 = vand.u32 4294901760, %v6583_v6 }
 0x742   :  { %v29234_v32 = vpop.f32.mrb[4].mxu0 }
 0x743   :  { %v25709_v33 = vpop.f32.mrb[5].mxu0 }
 0x751   :  { %5051 = vrot.lane.b32.xlu0 %v29067_v34, %s28616_s19 }
 0x755   :  { %6949 = vrot.lane.b32.xlu0 %v29058_v27, %s28617_s4 }
 0x759   :  { %6951 = vrot.lane.b32.xlu0 %v29093_v52, %s28617_s4 }
 0x76e   :  { %v4117_v31 = vpop.f32.mrb[6].mxu0 }
 0x76f   :  { %v25769_v35 = vpop.f32.mrb[7].mxu0  ;;  %v4575_v37 = vsel %vm1841_vm2, %v4117_v31, -inf }
 0x770   :  { %4576 = vmax.xlane.f32.xlu1 %v4575_v37 }
 0x781   :  { %4598 = vrot.lane.b32.xlu1 %v29069_v36, %s28616_s19 }
 0x785   :  { %7425 = vrot.lane.b32.xlu1 %v29069_v36, %s28617_s4 }
 0x789   :  { %8828 = vrot.lane.b32.xlu1 %v29060_v28, %s28618_s27 }
 0x78d   :  { %9282 = vrot.lane.b32.xlu1 %v29058_v27, %s28618_s27 }
 0x791   :  { %8830 = vrot.lane.b32.xlu1 %v29077_v42, %s28618_s27 }
 0x795   :  { %9284 = vrot.lane.b32.xlu1 %v29093_v52, %s28618_s27 }
 0x7c8   :  { %v4592_v38 = vpop.xlane.xlu0 %4591 }
 0x7c9   :  { %28320 = vrcp.f32 %v4592_v38 }
 0x7cc   :  { %v5052_v39 = vpop.permute.xlu0 %5051 }
 0x7cd   :  { %v5058_v40 = vand.u32 4294901760, %v5052_v39 }
 0x7cf   :  { %25831 = vmatpush3.msra.mxu1 %v5058_v40  ;;  %v5135_v45 = vsub.f32 %v5052_v39, %v5058_v40 }
 0x7d0   :  { %25835 = vmatprep.subr.mxu1 %v28614_v9  ;;  %v6950_v13 = vpop.permute.xlu0 %6949 }
 0x7d1   :  { %v5136_v27 = vand.u32 4294901760, %v5135_v45  ;;  %v6953_v17 = vsel %vm1841_vm2, %v6950_v13, 0 }
 0x7d2   :  { %v7023_v5 = vand.u32 4294901760, %v6953_v17 }
 0x7d3   :  { %v28321_v43 = vpop.eup %28320  ;;  %v5137_v42 = vsub.f32 %v5135_v45, %v5136_v27 }
 0x7d4   :  { %v4596_v44 = vmul.f32 %v28321_v43, %v28319_v29  ;;  %v6952_v16 = vpop.permute.xlu0 %6951  ;;  %v7024_v8 = vsub.f32 %v6953_v17, %v7023_v5 }
 0x7d5   :  { %v5138_v52 = vand.u32 4294901760, %v5137_v42  ;;  %v6955_v18 = vsel %vm1841_vm2, %v6952_v16, 0 }
 0x7d6   :  { %v5055_v28 = vsel %vm1841_vm2, %v4596_v44, 0  ;;  %v6958_v19 = vand.u32 4294901760, %v6955_v18  ;;  %v7025_v41 = vand.u32 4294901760, %v7024_v8 }
 0x7d7   :  { %v5123_v21 = vand.u32 4294901760, %v5055_v28 }
 0x7d8   :  { %v7035_v1 = vsub.f32 %v6955_v18, %v6958_v19  ;;  %v7026_v22 = vsub.f32 %v7024_v8, %v7025_v41 }
 0x7d9   :  { %v5124_v46 = vsub.f32 %v5055_v28, %v5123_v21 }
 0x7da   :  { %v7036_v14 = vand.u32 4294901760, %v7035_v1  ;;  %v7027_v7 = vand.u32 4294901760, %v7026_v22 }
 0x7db   :  { %v5125_v49 = vand.u32 4294901760, %v5124_v46 }
 0x7dc   :  { %v7037_v23 = vsub.f32 %v7035_v1, %v7036_v14 }
 0x7dd   :  { %v5126_v50 = vsub.f32 %v5124_v46, %v5125_v49 }
 0x7de   :  { %v7038_v24 = vand.u32 4294901760, %v7037_v23 }
 0x7df   :  { %v5127_v51 = vand.u32 4294901760, %v5126_v50 }
 0x7e1   :  { %25833 = vmatmul.mubr.f32.vlgmr.msra.gmra.mrb[12].mxu1 %v5127_v51 }
 0x7e2   :  { %25836 = vmatpush3.msra.mxu1 %v5138_v52  ;;  %25837 = vmatprep.mubr.msk.f32.mxu1 %vm28615_vm1, %v28614_v9  ;;  %v5504_v52 = vld [vmem:[#allocation11 + $0x8] sm:$0xff] }
 0x7e3   :  { %25840 = vmatprep.subr.mxu1 %v28614_v9  ;;  %v29347_v53 = vand.u32 4294901760, %v5504_v52 }
 0x7e5   :  { %v5599_v54 = vsub.f32 %v5504_v52, %v29347_v53 }
 0x7e7   :  { %v5600_v47 = vand.u32 4294901760, %v5599_v54 }
 0x7e9   :  { %25838 = vmatmul.mubr.f32.vlgmr.msra.gmra.mrb[12].mxu1 %v5123_v21  ;;  %v5601_v26 = vsub.f32 %v5599_v54, %v5600_v47 }
 0x7ea   :  { %25841 = vmatpush3.msra.mxu1 %v5135_v45  ;;  %25842 = vmatprep.mubr.msk.f32.mxu1 %vm28615_vm1, %v28614_v9 }
 0x7eb   :  { %25845 = vmatprep.subr.mxu1 %v28614_v9 }
 0x7f1   :  { %25843 = vmatmul.mubr.f32.vlgmr.msra.gmra.mrb[12].mxu1 %v5124_v46 }
 0x7f2   :  { %25846 = vmatpush3.msra.mxu1 %v5058_v40  ;;  %25847 = vmatprep.mubr.msk.f32.mxu1 %vm28615_vm1, %v28614_v9 }
 0x7f3   :  { %25850 = vmatprep.subr.mxu1 %v28614_v9 }
 0x7f9   :  { %25848 = vmatmul.mubr.f32.vlgmr.msra.gmra.mrb[12].mxu1 %v5125_v49 }
 0x7fa   :  { %25851 = vmatpush3.msra.mxu1 %v5136_v27  ;;  %25852 = vmatprep.mubr.msk.f32.mxu1 %vm28615_vm1, %v28614_v9 }
 0x7fb   :  { %25855 = vmatprep.subr.mxu1 %v28614_v9 }
 0x7fd   :  { %v4577_v57 = vpop.xlane.xlu1 %4576 }
 0x7fe   :  { %v4581_v58 = vsub.f32 %v4117_v31, %v4577_v57 }
 0x800   :  { %v4583_v61 = vmul.f32 1.442695, %v4581_v58 }
 0x801   :  { %25853 = vmatmul.mubr.f32.vlgmr.msra.gmra.mrb[12].mxu1 %v5123_v21  ;;  %v29271_v62 = vpop.permute.xlu1 %4598 }
 0x802   :  { %28322 = vpow2.f32 %v4583_v61  ;;  %25856 = vmatpush3.msra.mxu1 %v5058_v40  ;;  %v29274_v63 = vand.u32 4294901760, %v29271_v62  ;;  %25857 = vmatprep.mubr.msk.f32.mxu1 %vm28615_vm1, %v28614_v9 }
 0x803   :  { %25920 = vmatprep.subr.mxu1 %v28614_v9 }
 0x804   :  { %25801 = vmatpush3.msra.mxu0 %v29274_v63  ;;  %v4682_v30 = vsub.f32 %v29271_v62, %v29274_v63 }
 0x805   :  { %25805 = vmatprep.subr.mxu0 %v28614_v9 }
 0x806   :  { %v4683_v37 = vand.u32 4294901760, %v4682_v30 }
 0x808   :  { %v4684_v40 = vsub.f32 %v4682_v30, %v4683_v37 }
 0x809   :  { %25858 = vmatmul.mubr.f32.vlgmr.msra.gmra.mrb[12].mxu1 %v5123_v21 }
 0x80a   :  { %25921 = vmatpush3.xpose.msra.mxu1 %v6504_v56  ;;  %25922 = vmatprep.mubr.msk.f32.mxu1 %vm28615_vm1, %v28614_v9  ;;  %v4685_v45 = vand.u32 4294901760, %v4684_v40 }
 0x80b   :  { %25925 = vmatprep.subr.mxu1 %v28614_v9 }
 0x80c   :  { %v29284_v11 = vpop.eup %28322 }
 0x80d   :  { %25923 = vmatmul.mubr.f32.vlgmr.msra.gmra.mrb[14].mxu1 %v6573_v10  ;;  %v4587_v15 = vsel %vm1841_vm2, %v29284_v11, 0.0 }
 0x80e   :  { %25926 = vmatpush3.xpose.msra.mxu1 %v6584_v12  ;;  %4588 = vadd.xlane.f32.xlu0 %v4587_v15 }
 0x80f   :  { %25927 = vmatprep.mubr.msk.f32.mxu1 %vm28615_vm1, %v28614_v9  ;;  %25930 = vmatprep.subr.mxu1 %v28614_v9 }
 0x815   :  { %25928 = vmatmul.mubr.f32.vlgmr.msra.gmra.mrb[14].mxu1 %v6569_v55 }
 0x816   :  { %25931 = vmatpush3.xpose.msra.mxu1 %v6581_v60  ;;  %25932 = vmatprep.mubr.msk.f32.mxu1 %vm28615_vm1, %v28614_v9 }
 0x817   :  { %25935 = vmatprep.subr.mxu1 %v28614_v9 }
 0x81d   :  { %25933 = vmatmul.mubr.f32.vlgmr.msra.gmra.mrb[14].mxu1 %v6570_v59 }
 0x81e   :  { %25936 = vmatpush3.xpose.msra.mxu1 %v6504_v56  ;;  %25937 = vmatprep.mubr.msk.f32.mxu1 %vm28615_vm1, %v28614_v9 }
 0x81f   :  { %25940 = vmatprep.subr.mxu1 %v28614_v9 }
 0x825   :  { %25938 = vmatmul.mubr.f32.vlgmr.msra.gmra.mrb[14].mxu1 %v6571_v48 }
 0x826   :  { %25941 = vmatpush3.xpose.msra.mxu1 %v6582_v0  ;;  %25942 = vmatprep.mubr.msk.f32.mxu1 %vm28615_vm1, %v28614_v9 }
 0x827   :  { %25945 = vmatprep.subr.mxu1 %v28614_v9 }
 0x82d   :  { %25943 = vmatmul.mubr.f32.vlgmr.msra.gmra.mrb[14].mxu1 %v6569_v55 }
 0x82e   :  { %25946 = vmatpush3.xpose.msra.mxu1 %v6504_v56  ;;  %25947 = vmatprep.mubr.msk.f32.mxu1 %vm28615_vm1, %v28614_v9 }
 0x82f   :  { %25950 = vmatprep.subr.mxu1 %v28614_v9 }
 0x835   :  { %25948 = vmatmul.mubr.f32.vlgmr.msra.gmra.mrb[14].mxu1 %v6569_v55  ;;  %v5602_v55 = vand.u32 4294901760, %v5601_v26 }
 0x836   :  { %25951 = vmatpush3.xpose.msra.mxu1 %v6958_v19  ;;  %25952 = vmatprep.mubr.msk.f32.mxu1 %vm28615_vm1, %v28614_v9 }
 0x837   :  { %25955 = vmatprep.subr.mxu1 %v28614_v9 }
 0x839   :  { %25953 = vmatmul.mubr.f32.vlgmr.msra.gmra.mrb[16].mxu1 %v7027_v7 }
 0x83a   :  { %25956 = vmatpush3.xpose.msra.mxu1 %v7038_v24  ;;  %25957 = vmatprep.mubr.msk.f32.mxu1 %vm28615_vm1, %v28614_v9  ;;  %v6004_v24 = vsel %vm1841_vm2, %v29206_v20, 0 }
 0x83b   :  { %25960 = vmatprep.subr.mxu1 %v28614_v9 }
 0x841   :  { %25958 = vmatmul.mubr.f32.vlgmr.msra.gmra.mrb[16].mxu1 %v7023_v5 }
 0x842   :  { %25961 = vmatpush3.xpose.msra.mxu1 %v7035_v1  ;;  %25962 = vmatprep.mubr.msk.f32.mxu1 %vm28615_vm1, %v28614_v9  ;;  %v6001_v1 = vsel %vm1841_vm2, %v29234_v32, 0 }
 0x843   :  { %25965 = vmatprep.subr.mxu1 %v28614_v9  ;;  %v6072_v22 = vand.u32 4294901760, %v6001_v1 }
 0x849   :  { %25963 = vmatmul.mubr.f32.vlgmr.msra.gmra.mrb[16].mxu1 %v7024_v8  ;;  %v3666_v8 = vld [vmem:[#allocation11] sm:$0xff] }
 0x84a   :  { %25966 = vmatpush3.xpose.msra.mxu1 %v6958_v19  ;;  %25967 = vmatprep.mubr.msk.f32.mxu1 %vm28615_vm1, %v28614_v9 }
 0x84b   :  { %25970 = vmatprep.subr.mxu1 %v28614_v9 }
 0x851   :  { %25968 = vmatmul.mubr.f32.vlgmr.msra.gmra.mrb[16].mxu1 %v7025_v41 }
 0x852   :  { %25971 = vmatpush3.xpose.msra.mxu1 %v7036_v14  ;;  %25972 = vmatprep.mubr.msk.f32.mxu1 %vm28615_vm1, %v28614_v9  ;;  %v6007_v14 = vand.u32 4294901760, %v3666_v8 }
 0x853   :  { %25975 = vmatprep.subr.mxu1 %v28614_v9 }
 0x854   :  { %v6094_v7 = vsub.f32 %v3666_v8, %v6007_v14 }
 0x856   :  { %v6095_v32 = vand.u32 4294901760, %v6094_v7 }
 0x859   :  { %25973 = vmatmul.mubr.f32.vlgmr.msra.gmra.mrb[16].mxu1 %v7023_v5 }
 0x85a   :  { %25976 = vmatpush3.xpose.msra.mxu1 %v6958_v19  ;;  %25977 = vmatprep.mubr.msk.f32.mxu1 %vm28615_vm1, %v28614_v9 }
 0x85b   :  { %26010 = vmatprep.subr.mxu1 %v28614_v9 }
 0x861   :  { %25978 = vmatmul.mubr.f32.vlgmr.msra.gmra.mrb[16].mxu1 %v7023_v5 }
 0x862   :  { %26012 = vmatprep.mubr.msk.f32.mxu1 %vm28615_vm1, %v28614_v9 }
 0x89b   :  { %v4589_v25 = vpop.xlane.xlu0 %4588 }
 0x89c   :  { %28324 = vrcp.f32 %v4589_v25  ;;  %v6073_v25 = vsub.f32 %v6001_v1, %v6072_v22 }
 0x8a6   :  { %v28325_v29 = vpop.eup %28324 }
 0x8a7   :  { %v4594_v33 = vmul.f32 %v28325_v29, %v29284_v11  ;;  %v6082_v29 = vand.u32 4294901760, %v6004_v24 }
 0x8a9   :  { %v4602_v31 = vsel %vm1841_vm2, %v4594_v33, 0  ;;  %v6083_v33 = vsub.f32 %v6004_v24, %v6082_v29 }
 0x8aa   :  { %v4670_v35 = vand.u32 4294901760, %v4602_v31 }
 0x8ac   :  { %v4671_v38 = vsub.f32 %v4602_v31, %v4670_v35  ;;  %v6096_v31 = vsub.f32 %v6094_v7, %v6095_v32 }
 0x8ae   :  { %v4672_v39 = vand.u32 4294901760, %v4671_v38 }
 0x8b0   :  { %v4673_v43 = vsub.f32 %v4671_v38, %v4672_v39 }
 0x8b2   :  { %v4674_v44 = vand.u32 4294901760, %v4673_v43  ;;  %v7426_v43 = vpop.permute.xlu1 %7425 }
 0x8b4   :  { %25803 = vmatmul.mubr.f32.vlgmr.msra.gmra.mrb[8].mxu0 %v4674_v44  ;;  %v7432_v44 = vand.u32 4294901760, %v7426_v43 }
 0x8b5   :  { %25806 = vmatpush3.msra.mxu0 %v4685_v45  ;;  %25807 = vmatprep.mubr.msk.f32.mxu0 %vm28615_vm1, %v28614_v9 }
 0x8b6   :  { %25810 = vmatprep.subr.mxu0 %v28614_v9 }
 0x8bc   :  { %25808 = vmatmul.mubr.f32.vlgmr.msra.gmra.mrb[8].mxu0 %v4670_v35 }
 0x8bd   :  { %25811 = vmatpush3.msra.mxu0 %v4682_v30  ;;  %25812 = vmatprep.mubr.msk.f32.mxu0 %vm28615_vm1, %v28614_v9  ;;  %v6074_v30 = vand.u32 4294901760, %v6073_v25 }
 0x8be   :  { %25815 = vmatprep.subr.mxu0 %v28614_v9 }
 0x8c4   :  { %25813 = vmatmul.mubr.f32.vlgmr.msra.gmra.mrb[8].mxu0 %v4671_v38  ;;  %v6097_v38 = vand.u32 4294901760, %v6096_v31 }
 0x8c5   :  { %25816 = vmatpush3.msra.mxu0 %v29274_v63  ;;  %25817 = vmatprep.mubr.msk.f32.mxu0 %vm28615_vm1, %v28614_v9 }
 0x8c6   :  { %25820 = vmatprep.subr.mxu0 %v28614_v9 }
 0x8cc   :  { %25818 = vmatmul.mubr.f32.vlgmr.msra.gmra.mrb[8].mxu0 %v4672_v39 }
 0x8cd   :  { %25821 = vmatpush3.msra.mxu0 %v4683_v37  ;;  %25822 = vmatprep.mubr.msk.f32.mxu0 %vm28615_vm1, %v28614_v9  ;;  %v6084_v37 = vand.u32 4294901760, %v6083_v33 }
 0x8ce   :  { %25825 = vmatprep.subr.mxu0 %v28614_v9 }
 0x8cf   :  { %v6085_v40 = vsub.f32 %v6083_v33, %v6084_v37 }
 0x8d1   :  { %v6086_v20 = vand.u32 4294901760, %v6085_v40 }
 0x8d4   :  { %25823 = vmatmul.mubr.f32.vlgmr.msra.gmra.mrb[8].mxu0 %v4670_v35 }
 0x8d5   :  { %25826 = vmatpush3.msra.mxu0 %v29274_v63  ;;  %25827 = vmatprep.mubr.msk.f32.mxu0 %vm28615_vm1, %v28614_v9 }
 0x8d6   :  { %25860 = vmatprep.subr.mxu0 %v29347_v53 }
 0x8dc   :  { %25828 = vmatmul.mubr.f32.vlgmr.msra.gmra.mrb[8].mxu0 %v4670_v35  ;;  %v5499_v28 = vpop.f32.mrb[12].mxu1  ;;  %v6075_v35 = vsub.f32 %v6073_v25, %v6074_v30 }
 0x8dd   :  { %v25859_v21 = vpop.f32.mrb[13].mxu1  ;;  %25861 = vmatpush3.msra.mxu0 %v29347_v53  ;;  %v5509_v60 = vsel %vm1841_vm2, %v5499_v28, 0 }
 0x8de   :  { %25865 = vmatprep.subr.mxu0 %v5602_v55  ;;  %v5587_v62 = vand.u32 4294901760, %v5509_v60  ;;  %v6076_v39 = vand.u32 4294901760, %v6075_v35  ;;  %v7509_v21 = vsub.f32 %v7426_v43, %v7432_v44 }
 0x8e0   :  { %v5588_v63 = vsub.f32 %v5509_v60, %v5587_v62 }
 0x8e2   :  { %v5589_v10 = vand.u32 4294901760, %v5588_v63 }
 0x8e4   :  { %v5590_v15 = vsub.f32 %v5588_v63, %v5589_v10 }
 0x8e6   :  { %v5591_v17 = vand.u32 4294901760, %v5590_v15 }
 0x908   :  { %v6945_v27 = vpop.f32.mrb[14].mxu1 }
 0x909   :  { %v25949_v46 = vpop.f32.mrb[15].mxu1  ;;  %v7403_v49 = vsel %vm1841_vm2, %v6945_v27, -inf }
 0x90a   :  { %7404 = vmax.xlane.f32.xlu0 %v7403_v49 }
 0x934   :  { %v7399_v42 = vpop.f32.mrb[16].mxu1 }
 0x935   :  { %v25979_v50 = vpop.f32.mrb[17].mxu1  ;;  %v7406_v51 = vsel %vm1841_vm2, %v7399_v42, -inf }
 0x936   :  { %7407 = vmax.xlane.f32.xlu0 %v7406_v51 }
 0x997   :  { %v7405_v56 = vpop.xlane.xlu0 %7404 }
 0x998   :  { %v7409_v57 = vsub.f32 %v6945_v27, %v7405_v56 }
 0x99a   :  { %v7411_v58 = vmul.f32 1.442695, %v7409_v57 }
 0x99c   :  { %28326 = vpow2.f32 %v7411_v58 }
 0x9a6   :  { %v29352_v59 = vpop.eup %28326 }
 0x9a7   :  { %v7415_v61 = vsel %vm1841_vm2, %v29352_v59, 0.0 }
 0x9a8   :  { %7416 = vadd.xlane.f32.xlu0 %v7415_v61 }
 0x9af   :  { %v5046_v48 = vpop.f32.mrb[8].mxu0 }
 0x9b0   :  { %v5506_v0 = vsel %vm1841_vm2, %v5046_v48, 0  ;;  %v25829_v2 = vpop.f32.mrb[9].mxu0 }
 0x9b1   :  { %v5577_v6 = vand.u32 4294901760, %v5506_v0 }
 0x9b3   :  { %v5578_v11 = vsub.f32 %v5506_v0, %v5577_v6 }
 0x9b5   :  { %v5579_v12 = vand.u32 4294901760, %v5578_v11 }
 0x9b7   :  { %v5580_v13 = vsub.f32 %v5578_v11, %v5579_v12 }
 0x9b9   :  { %v5581_v16 = vand.u32 4294901760, %v5580_v13 }
 0x9bb   :  { %25862 = vmatprep.mubr.f32.mxu0 %v5581_v16 }
 0x9bc   :  { %25863 = vmatmul.mubr.f32.vlgmr.msra.gmra.mrb[10].mxu0 %v5591_v17 }
 0x9bd   :  { %25867 = vmatprep.mubr.f32.mxu0 %v5577_v6  ;;  %25866 = vmatpush3.msra.mxu0 %v5602_v55 }
 0x9be   :  { %25870 = vmatprep.subr.mxu0 %v5599_v54 }
 0x9c3   :  { %v7408_v18 = vpop.xlane.xlu0 %7407 }
 0x9c4   :  { %v7410_v5 = vsub.f32 %v7399_v42, %v7408_v18  ;;  %25868 = vmatmul.mubr.f32.vlgmr.msra.gmra.mrb[10].mxu0 %v5587_v62  ;;  %v7510_v42 = vand.u32 4294901760, %v7509_v21 }
 0x9c5   :  { %25872 = vmatprep.mubr.f32.mxu0 %v5578_v11  ;;  %25871 = vmatpush3.msra.mxu0 %v5599_v54  ;;  %v8829_v11 = vpop.permute.xlu1 %8828 }
 0x9c6   :  { %v7413_v19 = vmul.f32 1.442695, %v7410_v5  ;;  %25875 = vmatprep.subr.mxu0 %v29347_v53  ;;  %v7511_v52 = vsub.f32 %v7509_v21, %v7510_v42  ;;  %v8832_v13 = vsel %vm1841_vm2, %v8829_v11, 0 }
 0x9c7   :  { %v8902_v17 = vand.u32 4294901760, %v8832_v13 }
 0x9c8   :  { %28328 = vpow2.f32 %v7413_v19 }
 0x9c9   :  { %v8903_v5 = vsub.f32 %v8832_v13, %v8902_v17 }
 0x9cb   :  { %v8904_v8 = vand.u32 4294901760, %v8903_v5 }
 0x9cc   :  { %25873 = vmatmul.mubr.f32.vlgmr.msra.gmra.mrb[10].mxu0 %v5588_v63 }
 0x9cd   :  { %25877 = vmatprep.mubr.f32.mxu0 %v5579_v12  ;;  %25876 = vmatpush3.msra.mxu0 %v29347_v53  ;;  %v29401_v12 = vpop.permute.xlu1 %9282 }
 0x9ce   :  { %25880 = vmatprep.subr.mxu0 %v5600_v47 }
 0x9d1   :  { %v8831_v15 = vpop.permute.xlu1 %8830 }
 0x9d2   :  { %v29362_v41 = vpop.eup %28328  ;;  %v8834_v16 = vsel %vm1841_vm2, %v8831_v15, 0 }
 0x9d3   :  { %v7418_v23 = vsel %vm1841_vm2, %v29362_v41, 0.0  ;;  %v8837_v18 = vand.u32 4294901760, %v8834_v16 }
 0x9d4   :  { %25878 = vmatmul.mubr.f32.vlgmr.msra.gmra.mrb[10].mxu0 %v5589_v10  ;;  %7419 = vadd.xlane.f32.xlu0 %v7418_v23 }
 0x9d5   :  { %25882 = vmatprep.mubr.f32.mxu0 %v5577_v6  ;;  %25881 = vmatpush3.msra.mxu0 %v5600_v47  ;;  %v7512_v47 = vand.u32 4294901760, %v7511_v52  ;;  %v8914_v19 = vsub.f32 %v8834_v16, %v8837_v18 }
 0x9d6   :  { %25885 = vmatprep.subr.mxu0 %v29347_v53 }
 0x9d7   :  { %v8915_v1 = vand.u32 4294901760, %v8914_v19 }
 0x9dc   :  { %25883 = vmatmul.mubr.f32.vlgmr.msra.gmra.mrb[10].mxu0 %v5587_v62 }
 0x9dd   :  { %25887 = vmatprep.mubr.f32.mxu0 %v5577_v6  ;;  %25886 = vmatpush3.msra.mxu0 %v29347_v53 }
 0x9de   :  { %25890 = vmatprep.subr.mxu0 %v6007_v14 }
 0x9e4   :  { %25888 = vmatmul.mubr.f32.vlgmr.msra.gmra.mrb[10].mxu0 %v5587_v62 }
 0x9e5   :  { %25892 = vmatprep.mubr.f32.mxu0 %v6076_v39  ;;  %25891 = vmatpush3.msra.mxu0 %v6007_v14 }
 0x9e6   :  { %25895 = vmatprep.subr.mxu0 %v6097_v38 }
 0x9ea   :  { %7877 = vrot.lane.b32.xlu0 %v29067_v34, %s28617_s4 }
 0x9ec   :  { %25893 = vmatmul.mubr.f32.vlgmr.msra.gmra.mrb[10].mxu0 %v6086_v20 }
 0x9ed   :  { %25897 = vmatprep.mubr.f32.mxu0 %v6072_v22  ;;  %25896 = vmatpush3.msra.mxu0 %v6097_v38 }
 0x9ee   :  { %25900 = vmatprep.subr.mxu0 %v6094_v7 }
 0x9f4   :  { %25898 = vmatmul.mubr.f32.vlgmr.msra.gmra.mrb[10].mxu0 %v6082_v29 }
 0x9f5   :  { %25902 = vmatprep.mubr.f32.mxu0 %v6073_v25  ;;  %25901 = vmatpush3.msra.mxu0 %v6094_v7  ;;  %v8330_v7 = vld [vmem:[#allocation11 + $0x10] sm:$0xff] }
 0x9f6   :  { %25905 = vmatprep.subr.mxu0 %v6007_v14  ;;  %v8338_v24 = vand.u32 4294901760, %v8330_v7 }
 0x9f8   :  { %v8425_v25 = vsub.f32 %v8330_v7, %v8338_v24 }
 0x9fc   :  { %25903 = vmatmul.mubr.f32.vlgmr.msra.gmra.mrb[10].mxu0 %v6083_v33 }
 0x9fd   :  { %25907 = vmatprep.mubr.f32.mxu0 %v6074_v30  ;;  %25906 = vmatpush3.msra.mxu0 %v6007_v14 }
 0x9fe   :  { %25910 = vmatprep.subr.mxu0 %v6095_v32 }
 0xa04   :  { %25908 = vmatmul.mubr.f32.vlgmr.msra.gmra.mrb[10].mxu0 %v6084_v37 }
 0xa05   :  { %25912 = vmatprep.mubr.f32.mxu0 %v6072_v22  ;;  %25911 = vmatpush3.msra.mxu0 %v6095_v32 }
 0xa06   :  { %25915 = vmatprep.subr.mxu0 %v6007_v14 }
 0xa0c   :  { %25913 = vmatmul.mubr.f32.vlgmr.msra.gmra.mrb[10].mxu0 %v6082_v29 }
 0xa0d   :  { %25917 = vmatprep.mubr.f32.mxu0 %v6072_v22  ;;  %25916 = vmatpush3.msra.mxu0 %v6007_v14  ;;  %v8916_v14 = vsub.f32 %v8914_v19, %v8915_v1 }
 0xa0e   :  { %25980 = vmatprep.subr.mxu0 %v28614_v9 }
 0xa0f   :  { %v8917_v23 = vand.u32 4294901760, %v8916_v14 }
 0xa14   :  { %25918 = vmatmul.mubr.f32.vlgmr.msra.gmra.mrb[10].mxu0 %v6082_v29  ;;  %v8426_v29 = vand.u32 4294901760, %v8425_v25 }
 0xa15   :  { %25981 = vmatpush3.msra.mxu0 %v7432_v44  ;;  %25982 = vmatprep.mubr.msk.f32.mxu0 %vm28615_vm1, %v28614_v9 }
 0xa16   :  { %25985 = vmatprep.subr.mxu0 %v28614_v9  ;;  %v8427_v32 = vsub.f32 %v8425_v25, %v8426_v29 }
 0xa18   :  { %v8428_v30 = vand.u32 4294901760, %v8427_v32 }
 0xa35   :  { %v7417_v45 = vpop.xlane.xlu0 %7416 }
 0xa36   :  { %28330 = vrcp.f32 %v7417_v45 }
 0xa40   :  { %v28331_v28 = vpop.eup %28330 }
 0xa41   :  { %v7422_v27 = vmul.f32 %v28331_v28, %v29352_v59 }
 0xa43   :  { %v7429_v46 = vsel %vm1841_vm2, %v7422_v27, 0 }
 0xa44   :  { %v7497_v49 = vand.u32 4294901760, %v7429_v46 }
 0xa46   :  { %v7498_v50 = vsub.f32 %v7429_v46, %v7497_v49 }
 0xa48   :  { %v7499_v51 = vand.u32 4294901760, %v7498_v50 }
 0xa4a   :  { %v7500_v53 = vsub.f32 %v7498_v50, %v7499_v51 }
 0xa4c   :  { %v7501_v54 = vand.u32 4294901760, %v7500_v53 }
 0xa4e   :  { %25983 = vmatmul.mubr.f32.vlgmr.msra.gmra.mrb[12].mxu0 %v7501_v54 }
 0xa4f   :  { %25986 = vmatpush3.msra.mxu0 %v7512_v47  ;;  %25987 = vmatprep.mubr.msk.f32.mxu0 %vm28615_vm1, %v28614_v9 }
 0xa50   :  { %25990 = vmatprep.subr.mxu0 %v28614_v9 }
 0xa56   :  { %25988 = vmatmul.mubr.f32.vlgmr.msra.gmra.mrb[12].mxu0 %v7497_v49 }
 0xa57   :  { %25991 = vmatpush3.msra.mxu0 %v7509_v21  ;;  %25992 = vmatprep.mubr.msk.f32.mxu0 %vm28615_vm1, %v28614_v9 }
 0xa58   :  { %25995 = vmatprep.subr.mxu0 %v28614_v9 }
 0xa5e   :  { %25993 = vmatmul.mubr.f32.vlgmr.msra.gmra.mrb[12].mxu0 %v7498_v50  ;;  %v9286_v50 = vsel %vm1841_vm2, %v29401_v12, 0 }
 0xa5f   :  { %25996 = vmatpush3.msra.mxu0 %v7432_v44  ;;  %25997 = vmatprep.mubr.msk.f32.mxu0 %vm28615_vm1, %v28614_v9  ;;  %v9356_v52 = vand.u32 4294901760, %v9286_v50 }
 0xa60   :  { %26000 = vmatprep.subr.mxu0 %v28614_v9 }
 0xa61   :  { %v7420_v26 = vpop.xlane.xlu0 %7419  ;;  %v9357_v54 = vsub.f32 %v9286_v50, %v9356_v52 }
 0xa62   :  { %28332 = vrcp.f32 %v7420_v26 }
 0xa65   :  { %v7878_v55 = vpop.permute.xlu0 %7877 }
 0xa66   :  { %v7884_v56 = vand.u32 4294901760, %v7878_v55  ;;  %25998 = vmatmul.mubr.f32.vlgmr.msra.gmra.mrb[12].mxu0 %v7499_v51 }
 0xa67   :  { %26001 = vmatpush3.msra.mxu0 %v7510_v42  ;;  %26002 = vmatprep.mubr.msk.f32.mxu0 %vm28615_vm1, %v28614_v9  ;;  %v9285_v42 = vpop.permute.xlu1 %9284 }
 0xa68   :  { %26011 = vmatpush3.msra.mxu1 %v7884_v56  ;;  %26005 = vmatprep.subr.mxu0 %v28614_v9  ;;  %v7961_v59 = vsub.f32 %v7878_v55, %v7884_v56  ;;  %v9288_v51 = vsel %vm1841_vm2, %v9285_v42, 0 }
 0xa69   :  { %26015 = vmatprep.subr.mxu1 %v28614_v9  ;;  %v9291_v53 = vand.u32 4294901760, %v9288_v51 }
 0xa6a   :  { %v7962_v62 = vand.u32 4294901760, %v7961_v59 }
 0xa6b   :  { %v9368_v47 = vsub.f32 %v9288_v51, %v9291_v53 }
 0xa6c   :  { %v28333_v57 = vpop.eup %28332  ;;  %v7963_v0 = vsub.f32 %v7961_v59, %v7962_v62 }
 0xa6d   :  { %v7424_v58 = vmul.f32 %v28333_v57, %v29362_v41  ;;  %v8905_v41 = vsub.f32 %v8903_v5, %v8904_v8  ;;  %v9358_v57 = vand.u32 4294901760, %v9357_v54 }
 0xa6e   :  { %26003 = vmatmul.mubr.f32.vlgmr.msra.gmra.mrb[12].mxu0 %v7497_v49  ;;  %v7964_v10 = vand.u32 4294901760, %v7963_v0 }
 0xa6f   :  { %26006 = vmatpush3.msra.mxu0 %v7432_v44  ;;  %26007 = vmatprep.mubr.msk.f32.mxu0 %vm28615_vm1, %v28614_v9  ;;  %v7881_v60 = vsel %vm1841_vm2, %v7424_v58, 0  ;;  %v8906_v22 = vand.u32 4294901760, %v8905_v41  ;;  %v9369_v58 = vand.u32 4294901760, %v9368_v47 }
 0xa70   :  { %v7949_v61 = vand.u32 4294901760, %v7881_v60  ;;  %26040 = vmatprep.subr.mxu0 %v8338_v24 }
 0xa72   :  { %v7950_v63 = vsub.f32 %v7881_v60, %v7949_v61  ;;  %v9370_v60 = vsub.f32 %v9368_v47, %v9369_v58 }
 0xa74   :  { %v7951_v48 = vand.u32 4294901760, %v7950_v63 }
 0xa76   :  { %26008 = vmatmul.mubr.f32.vlgmr.msra.gmra.mrb[12].mxu0 %v7497_v49  ;;  %v7952_v2 = vsub.f32 %v7950_v63, %v7951_v48 }
 0xa77   :  { %26041 = vmatpush3.msra.mxu0 %v8338_v24 }
 0xa78   :  { %v7953_v6 = vand.u32 4294901760, %v7952_v2  ;;  %26045 = vmatprep.subr.mxu0 %v8428_v30 }
 0xa7a   :  { %26013 = vmatmul.mubr.f32.vlgmr.msra.gmra.mrb[18].mxu1 %v7953_v6 }
 0xa7b   :  { %26016 = vmatpush3.msra.mxu1 %v7964_v10  ;;  %26017 = vmatprep.mubr.msk.f32.mxu1 %vm28615_vm1, %v28614_v9 }
 0xa7c   :  { %26020 = vmatprep.subr.mxu1 %v28614_v9 }
 0xa82   :  { %26018 = vmatmul.mubr.f32.vlgmr.msra.gmra.mrb[18].mxu1 %v7949_v61 }
 0xa83   :  { %26021 = vmatpush3.msra.mxu1 %v7961_v59  ;;  %26022 = vmatprep.mubr.msk.f32.mxu1 %vm28615_vm1, %v28614_v9  ;;  %v9359_v59 = vsub.f32 %v9357_v54, %v9358_v57 }
 0xa84   :  { %26025 = vmatprep.subr.mxu1 %v28614_v9 }
 0xa8a   :  { %26023 = vmatmul.mubr.f32.vlgmr.msra.gmra.mrb[18].mxu1 %v7950_v63 }
 0xa8b   :  { %26026 = vmatpush3.msra.mxu1 %v7884_v56  ;;  %26027 = vmatprep.mubr.msk.f32.mxu1 %vm28615_vm1, %v28614_v9 }
 0xa8c   :  { %26030 = vmatprep.subr.mxu1 %v28614_v9 }
 0xa92   :  { %26028 = vmatmul.mubr.f32.vlgmr.msra.gmra.mrb[18].mxu1 %v7951_v48 }
 0xa93   :  { %26031 = vmatpush3.msra.mxu1 %v7962_v62  ;;  %26032 = vmatprep.mubr.msk.f32.mxu1 %vm28615_vm1, %v28614_v9  ;;  %v9371_v62 = vand.u32 4294901760, %v9370_v60 }
 0xa94   :  { %26035 = vmatprep.subr.mxu1 %v28614_v9 }
 0xa9a   :  { %26033 = vmatmul.mubr.f32.vlgmr.msra.gmra.mrb[18].mxu1 %v7949_v61 }
 0xa9b   :  { %26036 = vmatpush3.msra.mxu1 %v7884_v56  ;;  %26037 = vmatprep.mubr.msk.f32.mxu1 %vm28615_vm1, %v28614_v9 }
 0xa9c   :  { %26070 = vmatprep.subr.mxu1 %v28614_v9 }
 0xaa2   :  { %26038 = vmatmul.mubr.f32.vlgmr.msra.gmra.mrb[18].mxu1 %v7949_v61  ;;  %v9360_v61 = vand.u32 4294901760, %v9359_v59 }
 0xaa3   :  { %26071 = vmatpush3.xpose.msra.mxu1 %v8837_v18  ;;  %26072 = vmatprep.mubr.msk.f32.mxu1 %vm28615_vm1, %v28614_v9 }
 0xaa4   :  { %26075 = vmatprep.subr.mxu1 %v28614_v9 }
 0xaa6   :  { %26073 = vmatmul.mubr.f32.vlgmr.msra.gmra.mrb[20].mxu1 %v8906_v22 }
 0xaa7   :  { %26076 = vmatpush3.xpose.msra.mxu1 %v8917_v23  ;;  %26077 = vmatprep.mubr.msk.f32.mxu1 %vm28615_vm1, %v28614_v9 }
 0xaa8   :  { %26080 = vmatprep.subr.mxu1 %v28614_v9 }
 0xaae   :  { %26078 = vmatmul.mubr.f32.vlgmr.msra.gmra.mrb[20].mxu1 %v8902_v17 }
 0xaaf   :  { %26081 = vmatpush3.xpose.msra.mxu1 %v8914_v19  ;;  %26082 = vmatprep.mubr.msk.f32.mxu1 %vm28615_vm1, %v28614_v9 }
 0xab0   :  { %26085 = vmatprep.subr.mxu1 %v28614_v9 }
 0xab6   :  { %26083 = vmatmul.mubr.f32.vlgmr.msra.gmra.mrb[20].mxu1 %v8903_v5 }
 0xab7   :  { %26086 = vmatpush3.xpose.msra.mxu1 %v8837_v18  ;;  %26087 = vmatprep.mubr.msk.f32.mxu1 %vm28615_vm1, %v28614_v9 }
 0xab8   :  { %26090 = vmatprep.subr.mxu1 %v28614_v9 }
 0xabe   :  { %26088 = vmatmul.mubr.f32.vlgmr.msra.gmra.mrb[20].mxu1 %v8904_v8 }
 0xabf   :  { %26091 = vmatpush3.xpose.msra.mxu1 %v8915_v1  ;;  %26092 = vmatprep.mubr.msk.f32.mxu1 %vm28615_vm1, %v28614_v9 }
 0xac0   :  { %26095 = vmatprep.subr.mxu1 %v28614_v9 }
 0xac6   :  { %26093 = vmatmul.mubr.f32.vlgmr.msra.gmra.mrb[20].mxu1 %v8902_v17 }
 0xac7   :  { %26096 = vmatpush3.xpose.msra.mxu1 %v8837_v18  ;;  %26097 = vmatprep.mubr.msk.f32.mxu1 %vm28615_vm1, %v28614_v9 }
 0xac8   :  { %26130 = vmatprep.subr.mxu1 %v28614_v9 }
 0xace   :  { %26098 = vmatmul.mubr.f32.vlgmr.msra.gmra.mrb[20].mxu1 %v8902_v17 }
 0xacf   :  { %26132 = vmatprep.mubr.msk.f32.mxu1 %vm28615_vm1, %v28614_v9 }
 0xb49   :  { %v7873_v33 = vpop.f32.mrb[12].mxu0 }
 0xb4a   :  { %v8332_v31 = vsel %vm1841_vm2, %v7873_v33, 0  ;;  %v26009_v35 = vpop.f32.mrb[13].mxu0 }
 0xb4b   :  { %v8403_v37 = vand.u32 4294901760, %v8332_v31 }
 0xb4d   :  { %v8404_v38 = vsub.f32 %v8332_v31, %v8403_v37 }
 0xb4f   :  { %v8405_v39 = vand.u32 4294901760, %v8404_v38 }
 0xb51   :  { %v8406_v40 = vsub.f32 %v8404_v38, %v8405_v39 }
 0xb53   :  { %v8407_v20 = vand.u32 4294901760, %v8406_v40 }
 0xb55   :  { %26042 = vmatprep.mubr.f32.mxu0 %v8407_v20 }
 0xb75   :  { %v8325_v43 = vpop.f32.mrb[18].mxu1 }
 0xb76   :  { %v8335_v44 = vsel %vm1841_vm2, %v8325_v43, 0  ;;  %v26039_v45 = vpop.f32.mrb[19].mxu1 }
 0xb77   :  { %v8413_v28 = vand.u32 4294901760, %v8335_v44 }
 0xb79   :  { %v8414_v21 = vsub.f32 %v8335_v44, %v8413_v28 }
 0xb7b   :  { %v8415_v27 = vand.u32 4294901760, %v8414_v21 }
 0xb7d   :  { %v8416_v46 = vsub.f32 %v8414_v21, %v8415_v27 }
 0xb7f   :  { %v8417_v49 = vand.u32 4294901760, %v8416_v46 }
 0xb81   :  { %26043 = vmatmul.mubr.f32.vlgmr.msra.gmra.mrb[10].mxu0 %v8417_v49 }
 0xb82   :  { %26047 = vmatprep.mubr.f32.mxu0 %v8403_v37  ;;  %26046 = vmatpush3.msra.mxu0 %v8428_v30 }
 0xb83   :  { %26050 = vmatprep.subr.mxu0 %v8425_v25 }
 0xb89   :  { %26048 = vmatmul.mubr.f32.vlgmr.msra.gmra.mrb[10].mxu0 %v8413_v28 }
 0xb8a   :  { %26052 = vmatprep.mubr.f32.mxu0 %v8404_v38  ;;  %26051 = vmatpush3.msra.mxu0 %v8425_v25 }
 0xb8b   :  { %26055 = vmatprep.subr.mxu0 %v8338_v24 }
 0xb91   :  { %26053 = vmatmul.mubr.f32.vlgmr.msra.gmra.mrb[10].mxu0 %v8414_v21 }
 0xb92   :  { %26057 = vmatprep.mubr.f32.mxu0 %v8405_v39  ;;  %26056 = vmatpush3.msra.mxu0 %v8338_v24 }
 0xb93   :  { %26060 = vmatprep.subr.mxu0 %v8426_v29 }
 0xb99   :  { %26058 = vmatmul.mubr.f32.vlgmr.msra.gmra.mrb[10].mxu0 %v8415_v27 }
 0xb9a   :  { %26062 = vmatprep.mubr.f32.mxu0 %v8403_v37  ;;  %26061 = vmatpush3.msra.mxu0 %v8426_v29 }
 0xb9b   :  { %26065 = vmatprep.subr.mxu0 %v8338_v24 }
 0xba1   :  { %26063 = vmatmul.mubr.f32.vlgmr.msra.gmra.mrb[10].mxu0 %v8413_v28  ;;  %v9278_v26 = vpop.f32.mrb[20].mxu1 }
 0xba2   :  { %26066 = vmatpush3.msra.mxu0 %v8338_v24  ;;  %26067 = vmatprep.mubr.f32.mxu0 %v8403_v37  ;;  %v26099_v55 = vpop.f32.mrb[21].mxu1  ;;  %v9736_v56 = vsel %vm1841_vm2, %v9278_v26, -inf }
 0xba3   :  { %9737 = vmax.xlane.f32.xlu1 %v9736_v56  ;;  %26100 = vmatprep.subr.mxu0 %v28614_v9 }
 0xba9   :  { %26068 = vmatmul.mubr.f32.vlgmr.msra.gmra.mrb[10].mxu0 %v8413_v28 }
 0xbaa   :  { %26101 = vmatpush3.xpose.msra.mxu0 %v9291_v53  ;;  %26102 = vmatprep.mubr.msk.f32.mxu0 %vm28615_vm1, %v28614_v9 }
 0xbab   :  { %26105 = vmatprep.subr.mxu0 %v28614_v9 }
 0xbad   :  { %26103 = vmatmul.mubr.f32.vlgmr.msra.gmra.mrb[14].mxu0 %v9360_v61 }
 0xbae   :  { %26106 = vmatpush3.xpose.msra.mxu0 %v9371_v62  ;;  %26107 = vmatprep.mubr.msk.f32.mxu0 %vm28615_vm1, %v28614_v9 }
 0xbaf   :  { %26110 = vmatprep.subr.mxu0 %v28614_v9 }
 0xbb5   :  { %26108 = vmatmul.mubr.f32.vlgmr.msra.gmra.mrb[14].mxu0 %v9356_v52 }
 0xbb6   :  { %26111 = vmatpush3.xpose.msra.mxu0 %v9368_v47  ;;  %26112 = vmatprep.mubr.msk.f32.mxu0 %vm28615_vm1, %v28614_v9  ;;  %v10663_v47 = vld [vmem:[#allocation11 + $0x18] sm:$0xff] }
 0xbb7   :  { %26115 = vmatprep.subr.mxu0 %v28614_v9 }
 0xbbd   :  { %26113 = vmatmul.mubr.f32.vlgmr.msra.gmra.mrb[14].mxu0 %v9357_v54 }
 0xbbe   :  { %26116 = vmatpush3.xpose.msra.mxu0 %v9291_v53  ;;  %26117 = vmatprep.mubr.msk.f32.mxu0 %vm28615_vm1, %v28614_v9 }
 0xbbf   :  { %26120 = vmatprep.subr.mxu0 %v28614_v9 }
 0xbc5   :  { %26118 = vmatmul.mubr.f32.vlgmr.msra.gmra.mrb[14].mxu0 %v9358_v57 }
 0xbc6   :  { %26121 = vmatpush3.xpose.msra.mxu0 %v9369_v58  ;;  %26122 = vmatprep.mubr.msk.f32.mxu0 %vm28615_vm1, %v28614_v9 }
 0xbc7   :  { %26125 = vmatprep.subr.mxu0 %v28614_v9 }
 0xbcd   :  { %26123 = vmatmul.mubr.f32.vlgmr.msra.gmra.mrb[14].mxu0 %v9356_v52 }
 0xbce   :  { %26126 = vmatpush3.xpose.msra.mxu0 %v9291_v53  ;;  %26127 = vmatprep.mubr.msk.f32.mxu0 %vm28615_vm1, %v28614_v9 }
 0xbcf   :  { %26160 = vmatprep.subr.mxu0 %v28614_v9 }
 0xbd5   :  { %26128 = vmatmul.mubr.f32.vlgmr.msra.gmra.mrb[14].mxu0 %v9356_v52 }
 0xbd6   :  { %26162 = vmatprep.mubr.msk.f32.mxu0 %vm28615_vm1, %v28614_v9 }
 0xc30   :  { %v9738_v63 = vpop.xlane.xlu1 %9737 }
 0xc31   :  { %v9742_v48 = vsub.f32 %v9278_v26, %v9738_v63  ;;  %v10671_v26 = vand.u32 4294901760, %v10663_v47 }
 0xc33   :  { %v9744_v0 = vmul.f32 1.442695, %v9742_v48  ;;  %v10758_v55 = vsub.f32 %v10663_v47, %v10671_v26 }
 0xc35   :  { %28334 = vpow2.f32 %v9744_v0  ;;  %v10759_v56 = vand.u32 4294901760, %v10758_v55 }
 0xc37   :  { %v10760_v57 = vsub.f32 %v10758_v55, %v10759_v56 }
 0xc39   :  { %v10761_v58 = vand.u32 4294901760, %v10760_v57 }
 0xc3f   :  { %v28335_v11 = vpop.eup %28334 }
 0xc40   :  { %v9748_v12 = vsel %vm1841_vm2, %v28335_v11, 0.0 }
 0xca8   :  { %v9732_v2 = vpop.f32.mrb[14].mxu0 }
 0xca9   :  { %v26129_v6 = vpop.f32.mrb[15].mxu0  ;;  %v9739_v10 = vsel %vm1841_vm2, %v9732_v2, -inf }
 0xcaa   :  { %9740 = vmax.xlane.f32.xlu0 %v9739_v10  ;;  %v24509_v10 = vld [vmem:[%s30277_s11] ss:$0 sm:$0xff] }
 0xcae   :  { %9749 = vadd.xlane.f32.xlu0 %v9748_v12 }
 0xcc4   :  { %9758 = vrot.lane.b32.xlu0 %v29069_v36, %s28618_s27 }
 0xd37   :  { %v9741_v15 = vpop.xlane.xlu0 %9740 }
 0xd38   :  { %v9743_v13 = vsub.f32 %v9732_v2, %v9741_v15 }
 0xd3a   :  { %v9746_v16 = vmul.f32 1.442695, %v9743_v13 }
 0xd3b   :  { %v9750_v17 = vpop.xlane.xlu0 %9749 }
 0xd3c   :  { %28336 = vpow2.f32 %v9746_v16 }
 0xd3d   :  { %28338 = vrcp.f32 %v9750_v17 }
 0xd3f   :  { %v9759_v18 = vpop.permute.xlu0 %9758 }
 0xd40   :  { %v9765_v5 = vand.u32 4294901760, %v9759_v18 }
 0xd42   :  { %26131 = vmatpush3.msra.mxu1 %v9765_v5  ;;  %v9842_v14 = vsub.f32 %v9759_v18, %v9765_v5 }
 0xd43   :  { %26135 = vmatprep.subr.mxu1 %v28614_v9 }
 0xd44   :  { %v9843_v23 = vand.u32 4294901760, %v9842_v14 }
 0xd46   :  { %v28337_v19 = vpop.eup %28336  ;;  %v9844_v25 = vsub.f32 %v9842_v14, %v9843_v23 }
 0xd47   :  { %v28339_v8 = vpop.eup %28338  ;;  %v9751_v1 = vsel %vm1841_vm2, %v28337_v19, 0.0 }
 0xd48   :  { %v9755_v41 = vmul.f32 %v28339_v8, %v28335_v11  ;;  %9752 = vadd.xlane.f32.xlu1 %v9751_v1  ;;  %v9845_v30 = vand.u32 4294901760, %v9844_v25 }
 0xd4a   :  { %v9762_v36 = vsel %vm1841_vm2, %v9755_v41, 0 }
 0xd4b   :  { %v9830_v22 = vand.u32 4294901760, %v9762_v36 }
 0xd4d   :  { %v9831_v7 = vsub.f32 %v9762_v36, %v9830_v22 }
 0xd4f   :  { %v9832_v24 = vand.u32 4294901760, %v9831_v7 }
 0xd51   :  { %v9833_v29 = vsub.f32 %v9831_v7, %v9832_v24 }
 0xd53   :  { %v9834_v32 = vand.u32 4294901760, %v9833_v29 }
 0xd55   :  { %26133 = vmatmul.mubr.f32.vlgmr.msra.gmra.mrb[22].mxu1 %v9834_v32  ;;  %v11219_v32 = vld [vmem:[#allocation13 + $0x18] sm:$0xff] }
 0xd56   :  { %26136 = vmatpush3.msra.mxu1 %v9845_v30  ;;  %26137 = vmatprep.mubr.msk.f32.mxu1 %vm28615_vm1, %v28614_v9 }
 0xd57   :  { %26140 = vmatprep.subr.mxu1 %v28614_v9 }
 0xd59   :  { %10210 = vrot.lane.b32.xlu1 %v29067_v34, %s28618_s27 }
 0xd5d   :  { %26138 = vmatmul.mubr.f32.vlgmr.msra.gmra.mrb[22].mxu1 %v9830_v22 }
 0xd5e   :  { %26141 = vmatpush3.msra.mxu1 %v9842_v14  ;;  %26142 = vmatprep.mubr.msk.f32.mxu1 %vm28615_vm1, %v28614_v9 }
 0xd5f   :  { %26145 = vmatprep.subr.mxu1 %v28614_v9 }
 0xd65   :  { %26143 = vmatmul.mubr.f32.vlgmr.msra.gmra.mrb[22].mxu1 %v9831_v7  ;;  %v11217_v7 = vld [vmem:[#allocation13 + $0x8] sm:$0xff] }
 0xd66   :  { %26146 = vmatpush3.msra.mxu1 %v9765_v5  ;;  %26147 = vmatprep.mubr.msk.f32.mxu1 %vm28615_vm1, %v28614_v9  ;;  %v11237_v29 = vand.u32 4294901760, %v11217_v7 }
 0xd67   :  { %26150 = vmatprep.subr.mxu1 %v28614_v9 }
 0xd6d   :  { %26148 = vmatmul.mubr.f32.vlgmr.msra.gmra.mrb[22].mxu1 %v9832_v24  ;;  %v11218_v24 = vld [vmem:[#allocation13 + $0x10] sm:$0xff] }
 0xd6e   :  { %26151 = vmatpush3.msra.mxu1 %v9843_v23  ;;  %26152 = vmatprep.mubr.msk.f32.mxu1 %vm28615_vm1, %v28614_v9  ;;  %v11216_v23 = vld [vmem:[#allocation13] sm:$0xff]  ;;  %v11240_v30 = vand.u32 4294901760, %v11218_v24 }
 0xd6f   :  { %26155 = vmatprep.subr.mxu1 %v28614_v9  ;;  %v11234_v25 = vand.u32 4294901760, %v11216_v23 }
 0xd75   :  { %26153 = vmatmul.mubr.f32.vlgmr.msra.gmra.mrb[22].mxu1 %v9830_v22 }
 0xd76   :  { %26156 = vmatpush3.msra.mxu1 %v9765_v5  ;;  %26157 = vmatprep.mubr.msk.f32.mxu1 %vm28615_vm1, %v28614_v9 }
 0xd7d   :  { %26158 = vmatmul.mubr.f32.vlgmr.msra.gmra.mrb[22].mxu1 %v9830_v22 }
 0xdd5   :  { %v9753_v34 = vpop.xlane.xlu1 %9752 }
 0xdd6   :  { %28340 = vrcp.f32 %v9753_v34  ;;  %v11243_v34 = vand.u32 4294901760, %v11219_v32 }
 0xdd9   :  { %v10211_v33 = vpop.permute.xlu1 %10210 }
 0xdda   :  { %v10217_v31 = vand.u32 4294901760, %v10211_v33 }
 0xddc   :  { %26161 = vmatpush3.msra.mxu0 %v10217_v31  ;;  %v10294_v38 = vsub.f32 %v10211_v33, %v10217_v31  ;;  %v29519_v33 = vpack.c.bf16 %v11237_v29, %v11234_v25 }
 0xddd   :  { %26165 = vmatprep.subr.mxu0 %v28614_v9 }
 0xdde   :  { %v10295_v20 = vand.u32 4294901760, %v10294_v38  ;;  %27427 = vmatprep.subr.bf16.mxu1 %v29519_v33 }
 0xddf   :  { %27429 = vmatpush3.bf16.msra.mxu1 %v29519_v33 }
 0xde0   :  { %v28341_v35 = vpop.eup %28340  ;;  %v10296_v45 = vsub.f32 %v10294_v38, %v10295_v20 }
 0xde1   :  { %v9757_v37 = vmul.f32 %v28341_v35, %v28337_v19  ;;  %v11324_v35 = vsub.f32 %v11216_v23, %v11234_v25  ;;  %v11772_v23 = vld [vmem:[#allocation14 + $0x8] sm:$0xff]  ;;  %v11773_v25 = vld [vmem:[#allocation14 + $0x10] sm:$0xff] }
 0xde2   :  { %v10297_v27 = vand.u32 4294901760, %v10296_v45 }
 0xde3   :  { %v10214_v39 = vsel %vm1841_vm2, %v9757_v37, 0  ;;  %v11331_v37 = vsub.f32 %v11217_v7, %v11237_v29  ;;  %v11774_v29 = vld [vmem:[#allocation14 + $0x18] sm:$0xff] }
 0xde4   :  { %v10282_v40 = vand.u32 4294901760, %v10214_v39 }
 0xde6   :  { %v10283_v43 = vsub.f32 %v10214_v39, %v10282_v40  ;;  %v11332_v39 = vand.u32 4294901760, %v11331_v37 }
 0xde8   :  { %v10284_v44 = vand.u32 4294901760, %v10283_v43 }
 0xdea   :  { %v10285_v28 = vsub.f32 %v10283_v43, %v10284_v44 }
 0xdec   :  { %v10286_v21 = vand.u32 4294901760, %v10285_v28 }
 0xdee   :  { %26163 = vmatmul.mubr.f32.vlgmr.msra.gmra.mrb[16].mxu0 %v10286_v21 }
 0xdef   :  { %26166 = vmatpush3.msra.mxu0 %v10297_v27  ;;  %26167 = vmatprep.mubr.msk.f32.mxu0 %vm28615_vm1, %v28614_v9 }
 0xdf0   :  { %26170 = vmatprep.subr.mxu0 %v28614_v9 }
 0xdf6   :  { %26168 = vmatmul.mubr.f32.vlgmr.msra.gmra.mrb[16].mxu0 %v10282_v40 }
 0xdf7   :  { %26171 = vmatpush3.msra.mxu0 %v10294_v38  ;;  %26172 = vmatprep.mubr.msk.f32.mxu0 %vm28615_vm1, %v28614_v9  ;;  %v11325_v38 = vand.u32 4294901760, %v11324_v35 }
 0xdf8   :  { %26175 = vmatprep.subr.mxu0 %v28614_v9 }
 0xdf9   :  { %v27458_v47 = vpack.c.bf16 %v11332_v39, %v11325_v38 }
 0xdfe   :  { %26173 = vmatmul.mubr.f32.vlgmr.msra.gmra.mrb[16].mxu0 %v10283_v43  ;;  %v11338_v43 = vsub.f32 %v11218_v24, %v11240_v30  ;;  %v11785_v24 = vand.u32 4294901760, %v11772_v23 }
 0xdff   :  { %26176 = vmatpush3.msra.mxu0 %v10217_v31  ;;  %26177 = vmatprep.mubr.msk.f32.mxu0 %vm28615_vm1, %v28614_v9 }
 0xe00   :  { %26180 = vmatprep.subr.mxu0 %v28614_v9  ;;  %v11339_v21 = vand.u32 4294901760, %v11338_v43 }
 0xe06   :  { %26178 = vmatmul.mubr.f32.vlgmr.msra.gmra.mrb[16].mxu0 %v10284_v44  ;;  %v11345_v44 = vsub.f32 %v11219_v32, %v11243_v34 }
 0xe07   :  { %26181 = vmatpush3.msra.mxu0 %v10295_v20  ;;  %26182 = vmatprep.mubr.msk.f32.mxu0 %vm28615_vm1, %v28614_v9  ;;  %v11333_v20 = vsub.f32 %v11331_v37, %v11332_v39 }
 0xe08   :  { %26185 = vmatprep.subr.mxu0 %v28614_v9  ;;  %v11346_v27 = vand.u32 4294901760, %v11345_v44 }
 0xe09   :  { %v11334_v28 = vand.u32 4294901760, %v11333_v20 }
 0xe0e   :  { %26183 = vmatmul.mubr.f32.vlgmr.msra.gmra.mrb[16].mxu0 %v10282_v40 }
 0xe0f   :  { %26186 = vmatpush3.msra.mxu0 %v10217_v31  ;;  %26187 = vmatprep.mubr.msk.f32.mxu0 %vm28615_vm1, %v28614_v9  ;;  %v29521_v31 = vpack.c.bf16 %v11243_v34, %v11240_v30  ;;  %v11788_v30 = vand.u32 4294901760, %v11773_v25  ;;  %v11791_v34 = vand.u32 4294901760, %v11774_v29 }
 0xe10   :  { %26190 = vmatprep.subr.mxu0 %v10671_v26 }
 0xe11   :  { %27431 = vmatprep.subr.bf16.mxu1 %v29521_v31  ;;  %v11893_v20 = vsub.f32 %v11774_v29, %v11791_v34 }
 0xe12   :  { %27433 = vmatpush3.bf16.msra.mxu1 %v29521_v31 }
 0xe16   :  { %26188 = vmatmul.mubr.f32.vlgmr.msra.gmra.mrb[16].mxu0 %v10282_v40  ;;  %v11326_v40 = vsub.f32 %v11324_v35, %v11325_v38 }
 0xe17   :  { %26191 = vmatpush3.msra.mxu0 %v10671_v26 }
 0xe18   :  { %26195 = vmatprep.subr.mxu0 %v10761_v58  ;;  %v11327_v45 = vand.u32 4294901760, %v11326_v40  ;;  %v11886_v40 = vsub.f32 %v11773_v25, %v11788_v30 }
 0xe50   :  { %v10206_v46 = vpop.f32.mrb[22].mxu1 }
 0xe51   :  { %v10665_v49 = vsel %vm1841_vm2, %v10206_v46, 0  ;;  %v26159_v42 = vpop.f32.mrb[23].mxu1  ;;  %v27434_v46 = vpack.c.bf16 %v11334_v28, %v11327_v45  ;;  %v11887_v45 = vand.u32 4294901760, %v11886_v40  ;;  %v11894_v28 = vand.u32 4294901760, %v11893_v20 }
 0xe52   :  { %v10736_v50 = vand.u32 4294901760, %v10665_v49  ;;  %v11347_v42 = vsub.f32 %v11345_v44, %v11346_v27 }
 0xe53   :  { %27435 = vmatprep.subr.bf16.mxu1 %v27434_v46 }
 0xe54   :  { %v10737_v51 = vsub.f32 %v10665_v49, %v10736_v50  ;;  %v11340_v49 = vsub.f32 %v11338_v43, %v11339_v21 }
 0xe56   :  { %v10738_v52 = vand.u32 4294901760, %v10737_v51 }
 0xe58   :  { %v10739_v53 = vsub.f32 %v10737_v51, %v10738_v52 }
 0xe5a   :  { %v10740_v54 = vand.u32 4294901760, %v10739_v53  ;;  %v27442_v53 = vpack.c.bf16 %v11331_v37, %v11324_v35  ;;  %v11879_v37 = vsub.f32 %v11772_v23, %v11785_v24 }
 0xe5c   :  { %26192 = vmatprep.mubr.f32.mxu0 %v10740_v54  ;;  %v27446_v54 = vpack.c.bf16 %v11345_v44, %v11338_v43 }
 0xee9   :  { %v10658_v59 = vpop.f32.mrb[16].mxu0 }
 0xeea   :  { %v10668_v60 = vsel %vm1841_vm2, %v10658_v59, 0  ;;  %v26189_v61 = vpop.f32.mrb[17].mxu0 }
 0xeeb   :  { %v10746_v62 = vand.u32 4294901760, %v10668_v60 }
 0xeed   :  { %v10747_v63 = vsub.f32 %v10668_v60, %v10746_v62 }
 0xeef   :  { %v10748_v48 = vand.u32 4294901760, %v10747_v63 }
 0xef1   :  { %v10749_v0 = vsub.f32 %v10747_v63, %v10748_v48 }
 0xef3   :  { %v10750_v2 = vand.u32 4294901760, %v10749_v0 }
 0xef5   :  { %26193 = vmatmul.mubr.f32.vlgmr.msra.gmra.mrb[10].mxu0 %v10750_v2  ;;  %v24511_v2 = vld [vmem:[%s30279_s13] ss:$0 sm:$0xff] }
 0xef6   :  { %26197 = vmatprep.mubr.f32.mxu0 %v10736_v50  ;;  %26196 = vmatpush3.msra.mxu0 %v10761_v58 }
 0xef7   :  { %26200 = vmatprep.subr.mxu0 %v10758_v55 }
 0xefd   :  { %26198 = vmatmul.mubr.f32.vlgmr.msra.gmra.mrb[10].mxu0 %v10746_v62 }
 0xefe   :  { %26202 = vmatprep.mubr.f32.mxu0 %v10737_v51  ;;  %26201 = vmatpush3.msra.mxu0 %v10758_v55  ;;  %v11348_v51 = vand.u32 4294901760, %v11347_v42 }
 0xeff   :  { %26205 = vmatprep.subr.mxu0 %v10671_v26 }
 0xf05   :  { %26203 = vmatmul.mubr.f32.vlgmr.msra.gmra.mrb[10].mxu0 %v10747_v63 }
 0xf06   :  { %26207 = vmatprep.mubr.f32.mxu0 %v10738_v52  ;;  %26206 = vmatpush3.msra.mxu0 %v10671_v26 }
 0xf07   :  { %26210 = vmatprep.subr.mxu0 %v10759_v56 }
 0xf0d   :  { %26208 = vmatmul.mubr.f32.vlgmr.msra.gmra.mrb[10].mxu0 %v10748_v48 }
 0xf0e   :  { %26212 = vmatprep.mubr.f32.mxu0 %v10736_v50  ;;  %26211 = vmatpush3.msra.mxu0 %v10759_v56 }
 0xf0f   :  { %26215 = vmatprep.subr.mxu0 %v10671_v26 }
 0xf15   :  { %26213 = vmatmul.mubr.f32.vlgmr.msra.gmra.mrb[10].mxu0 %v10746_v62 }
 0xf16   :  { %26217 = vmatprep.mubr.f32.mxu0 %v10736_v50  ;;  %26216 = vmatpush3.msra.mxu0 %v10671_v26  ;;  %v11341_v50 = vand.u32 4294901760, %v11340_v49  ;;  %v27462_v26 = vpack.c.bf16 %v11346_v27, %v11339_v21  ;;  %v11888_v27 = vsub.f32 %v11886_v40, %v11887_v45 }
 0xf18   :  { %v27438_v52 = vpack.c.bf16 %v11348_v51, %v11341_v50  ;;  %v11889_v42 = vand.u32 4294901760, %v11888_v27 }
 0xf1d   :  { %26218 = vmatmul.mubr.f32.vlgmr.msra.gmra.mrb[10].mxu0 %v10746_v62  ;;  %v24510_v62 = vld [vmem:[%s30278_s12] ss:$0 sm:$0xff] }
 0xff0   :  { %v26219_v6 = vpop.f32.mrb[10].mxu0 }
 0xff1   :  { %v11162_v11 = vadd.f32 %v26219_v6, %v28834_v4  ;;  %v11149_v12 = vpop.f32.mrb[11].mxu0 }
 0xff2   :  { %v11161_v15 = vadd.f32 %v11149_v12, %v28832_v3 }
 0xff3   :  { %v29507_v13 = vadd.f32 %v24509_v10, %v11162_v11 }
 0xff4   :  { %v29509_v16 = vadd.f32 %v24509_v10, %v11161_v15 }
 0xff5   :  { %v11177_v17 = vsel %vm174_vm0, %v29507_v13, 0.0 }
 0xff6   :  { %11178 = vadd.xlane.f32.xlu0 %v11177_v17  ;;  %v11174_v18 = vsel %vm174_vm0, %v29509_v16, 0.0 }
 0xff7   :  { %11175 = vadd.xlane.f32.xlu1 %v11174_v18 }
0x1083   :  { %v11179_v5 = vpop.xlane.xlu0 %11178 }
0x1084   :  { %v11181_v19 = vmul.f32 0.03125, %v11179_v5  ;;  %v11176_v8 = vpop.xlane.xlu1 %11175 }
0x1085   :  { %v11180_v1 = vmul.f32 0.03125, %v11176_v8 }
0x1086   :  { %v11183_v4 = vsub.f32 %v29507_v13, %v11181_v19 }
0x1087   :  { %v11182_v3 = vsub.f32 %v29509_v16, %v11180_v1 }
0x1088   :  { %v11185_v41 = vmul.f32 %v11183_v4, %v11183_v4 }
0x1089   :  { %v11184_v14 = vmul.f32 %v11182_v3, %v11182_v3 }
0x108a   :  { %v11189_v36 = vsel %vm174_vm0, %v11185_v41, 0.0 }
0x108b   :  { %11190 = vadd.xlane.f32.xlu1 %v11189_v36  ;;  %v11186_v22 = vsel %vm174_vm0, %v11184_v14, 0.0 }
0x108c   :  { %11187 = vadd.xlane.f32.xlu0 %v11186_v22  ;;  %v11771_v22 = vld [vmem:[#allocation14] sm:$0xff] }
0x108d   :  { %v11782_v7 = vand.u32 4294901760, %v11771_v22 }
0x108f   :  { %v29543_v32 = vpack.c.bf16 %v11785_v24, %v11782_v7  ;;  %v11872_v35 = vsub.f32 %v11771_v22, %v11782_v7 }
0x1091   :  { %27475 = vmatprep.subr.bf16.mxu0 %v29543_v32  ;;  %v11873_v38 = vand.u32 4294901760, %v11872_v35 }
0x1092   :  { %27477 = vmatpush3.bf16.msra.mxu0 %v29543_v32 }
0x1093   :  { %v11874_v39 = vsub.f32 %v11872_v35, %v11873_v38 }
0x1095   :  { %v11875_v44 = vand.u32 4294901760, %v11874_v39 }
0x1118   :  { %v11191_v55 = vpop.xlane.xlu1 %11190 }
0x1119   :  { %v11193_v56 = vmul.f32 0.03125, %v11191_v55  ;;  %v11188_v57 = vpop.xlane.xlu0 %11187 }
0x111a   :  { %v11192_v58 = vmul.f32 0.03125, %v11188_v57 }
0x111b   :  { %v11195_v59 = vadd.f32 1e-05, %v11193_v56 }
0x111c   :  { %v11194_v60 = vadd.f32 1e-05, %v11192_v58 }
0x111d   :  { %28342 = vrsqrt.f32 %v11195_v59 }
0x111e   :  { %28344 = vrsqrt.f32 %v11194_v60 }
0x1127   :  { %v28343_v61 = vpop.eup %28342 }
0x1128   :  { %v28345_v63 = vpop.eup %28344  ;;  %v11199_v48 = vmul.f32 %v28343_v61, %v11183_v4 }
0x1129   :  { %v11198_v0 = vmul.f32 %v28345_v63, %v11182_v3 }
0x112a   :  { %v11207_v6 = vmul.f32 %v24510_v62, %v11199_v48 }
0x112b   :  { %v11206_v10 = vmul.f32 %v24510_v62, %v11198_v0 }
0x112c   :  { %v11215_v11 = vadd.f32 %v24511_v2, %v11207_v6 }
0x112d   :  { %v11214_v12 = vadd.f32 %v24511_v2, %v11206_v10 }
0x112e   :  { %v11231_v15 = vsel %vm174_vm0, %v11215_v11, 0 }
0x112f   :  { %v11228_v17 = vsel %vm174_vm0, %v11214_v12, 0  ;;  %v11312_v18 = vand.u32 4294901760, %v11231_v15 }
0x1130   :  { %v11302_v5 = vand.u32 4294901760, %v11228_v17 }
0x1131   :  { %v11313_v19 = vsub.f32 %v11231_v15, %v11312_v18 }
0x1132   :  { %v11303_v8 = vsub.f32 %v11228_v17, %v11302_v5 }
0x1133   :  { %v11314_v1 = vand.u32 4294901760, %v11313_v19 }
0x1134   :  { %v11304_v41 = vand.u32 4294901760, %v11303_v8 }
0x1135   :  { %v11315_v4 = vsub.f32 %v11313_v19, %v11314_v1 }
0x1136   :  { %v11305_v3 = vsub.f32 %v11303_v8, %v11304_v41 }
0x1137   :  { %v11316_v36 = vand.u32 4294901760, %v11315_v4 }
0x1138   :  { %v11306_v14 = vand.u32 4294901760, %v11305_v3 }
0x113a   :  { %26228 = vmatprep.mubr.f32.mxu1 %v11306_v14 }
0x113b   :  { %26229 = vmatmul.mubr.f32.vlgmr.msra.gmra.mrb[24].mxu1 %v11316_v36  ;;  %v24513_v36 = vld [vmem:[%s30283_s17] ss:$0 sm:$0xff] }
0x113c   :  { %27437 = vmatpush3.bf16.msra.mxu1 %v27434_v46  ;;  %26239 = vmatprep.mubr.f32.mxu1 %v11302_v5  ;;  %v11895_v46 = vsub.f32 %v11893_v20, %v11894_v28 }
0x113d   :  { %27439 = vmatprep.subr.bf16.mxu1 %v27438_v52 }
0x113e   :  { %v11896_v50 = vand.u32 4294901760, %v11895_v46  ;;  %v12369_v46 = vld [vmem:[#allocation7 + $0x30] sm:$0xff] }
0x1140   :  { %27441 = vmatpush3.bf16.msra.mxu1 %v27438_v52  ;;  %v27486_v51 = vpack.c.bf16 %v11896_v50, %v11889_v42  ;;  %v27490_v52 = vpack.c.bf16 %v11879_v37, %v11872_v35  ;;  %v12916_v42 = vld [vmem:[#allocation8 + $0x30] sm:$0xff] }
0x1141   :  { %27443 = vmatprep.subr.bf16.mxu1 %v27442_v53 }
0x1143   :  { %26240 = vmatmul.mubr.f32.vlgmr.msra.gmra.mrb[24].mxu1 %v11312_v18 }
0x1144   :  { %27445 = vmatpush3.bf16.msra.mxu1 %v27442_v53  ;;  %26250 = vmatprep.mubr.f32.mxu1 %v11303_v8  ;;  %v27494_v53 = vpack.c.bf16 %v11893_v20, %v11886_v40  ;;  %v12367_v40 = vld [vmem:[#allocation7 + $0x20] sm:$0xff]  ;;  %v12368_v20 = vld [vmem:[#allocation7 + $0x28] sm:$0xff] }
0x1145   :  { %27447 = vmatprep.subr.bf16.mxu1 %v27446_v54 }
0x1148   :  { %27449 = vmatpush3.bf16.msra.mxu1 %v27446_v54 }
0x1149   :  { %27451 = vmatprep.subr.bf16.mxu1 %v29519_v33 }
0x114b   :  { %26251 = vmatmul.mubr.f32.vlgmr.msra.gmra.mrb[24].mxu1 %v11313_v19 }
0x114c   :  { %27453 = vmatpush3.bf16.msra.mxu1 %v29519_v33  ;;  %26261 = vmatprep.mubr.f32.mxu1 %v11304_v41 }
0x114d   :  { %27455 = vmatprep.subr.bf16.mxu1 %v29521_v31 }
0x1150   :  { %27457 = vmatpush3.bf16.msra.mxu1 %v29521_v31 }
0x1151   :  { %27459 = vmatprep.subr.bf16.mxu1 %v27458_v47 }
0x1153   :  { %26262 = vmatmul.mubr.f32.vlgmr.msra.gmra.mrb[24].mxu1 %v11314_v1 }
0x1154   :  { %27461 = vmatpush3.bf16.msra.mxu1 %v27458_v47  ;;  %26272 = vmatprep.mubr.f32.mxu1 %v11302_v5  ;;  %v27510_v47 = vpack.c.bf16 %v11894_v28, %v11887_v45  ;;  %v12914_v45 = vld [vmem:[#allocation8 + $0x20] sm:$0xff]  ;;  %v12915_v28 = vld [vmem:[#allocation8 + $0x28] sm:$0xff] }
0x1155   :  { %27463 = vmatprep.subr.bf16.mxu1 %v27462_v26  ;;  %v12930_v27 = vand.u32 4294901760, %v12915_v28 }
0x1158   :  { %27465 = vmatpush3.bf16.msra.mxu1 %v27462_v26  ;;  %v24512_v26 = vld [vmem:[%s30281_s15] ss:$0 sm:$0xff] }
0x1159   :  { %27467 = vmatprep.subr.bf16.mxu1 %v29519_v33 }
0x115b   :  { %26273 = vmatmul.mubr.f32.vlgmr.msra.gmra.mrb[24].mxu1 %v11312_v18 }
0x115c   :  { %27469 = vmatpush3.bf16.msra.mxu1 %v29519_v33  ;;  %26283 = vmatprep.mubr.f32.mxu1 %v11302_v5  ;;  %v29546_v33 = vpack.c.bf16 %v11791_v34, %v11788_v30 }
0x115d   :  { %27471 = vmatprep.subr.bf16.mxu1 %v29521_v31 }
0x115e   :  { %27479 = vmatprep.subr.bf16.mxu0 %v29546_v33 }
0x115f   :  { %27481 = vmatpush3.bf16.msra.mxu0 %v29546_v33 }
0x1160   :  { %27473 = vmatpush3.bf16.msra.mxu1 %v29521_v31  ;;  %v11880_v31 = vand.u32 4294901760, %v11879_v37 }
0x1162   :  { %v11881_v43 = vsub.f32 %v11879_v37, %v11880_v31  ;;  %v27506_v54 = vpack.c.bf16 %v11880_v31, %v11873_v38 }
0x1163   :  { %26284 = vmatmul.mubr.f32.vlgmr.msra.gmra.mrb[24].mxu1 %v11312_v18 }
0x1164   :  { %v11882_v21 = vand.u32 4294901760, %v11881_v43  ;;  %v12386_v43 = vand.u32 4294901760, %v12367_v40 }
0x1166   :  { %v27482_v49 = vpack.c.bf16 %v11882_v21, %v11875_v44  ;;  %v12389_v44 = vand.u32 4294901760, %v12368_v20  ;;  %v12927_v21 = vand.u32 4294901760, %v12914_v45 }
0x1168   :  { %27483 = vmatprep.subr.bf16.mxu0 %v27482_v49  ;;  %v29589_v50 = vpack.c.bf16 %v12389_v44, %v12386_v43 }
0x116a   :  { %27523 = vmatprep.subr.bf16.mxu1 %v29589_v50 }
0x116b   :  { %27525 = vmatpush3.bf16.msra.mxu1 %v29589_v50 }
0x1236   :  { %v26285_v55 = vpop.f32.mrb[24].mxu1 }
0x1237   :  { %v27770_v56 = vadd.f32 %v26285_v55, %v24512_v26  ;;  %v11751_v57 = vpop.f32.mrb[25].mxu1  ;;  %v12476_v55 = vsub.f32 %v12367_v40, %v12386_v43 }
0x1238   :  { %v27771_v58 = vadd.f32 %v24512_v26, %v11751_v57 }
0x1239   :  { %v11764_v59 = vmul.f32 0.70710677, %v27770_v56  ;;  %v11762_v63 = vmul.f32 0.5, %v27770_v56  ;;  %v12483_v56 = vsub.f32 %v12368_v20, %v12389_v44 }
0x123a   :  { %v11763_v60 = vmul.f32 0.70710677, %v27771_v58  ;;  %v11761_v0 = vmul.f32 0.5, %v27771_v58  ;;  %v13017_v58 = vsub.f32 %v12914_v45, %v12927_v21 }
0x123b   :  { %28346 = verf.f32 %v11764_v59  ;;  %v13024_v59 = vsub.f32 %v12915_v28, %v12930_v27 }
0x123c   :  { %28348 = verf.f32 %v11763_v60 }
0x1245   :  { %v28347_v61 = vpop.eup %28346 }
0x1246   :  { %v28349_v62 = vpop.eup %28348  ;;  %v11768_v48 = vadd.f32 1.0, %v28347_v61  ;;  %v12477_v61 = vand.u32 4294901760, %v12476_v55 }
0x1247   :  { %v11767_v2 = vadd.f32 1.0, %v28349_v62  ;;  %v12484_v62 = vand.u32 4294901760, %v12483_v56 }
0x1248   :  { %v11770_v6 = vmul.f32 %v11768_v48, %v11762_v63  ;;  %v13018_v63 = vand.u32 4294901760, %v13017_v58  ;;  %v13025_v48 = vand.u32 4294901760, %v13024_v59 }
0x1249   :  { %v11769_v10 = vmul.f32 %v11767_v2, %v11761_v0  ;;  %v29605_v20 = vpack.c.bf16 %v12484_v62, %v12477_v61 }
0x124a   :  { %v11779_v11 = vsel %vm174_vm0, %v11770_v6, 0  ;;  %v12478_v6 = vsub.f32 %v12476_v55, %v12477_v61  ;;  %v29607_v43 = vpack.c.bf16 %v13025_v48, %v13018_v63 }
0x124b   :  { %v11860_v12 = vand.u32 4294901760, %v11779_v11  ;;  %v11776_v15 = vsel %vm174_vm0, %v11769_v10, 0  ;;  %v12485_v10 = vsub.f32 %v12483_v56, %v12484_v62 }
0x124c   :  { %v11850_v17 = vand.u32 4294901760, %v11776_v15 }
0x124d   :  { %v11861_v18 = vsub.f32 %v11779_v11, %v11860_v12 }
0x124e   :  { %v11851_v5 = vsub.f32 %v11776_v15, %v11850_v17  ;;  %v13019_v15 = vsub.f32 %v13017_v58, %v13018_v63 }
0x124f   :  { %v11862_v19 = vand.u32 4294901760, %v11861_v18 }
0x1250   :  { %v11852_v8 = vand.u32 4294901760, %v11851_v5 }
0x1251   :  { %v11863_v1 = vsub.f32 %v11861_v18, %v11862_v19 }
0x1252   :  { %v11853_v41 = vsub.f32 %v11851_v5, %v11852_v8 }
0x1253   :  { %v11864_v3 = vand.u32 4294901760, %v11863_v1 }
0x1254   :  { %v11854_v4 = vand.u32 4294901760, %v11853_v41 }
0x1256   :  { %26294 = vmatprep.mubr.f32.mxu0 %v11854_v4  ;;  %v13020_v4 = vand.u32 4294901760, %v13019_v15 }
0x1257   :  { %26295 = vmatmul.mubr.f32.vlgmr.msra.gmra.mrb[18].mxu0 %v11864_v3 }
0x1258   :  { %27485 = vmatpush3.bf16.msra.mxu0 %v27482_v49  ;;  %26305 = vmatprep.mubr.f32.mxu0 %v11850_v17  ;;  %v12370_v49 = vld [vmem:[#allocation7 + $0x38] sm:$0xff] }
0x1259   :  { %27487 = vmatprep.subr.bf16.mxu0 %v27486_v51 }
0x125c   :  { %27489 = vmatpush3.bf16.msra.mxu0 %v27486_v51  ;;  %v12392_v51 = vand.u32 4294901760, %v12369_v46 }
0x125d   :  { %27491 = vmatprep.subr.bf16.mxu0 %v27490_v52 }
0x125e   :  { %v12490_v0 = vsub.f32 %v12369_v46, %v12392_v51 }
0x125f   :  { %26306 = vmatmul.mubr.f32.vlgmr.msra.gmra.mrb[18].mxu0 %v11860_v12 }
0x1260   :  { %27493 = vmatpush3.bf16.msra.mxu0 %v27490_v52  ;;  %26316 = vmatprep.mubr.f32.mxu0 %v11851_v5  ;;  %v12395_v52 = vand.u32 4294901760, %v12370_v49 }
0x1261   :  { %27495 = vmatprep.subr.bf16.mxu0 %v27494_v53 }
0x1262   :  { %v29594_v57 = vpack.c.bf16 %v12395_v52, %v12392_v51  ;;  %v12497_v2 = vsub.f32 %v12370_v49, %v12395_v52  ;;  %v24516_v52 = vld [vmem:[%s30295_s10 + $0x1] ss:$0 sm:$0xff] }
0x1264   :  { %27497 = vmatpush3.bf16.msra.mxu0 %v27494_v53  ;;  %v12917_v53 = vld [vmem:[#allocation8 + $0x38] sm:$0xff]  ;;  %27527 = vmatprep.subr.bf16.mxu1 %v29594_v57  ;;  %v12498_v5 = vand.u32 4294901760, %v12497_v2 }
0x1265   :  { %27499 = vmatprep.subr.bf16.mxu0 %v29543_v32  ;;  %v12936_v26 = vand.u32 4294901760, %v12917_v53  ;;  %27529 = vmatpush3.bf16.msra.mxu1 %v29594_v57 }
0x1267   :  { %26317 = vmatmul.mubr.f32.vlgmr.msra.gmra.mrb[18].mxu0 %v11861_v18  ;;  %v12491_v18 = vand.u32 4294901760, %v12490_v0 }
0x1268   :  { %27501 = vmatpush3.bf16.msra.mxu0 %v29543_v32  ;;  %26327 = vmatprep.mubr.f32.mxu0 %v11852_v8  ;;  %v12486_v8 = vand.u32 4294901760, %v12485_v10 }
0x1269   :  { %27503 = vmatprep.subr.bf16.mxu0 %v29546_v33  ;;  %v29609_v44 = vpack.c.bf16 %v12498_v5, %v12491_v18 }
0x126c   :  { %27505 = vmatpush3.bf16.msra.mxu0 %v29546_v33 }
0x126d   :  { %27507 = vmatprep.subr.bf16.mxu0 %v27506_v54 }
0x126f   :  { %26328 = vmatmul.mubr.f32.vlgmr.msra.gmra.mrb[18].mxu0 %v11862_v19  ;;  %v12479_v19 = vand.u32 4294901760, %v12478_v6 }
0x1270   :  { %27509 = vmatpush3.bf16.msra.mxu0 %v27506_v54  ;;  %26338 = vmatprep.mubr.f32.mxu0 %v11850_v17  ;;  %v12933_v54 = vand.u32 4294901760, %v12916_v42 }
0x1271   :  { %27511 = vmatprep.subr.bf16.mxu0 %v27510_v47 }
0x1272   :  { %v29598_v60 = vpack.c.bf16 %v12936_v26, %v12933_v54  ;;  %v13031_v11 = vsub.f32 %v12916_v42, %v12933_v54 }
0x1274   :  { %27513 = vmatpush3.bf16.msra.mxu0 %v27510_v47  ;;  %v29591_v47 = vpack.c.bf16 %v12930_v27, %v12927_v21  ;;  %v13032_v1 = vand.u32 4294901760, %v13031_v11 }
0x1275   :  { %27515 = vmatprep.subr.bf16.mxu0 %v29543_v32 }
0x1277   :  { %26339 = vmatmul.mubr.f32.vlgmr.msra.gmra.mrb[18].mxu0 %v11860_v12 }
0x1278   :  { %27517 = vmatpush3.bf16.msra.mxu0 %v29543_v32  ;;  %26349 = vmatprep.mubr.f32.mxu0 %v11850_v17  ;;  %v13026_v17 = vsub.f32 %v13024_v59, %v13025_v48 }
0x1279   :  { %27519 = vmatprep.subr.bf16.mxu0 %v29546_v33 }
0x127a   :  { %v13027_v3 = vand.u32 4294901760, %v13026_v17  ;;  %v13455_v17 = vld [vmem:[#allocation10 + $0x20] sm:$0xff] }
0x127c   :  { %27521 = vmatpush3.bf16.msra.mxu0 %v29546_v33 }
0x127d   :  { %27571 = vmatprep.subr.bf16.mxu0 %v29591_v47 }
0x127f   :  { %26350 = vmatmul.mubr.f32.vlgmr.msra.gmra.mrb[18].mxu0 %v11860_v12  ;;  %v13038_v12 = vsub.f32 %v12917_v53, %v12936_v26  ;;  %v24517_v26 = vld [vmem:[%s30269_s3 + $0x1] ss:$0 sm:$0xff] }
0x1280   :  { %27573 = vmatpush3.bf16.msra.mxu0 %v29591_v47 }
0x1281   :  { %27575 = vmatprep.subr.bf16.mxu0 %v29598_v60  ;;  %v13039_v41 = vand.u32 4294901760, %v13038_v12  ;;  %v27590_v40 = vpack.c.bf16 %v13038_v12, %v13031_v11 }
0x1283   :  { %v29611_v45 = vpack.c.bf16 %v13039_v41, %v13032_v1 }
0x1284   :  { %27577 = vmatpush3.bf16.msra.mxu0 %v29598_v60 }
0x1352   :  { %v26351_v14 = vpop.f32.mrb[18].mxu0 }
0x1353   :  { %v12310_v22 = vadd.f32 %v26351_v14, %v29507_v13  ;;  %v12299_v23 = vpop.f32.mrb[19].mxu0  ;;  %v12492_v14 = vsub.f32 %v12490_v0, %v12491_v18  ;;  %v13456_v18 = vld [vmem:[#allocation10 + $0x28] sm:$0xff] }
0x1354   :  { %v12309_v7 = vadd.f32 %v12299_v23, %v29509_v16  ;;  %v13033_v23 = vsub.f32 %v13031_v11, %v13032_v1  ;;  %v13458_v1 = vld [vmem:[#allocation10 + $0x38] sm:$0xff] }
0x1355   :  { %v29569_v24 = vadd.f32 %v24513_v36, %v12310_v22  ;;  %v27530_v22 = vpack.c.bf16 %v12486_v8, %v12479_v19  ;;  %v13471_v19 = vand.u32 4294901760, %v13456_v18  ;;  %v13457_v8 = vld [vmem:[#allocation10 + $0x30] sm:$0xff] }
0x1356   :  { %v29571_v25 = vadd.f32 %v24513_v36, %v12309_v7  ;;  %v12499_v36 = vsub.f32 %v12497_v2, %v12498_v5  ;;  %v13040_v7 = vsub.f32 %v13038_v12, %v13039_v41  ;;  %v13468_v5 = vand.u32 4294901760, %v13455_v17 }
0x1357   :  { %v12327_v29 = vsel %vm174_vm0, %v29569_v24, 0.0  ;;  %27531 = vmatprep.subr.bf16.mxu1 %v27530_v22  ;;  %v13474_v41 = vand.u32 4294901760, %v13457_v8 }
0x1358   :  { %12328 = vadd.xlane.f32.xlu1 %v12327_v29  ;;  %v12324_v32 = vsel %vm174_vm0, %v29571_v25, 0.0  ;;  %v27578_v29 = vpack.c.bf16 %v13027_v3, %v13020_v4  ;;  %v13477_v4 = vand.u32 4294901760, %v13458_v1  ;;  %v29676_v3 = vsub.f32 %v13455_v17, %v13468_v5 }
0x1359   :  { %12325 = vadd.xlane.f32.xlu0 %v12324_v32  ;;  %v12493_v32 = vand.u32 4294901760, %v12492_v14  ;;  %v29678_v14 = vsub.f32 %v13456_v18, %v13471_v19 }
0x135a   :  { %27579 = vmatprep.subr.bf16.mxu0 %v27578_v29 }
0x13e5   :  { %v12329_v30 = vpop.xlane.xlu1 %12328 }
0x13e6   :  { %v12331_v34 = vmul.f32 0.03125, %v12329_v30  ;;  %v12326_v35 = vpop.xlane.xlu0 %12325  ;;  %v12500_v30 = vand.u32 4294901760, %v12499_v36  ;;  %v13559_v36 = vand.u32 4294901760, %v29676_v3 }
0x13e7   :  { %v12330_v37 = vmul.f32 0.03125, %v12326_v35  ;;  %v13041_v35 = vand.u32 4294901760, %v13040_v7  ;;  %v13579_v7 = vsub.f32 %v13458_v1, %v13477_v4  ;;  %v24523_v1 = vld [vmem:[%s30275_s9 + $0x1] ss:$0 sm:$0xff] }
0x13e8   :  { %v29578_v13 = vsub.f32 %v29569_v24, %v12331_v34  ;;  %v13034_v34 = vand.u32 4294901760, %v13033_v23  ;;  %v13572_v23 = vsub.f32 %v13457_v8, %v13474_v41 }
0x13e9   :  { %v29581_v16 = vsub.f32 %v29571_v25, %v12330_v37  ;;  %v27534_v37 = vpack.c.bf16 %v12500_v30, %v12493_v32  ;;  %v13560_v32 = vsub.f32 %v29676_v3, %v13559_v36 }
0x13ea   :  { %v12335_v33 = vmul.f32 %v29578_v13, %v29578_v13 }
0x13eb   :  { %v12334_v38 = vmul.f32 %v29581_v16, %v29581_v16 }
0x13ec   :  { %v12339_v31 = vsel %vm174_vm0, %v12335_v33, 0.0  ;;  %v27582_v33 = vpack.c.bf16 %v13041_v35, %v13034_v34  ;;  %v13573_v34 = vand.u32 4294901760, %v13572_v23  ;;  %v13580_v35 = vand.u32 4294901760, %v13579_v7 }
0x13ed   :  { %12340 = vadd.xlane.f32.xlu1 %v12339_v31  ;;  %v12336_v39 = vsel %vm174_vm0, %v12334_v38, 0.0  ;;  %v27538_v38 = vpack.c.bf16 %v12483_v56, %v12476_v55  ;;  %v27586_v31 = vpack.c.bf16 %v13024_v59, %v13017_v58 }
0x13ee   :  { %12337 = vadd.xlane.f32.xlu0 %v12336_v39  ;;  %v27542_v39 = vpack.c.bf16 %v12497_v2, %v12490_v0 }
0x147a   :  { %v12341_v28 = vpop.xlane.xlu1 %12340 }
0x147b   :  { %v12343_v21 = vmul.f32 0.03125, %v12341_v28  ;;  %v12338_v27 = vpop.xlane.xlu0 %12337  ;;  %v24521_v28 = vld [vmem:[%s30273_s7 + $0x1] ss:$0 sm:$0xff] }
0x147c   :  { %v12342_v46 = vmul.f32 0.03125, %v12338_v27 }
0x147d   :  { %v12345_v49 = vadd.f32 1e-05, %v12343_v21 }
0x147e   :  { %v12344_v42 = vadd.f32 1e-05, %v12342_v46 }
0x147f   :  { %28350 = vrsqrt.f32 %v12345_v49 }
0x1480   :  { %28352 = vrsqrt.f32 %v12344_v42 }
0x1489   :  { %v28351_v51 = vpop.eup %28350 }
0x148a   :  { %v28353_v53 = vpop.eup %28352  ;;  %v12349_v54 = vmul.f32 %v28351_v51, %v29578_v13 }
0x148b   :  { %v12348_v55 = vmul.f32 %v28353_v53, %v29581_v16 }
0x148c   :  { %v12357_v56 = vmul.f32 %v24516_v52, %v12349_v54 }
0x148d   :  { %v12356_v58 = vmul.f32 %v24516_v52, %v12348_v55 }
0x148e   :  { %v12365_v59 = vadd.f32 %v24517_v26, %v12357_v56 }
0x148f   :  { %v12364_v61 = vadd.f32 %v24517_v26, %v12356_v58 }
0x1490   :  { %v12383_v62 = vsel %vm174_vm0, %v12365_v59, 0 }
0x1491   :  { %v29622_v63 = vand.u32 4294901760, %v12383_v62  ;;  %v12380_v48 = vsel %vm174_vm0, %v12364_v61, 0 }
0x1492   :  { %v29625_v0 = vand.u32 4294901760, %v12380_v48 }
0x1493   :  { %v29628_v13 = vsub.f32 %v12383_v62, %v29622_v63 }
0x1494   :  { %v29631_v2 = vsub.f32 %v12380_v48, %v29625_v0 }
0x1495   :  { %v29634_v16 = vand.u32 4294901760, %v29628_v13 }
0x1496   :  { %v29637_v6 = vand.u32 4294901760, %v29631_v2 }
0x1497   :  { %v12467_v10 = vsub.f32 %v29628_v13, %v29634_v16 }
0x1498   :  { %v12457_v11 = vsub.f32 %v29631_v2, %v29637_v6 }
0x1499   :  { %v29645_v15 = vand.u32 4294901760, %v12467_v10 }
0x149a   :  { %v29643_v12 = vand.u32 4294901760, %v12457_v11 }
0x149c   :  { %26360 = vmatprep.mubr.f32.mxu1 %v29643_v12  ;;  %26426 = vmatprep.mubr.f32.mxu0 %v29643_v12 }
0x149d   :  { %26361 = vmatmul.mubr.f32.vlgmr.msra.gmra.mrb[26].mxu1 %v29645_v15  ;;  %26427 = vmatmul.mubr.f32.vlgmr.msra.gmra.mrb[20].mxu0 %v29645_v15 }
0x149e   :  { %27533 = vmatpush3.bf16.msra.mxu1 %v27530_v22  ;;  %26371 = vmatprep.mubr.f32.mxu1 %v29625_v0  ;;  %v13566_v22 = vand.u32 4294901760, %v29678_v14 }
0x149f   :  { %27581 = vmatpush3.bf16.msra.mxu0 %v27578_v29  ;;  %26437 = vmatprep.mubr.f32.mxu0 %v29625_v0  ;;  %v27618_v29 = vpack.c.bf16 %v13471_v19, %v13468_v5 }
0x14a0   :  { %27535 = vmatprep.subr.bf16.mxu1 %v27534_v37  ;;  %27583 = vmatprep.subr.bf16.mxu0 %v27582_v33  ;;  %v13567_v30 = vsub.f32 %v29678_v14, %v13566_v22 }
0x14a2   :  { %27537 = vmatpush3.bf16.msra.mxu1 %v27534_v37  ;;  %v13561_v37 = vand.u32 4294901760, %v13560_v32 }
0x14a3   :  { %27585 = vmatpush3.bf16.msra.mxu0 %v27582_v33  ;;  %27539 = vmatprep.subr.bf16.mxu1 %v27538_v38  ;;  %v13574_v33 = vsub.f32 %v13572_v23, %v13573_v34 }
0x14a4   :  { %27587 = vmatprep.subr.bf16.mxu0 %v27586_v31 }
0x14a5   :  { %26372 = vmatmul.mubr.f32.vlgmr.msra.gmra.mrb[26].mxu1 %v29622_v63 }
0x14a6   :  { %27541 = vmatpush3.bf16.msra.mxu1 %v27538_v38  ;;  %26438 = vmatmul.mubr.f32.vlgmr.msra.gmra.mrb[20].mxu0 %v29622_v63  ;;  %v13581_v38 = vsub.f32 %v13579_v7, %v13580_v35 }
0x14a7   :  { %26382 = vmatprep.mubr.f32.mxu1 %v29631_v2  ;;  %27589 = vmatpush3.bf16.msra.mxu0 %v27586_v31 }
0x14a8   :  { %26448 = vmatprep.mubr.f32.mxu0 %v29631_v2  ;;  %27543 = vmatprep.subr.bf16.mxu1 %v27542_v39 }
0x14a9   :  { %27591 = vmatprep.subr.bf16.mxu0 %v27590_v40 }
0x14aa   :  { %27545 = vmatpush3.bf16.msra.mxu1 %v27542_v39  ;;  %v13582_v39 = vand.u32 4294901760, %v13581_v38 }
0x14ab   :  { %27593 = vmatpush3.bf16.msra.mxu0 %v27590_v40  ;;  %27547 = vmatprep.subr.bf16.mxu1 %v29589_v50  ;;  %v27634_v40 = vpack.c.bf16 %v29678_v14, %v29676_v3 }
0x14ac   :  { %27595 = vmatprep.subr.bf16.mxu0 %v29591_v47 }
0x14ad   :  { %26383 = vmatmul.mubr.f32.vlgmr.msra.gmra.mrb[26].mxu1 %v29628_v13 }
0x14ae   :  { %27549 = vmatpush3.bf16.msra.mxu1 %v29589_v50  ;;  %26449 = vmatmul.mubr.f32.vlgmr.msra.gmra.mrb[20].mxu0 %v29628_v13 }
0x14af   :  { %26393 = vmatprep.mubr.f32.mxu1 %v29637_v6  ;;  %27597 = vmatpush3.bf16.msra.mxu0 %v29591_v47 }
0x14b0   :  { %26459 = vmatprep.mubr.f32.mxu0 %v29637_v6  ;;  %27551 = vmatprep.subr.bf16.mxu1 %v29594_v57 }
0x14b1   :  { %27599 = vmatprep.subr.bf16.mxu0 %v29598_v60 }
0x14b2   :  { %27553 = vmatpush3.bf16.msra.mxu1 %v29594_v57 }
0x14b3   :  { %27601 = vmatpush3.bf16.msra.mxu0 %v29598_v60  ;;  %27555 = vmatprep.subr.bf16.mxu1 %v29605_v20 }
0x14b4   :  { %27603 = vmatprep.subr.bf16.mxu0 %v29607_v43 }
0x14b5   :  { %26394 = vmatmul.mubr.f32.vlgmr.msra.gmra.mrb[26].mxu1 %v29634_v16 }
0x14b6   :  { %27557 = vmatpush3.bf16.msra.mxu1 %v29605_v20  ;;  %26460 = vmatmul.mubr.f32.vlgmr.msra.gmra.mrb[20].mxu0 %v29634_v16  ;;  %v27638_v20 = vpack.c.bf16 %v13579_v7, %v13572_v23 }
0x14b7   :  { %26404 = vmatprep.mubr.f32.mxu1 %v29625_v0  ;;  %27605 = vmatpush3.bf16.msra.mxu0 %v29607_v43  ;;  %v27650_v43 = vpack.c.bf16 %v13566_v22, %v13559_v36 }
0x14b8   :  { %26470 = vmatprep.mubr.f32.mxu0 %v29625_v0  ;;  %27559 = vmatprep.subr.bf16.mxu1 %v29609_v44 }
0x14b9   :  { %27607 = vmatprep.subr.bf16.mxu0 %v29611_v45 }
0x14ba   :  { %27561 = vmatpush3.bf16.msra.mxu1 %v29609_v44  ;;  %v27654_v44 = vpack.c.bf16 %v13580_v35, %v13573_v34 }
0x14bb   :  { %27609 = vmatpush3.bf16.msra.mxu0 %v29611_v45  ;;  %27563 = vmatprep.subr.bf16.mxu1 %v29589_v50  ;;  %v24519_v45 = vld [vmem:[%s30271_s5 + $0x1] ss:$0 sm:$0xff] }
0x14bc   :  { %27611 = vmatprep.subr.bf16.mxu0 %v29591_v47 }
0x14bd   :  { %26405 = vmatmul.mubr.f32.vlgmr.msra.gmra.mrb[26].mxu1 %v29622_v63 }
0x14be   :  { %27565 = vmatpush3.bf16.msra.mxu1 %v29589_v50  ;;  %26471 = vmatmul.mubr.f32.vlgmr.msra.gmra.mrb[20].mxu0 %v29622_v63  ;;  %v27622_v50 = vpack.c.bf16 %v13477_v4, %v13474_v41 }
0x14bf   :  { %26415 = vmatprep.mubr.f32.mxu1 %v29625_v0  ;;  %27613 = vmatpush3.bf16.msra.mxu0 %v29591_v47  ;;  %v13568_v47 = vand.u32 4294901760, %v13567_v30 }
0x14c0   :  { %26481 = vmatprep.mubr.f32.mxu0 %v29625_v0  ;;  %27567 = vmatprep.subr.bf16.mxu1 %v29594_v57 }
0x14c1   :  { %27615 = vmatprep.subr.bf16.mxu0 %v29598_v60  ;;  %v27626_v31 = vpack.c.bf16 %v13568_v47, %v13561_v37 }
0x14c2   :  { %27569 = vmatpush3.bf16.msra.mxu1 %v29594_v57  ;;  %v13575_v57 = vand.u32 4294901760, %v13574_v33 }
0x14c3   :  { %27617 = vmatpush3.bf16.msra.mxu0 %v29598_v60  ;;  %27619 = vmatprep.subr.bf16.mxu1 %v27618_v29 }
0x14c4   :  { %26550 = vmatprep.subr.mxu0 %v28614_v9  ;;  %v27630_v60 = vpack.c.bf16 %v13582_v39, %v13575_v57 }
0x14c5   :  { %26416 = vmatmul.mubr.f32.vlgmr.msra.gmra.mrb[26].mxu1 %v29622_v63 }
0x14c6   :  { %26482 = vmatmul.mubr.f32.vlgmr.msra.gmra.mrb[20].mxu0 %v29622_v63  ;;  %27621 = vmatpush3.bf16.msra.mxu1 %v27618_v29 }
0x14c7   :  { %26492 = vmatprep.mubr.f32.mxu1 %v29643_v12  ;;  %27623 = vmatprep.subr.bf16.mxu1 %v27622_v50 }
0x14c8   :  { %26552 = vmatprep.mubr.msk.f32.mxu0 %vm28615_vm1, %v28614_v9 }
0x14ca   :  { %27625 = vmatpush3.bf16.msra.mxu1 %v27622_v50 }
0x14cb   :  { %27627 = vmatprep.subr.bf16.mxu1 %v27626_v31 }
0x14cd   :  { %26493 = vmatmul.mubr.f32.vlgmr.msra.gmra.mrb[28].mxu1 %v29645_v15 }
0x14ce   :  { %27629 = vmatpush3.bf16.msra.mxu1 %v27626_v31  ;;  %26503 = vmatprep.mubr.f32.mxu1 %v29625_v0 }
0x14cf   :  { %27631 = vmatprep.subr.bf16.mxu1 %v27630_v60 }
0x14d2   :  { %27633 = vmatpush3.bf16.msra.mxu1 %v27630_v60 }
0x14d3   :  { %27635 = vmatprep.subr.bf16.mxu1 %v27634_v40 }
0x14d5   :  { %26504 = vmatmul.mubr.f32.vlgmr.msra.gmra.mrb[28].mxu1 %v29622_v63 }
0x14d6   :  { %27637 = vmatpush3.bf16.msra.mxu1 %v27634_v40  ;;  %26514 = vmatprep.mubr.f32.mxu1 %v29631_v2 }
0x14d7   :  { %27639 = vmatprep.subr.bf16.mxu1 %v27638_v20 }
0x14da   :  { %27641 = vmatpush3.bf16.msra.mxu1 %v27638_v20 }
0x14db   :  { %27643 = vmatprep.subr.bf16.mxu1 %v27618_v29 }
0x14dd   :  { %26515 = vmatmul.mubr.f32.vlgmr.msra.gmra.mrb[28].mxu1 %v29628_v13 }
0x14de   :  { %27645 = vmatpush3.bf16.msra.mxu1 %v27618_v29  ;;  %26525 = vmatprep.mubr.f32.mxu1 %v29637_v6 }
0x14df   :  { %27647 = vmatprep.subr.bf16.mxu1 %v27622_v50 }
0x14e2   :  { %27649 = vmatpush3.bf16.msra.mxu1 %v27622_v50 }
0x14e3   :  { %27651 = vmatprep.subr.bf16.mxu1 %v27650_v43 }
0x14e5   :  { %26526 = vmatmul.mubr.f32.vlgmr.msra.gmra.mrb[28].mxu1 %v29634_v16 }
0x14e6   :  { %27653 = vmatpush3.bf16.msra.mxu1 %v27650_v43  ;;  %26536 = vmatprep.mubr.f32.mxu1 %v29625_v0 }
0x14e7   :  { %27655 = vmatprep.subr.bf16.mxu1 %v27654_v44 }
0x14ea   :  { %27657 = vmatpush3.bf16.msra.mxu1 %v27654_v44 }
0x14eb   :  { %27659 = vmatprep.subr.bf16.mxu1 %v27618_v29 }
0x14ed   :  { %26537 = vmatmul.mubr.f32.vlgmr.msra.gmra.mrb[28].mxu1 %v29622_v63 }
0x14ee   :  { %27661 = vmatpush3.bf16.msra.mxu1 %v27618_v29  ;;  %26547 = vmatprep.mubr.f32.mxu1 %v29625_v0 }
0x14ef   :  { %27663 = vmatprep.subr.bf16.mxu1 %v27622_v50 }
0x14f2   :  { %27665 = vmatpush3.bf16.msra.mxu1 %v27622_v50 }
0x14f3   :  { %26580 = vmatprep.subr.mxu1 %v28614_v9 }
0x14f5   :  { %26548 = vmatmul.mubr.f32.vlgmr.msra.gmra.mrb[28].mxu1 %v29622_v63 }
0x14f6   :  { %26582 = vmatprep.mubr.msk.f32.mxu1 %vm28615_vm1, %v28614_v9 }
0x1598   :  { %v26417_v21 = vpop.f32.mrb[26].mxu1 }
0x1599   :  { %v29729_v27 = vadd.f32 %v26417_v21, %v24519_v45  ;;  %v26483_v46 = vpop.f32.mrb[20].mxu0  ;;  %v12903_v49 = vpop.f32.mrb[27].mxu1 }
0x159a   :  { %v29731_v42 = vadd.f32 %v26483_v46, %v24521_v28  ;;  %v29733_v51 = vadd.f32 %v24519_v45, %v12903_v49  ;;  %v13444_v52 = vpop.f32.mrb[21].mxu0 }
0x159b   :  { %v14448_v53 = vsel %vm1841_vm2, %v29729_v27, 0  ;;  %v29737_v54 = vadd.f32 %v24521_v28, %v13444_v52 }
0x159c   :  { %v29739_v26 = vand.u32 4294901760, %v14448_v53  ;;  %v13996_v55 = vsel %vm1841_vm2, %v29733_v51, 0  ;;  %v14451_v56 = vsel %vm1841_vm2, %v29731_v42, 0 }
0x159d   :  { %v29745_v58 = vand.u32 4294901760, %v13996_v55  ;;  %v14454_v59 = vand.u32 4294901760, %v14451_v56  ;;  %v13999_v61 = vsel %vm1841_vm2, %v29737_v54, 0 }
0x159e   :  { %v14520_v62 = vsub.f32 %v14448_v53, %v29739_v26  ;;  %v14002_v63 = vand.u32 4294901760, %v13999_v61 }
0x159f   :  { %v14068_v48 = vsub.f32 %v13996_v55, %v29745_v58  ;;  %26581 = vmatpush3.xpose.msra.mxu1 %v14454_v59  ;;  %v14531_v0 = vsub.f32 %v14451_v56, %v14454_v59 }
0x15a0   :  { %26551 = vmatpush3.xpose.msra.mxu0 %v14002_v63  ;;  %v14079_v13 = vsub.f32 %v13999_v61, %v14002_v63  ;;  %26585 = vmatprep.subr.mxu1 %v28614_v9  ;;  %v14521_v2 = vand.u32 4294901760, %v14520_v62 }
0x15a1   :  { %26555 = vmatprep.subr.mxu0 %v28614_v9  ;;  %v14532_v16 = vand.u32 4294901760, %v14531_v0  ;;  %v14069_v6 = vand.u32 4294901760, %v14068_v48 }
0x15a2   :  { %v14522_v10 = vsub.f32 %v14520_v62, %v14521_v2  ;;  %v14080_v11 = vand.u32 4294901760, %v14079_v13 }
0x15a3   :  { %v14533_v12 = vsub.f32 %v14531_v0, %v14532_v16  ;;  %v14070_v15 = vsub.f32 %v14068_v48, %v14069_v6 }
0x15a4   :  { %v14523_v17 = vand.u32 4294901760, %v14522_v10  ;;  %v14081_v18 = vsub.f32 %v14079_v13, %v14080_v11 }
0x15a5   :  { %v14534_v5 = vand.u32 4294901760, %v14533_v12  ;;  %v14071_v19 = vand.u32 4294901760, %v14070_v15 }
0x15a6   :  { %26583 = vmatmul.mubr.f32.vlgmr.msra.gmra.mrb[30].mxu1 %v14523_v17  ;;  %v14082_v8 = vand.u32 4294901760, %v14081_v18 }
0x15a7   :  { %26586 = vmatpush3.xpose.msra.mxu1 %v14534_v5  ;;  %26553 = vmatmul.mubr.f32.vlgmr.msra.gmra.mrb[22].mxu0 %v14071_v19 }
0x15a8   :  { %26556 = vmatpush3.xpose.msra.mxu0 %v14082_v8  ;;  %26587 = vmatprep.mubr.msk.f32.mxu1 %vm28615_vm1, %v28614_v9 }
0x15a9   :  { %26590 = vmatprep.subr.mxu1 %v28614_v9  ;;  %26557 = vmatprep.mubr.msk.f32.mxu0 %vm28615_vm1, %v28614_v9 }
0x15aa   :  { %26560 = vmatprep.subr.mxu0 %v28614_v9 }
0x15ae   :  { %26588 = vmatmul.mubr.f32.vlgmr.msra.gmra.mrb[30].mxu1 %v29739_v26 }
0x15af   :  { %26591 = vmatpush3.xpose.msra.mxu1 %v14531_v0  ;;  %26558 = vmatmul.mubr.f32.vlgmr.msra.gmra.mrb[22].mxu0 %v29745_v58 }
0x15b0   :  { %26561 = vmatpush3.xpose.msra.mxu0 %v14079_v13  ;;  %26592 = vmatprep.mubr.msk.f32.mxu1 %vm28615_vm1, %v28614_v9 }
0x15b1   :  { %26595 = vmatprep.subr.mxu1 %v28614_v9  ;;  %26562 = vmatprep.mubr.msk.f32.mxu0 %vm28615_vm1, %v28614_v9 }
0x15b2   :  { %26565 = vmatprep.subr.mxu0 %v28614_v9 }
0x15b6   :  { %26593 = vmatmul.mubr.f32.vlgmr.msra.gmra.mrb[30].mxu1 %v14520_v62 }
0x15b7   :  { %26596 = vmatpush3.xpose.msra.mxu1 %v14454_v59  ;;  %26563 = vmatmul.mubr.f32.vlgmr.msra.gmra.mrb[22].mxu0 %v14068_v48 }
0x15b8   :  { %26566 = vmatpush3.xpose.msra.mxu0 %v14002_v63  ;;  %26597 = vmatprep.mubr.msk.f32.mxu1 %vm28615_vm1, %v28614_v9 }
0x15b9   :  { %26600 = vmatprep.subr.mxu1 %v28614_v9  ;;  %26567 = vmatprep.mubr.msk.f32.mxu0 %vm28615_vm1, %v28614_v9 }
0x15ba   :  { %26570 = vmatprep.subr.mxu0 %v28614_v9 }
0x15be   :  { %26598 = vmatmul.mubr.f32.vlgmr.msra.gmra.mrb[30].mxu1 %v14521_v2 }
0x15bf   :  { %26601 = vmatpush3.xpose.msra.mxu1 %v14532_v16  ;;  %26568 = vmatmul.mubr.f32.vlgmr.msra.gmra.mrb[22].mxu0 %v14069_v6 }
0x15c0   :  { %26571 = vmatpush3.xpose.msra.mxu0 %v14080_v11  ;;  %26602 = vmatprep.mubr.msk.f32.mxu1 %vm28615_vm1, %v28614_v9 }
0x15c1   :  { %26605 = vmatprep.subr.mxu1 %v28614_v9  ;;  %26572 = vmatprep.mubr.msk.f32.mxu0 %vm28615_vm1, %v28614_v9 }
0x15c2   :  { %26575 = vmatprep.subr.mxu0 %v28614_v9 }
0x15c6   :  { %26603 = vmatmul.mubr.f32.vlgmr.msra.gmra.mrb[30].mxu1 %v29739_v26 }
0x15c7   :  { %26606 = vmatpush3.xpose.msra.mxu1 %v14454_v59  ;;  %26573 = vmatmul.mubr.f32.vlgmr.msra.gmra.mrb[22].mxu0 %v29745_v58 }
0x15c8   :  { %v26549_v41 = vpop.f32.mrb[28].mxu1  ;;  %26576 = vmatpush3.xpose.msra.mxu0 %v14002_v63  ;;  %26607 = vmatprep.mubr.msk.f32.mxu1 %vm28615_vm1, %v28614_v9 }
0x15c9   :  { %v29786_v4 = vadd.f32 %v26549_v41, %v24523_v1  ;;  %v13985_v3 = vpop.f32.mrb[29].mxu1  ;;  %26640 = vmatprep.subr.mxu1 %v28614_v9  ;;  %26577 = vmatprep.mubr.msk.f32.mxu0 %vm28615_vm1, %v28614_v9 }
0x15ca   :  { %v29791_v14 = vadd.f32 %v24523_v1, %v13985_v3  ;;  %26610 = vmatprep.subr.mxu0 %v28614_v9 }
0x15cb   :  { %v29795_v36 = vand.u32 4294901760, %v29786_v4 }
0x15cc   :  { %v29799_v22 = vand.u32 4294901760, %v29791_v14 }
0x15cd   :  { %v15451_v39 = vsub.f32 %v29786_v4, %v29795_v36 }
0x15ce   :  { %26608 = vmatmul.mubr.f32.vlgmr.msra.gmra.mrb[30].mxu1 %v29739_v26  ;;  %v15002_v18 = vsub.f32 %v29791_v14, %v29799_v22 }
0x15cf   :  { %26641 = vmatpush3.msra.mxu1 %v29795_v36  ;;  %26578 = vmatmul.mubr.f32.vlgmr.msra.gmra.mrb[22].mxu0 %v29745_v58  ;;  %v15452_v20 = vand.u32 4294901760, %v15451_v39 }
0x15d0   :  { %26611 = vmatpush3.msra.mxu0 %v29799_v22  ;;  %26642 = vmatprep.mubr.msk.f32.mxu1 %vm28615_vm1, %v28614_v9  ;;  %v15003_v8 = vand.u32 4294901760, %v15002_v18 }
0x15d1   :  { %26645 = vmatprep.subr.mxu1 %v28614_v9  ;;  %26612 = vmatprep.mubr.msk.f32.mxu0 %vm28615_vm1, %v28614_v9  ;;  %v15453_v45 = vsub.f32 %v15451_v39, %v15452_v20 }
0x15d2   :  { %26615 = vmatprep.subr.mxu0 %v28614_v9  ;;  %v15004_v3 = vsub.f32 %v15002_v18, %v15003_v8 }
0x15d3   :  { %v15454_v46 = vand.u32 4294901760, %v15453_v45 }
0x16a1   :  { %v14895_v23 = vpop.f32.mrb[30].mxu1 }
0x16a2   :  { %v14443_v7 = vpop.f32.mrb[22].mxu0  ;;  %v26609_v29 = vpop.f32.mrb[31].mxu1  ;;  %v14902_v32 = vsel %vm1841_vm2, %v14895_v23, -inf }
0x16a3   :  { %14903 = vmax.xlane.f32.xlu0 %v14902_v32  ;;  %v26579_v30 = vpop.f32.mrb[23].mxu0  ;;  %v14899_v33 = vsel %vm1841_vm2, %v14443_v7, -inf }
0x16b9   :  { %16275 = vrot.lane.b32.xlu0 %v29729_v27, %s28616_s19 }
0x1730   :  { %v14904_v34 = vpop.xlane.xlu0 %14903 }
0x1731   :  { %v14906_v35 = vsub.f32 %v14895_v23, %v14904_v34 }
0x1733   :  { %v14909_v50 = vmul.f32 1.442695, %v14906_v35 }
0x1734   :  { %v16276_v49 = vpop.permute.xlu0 %16275 }
0x1735   :  { %28354 = vpow2.f32 %v14909_v50  ;;  %v16279_v53 = vsel %vm1841_vm2, %v16276_v49, 0 }
0x1736   :  { %v16349_v55 = vand.u32 4294901760, %v16279_v53 }
0x1738   :  { %v16350_v61 = vsub.f32 %v16279_v53, %v16349_v55 }
0x173a   :  { %v16351_v48 = vand.u32 4294901760, %v16350_v61 }
0x173c   :  { %v16352_v13 = vsub.f32 %v16350_v61, %v16351_v48 }
0x173e   :  { %v16353_v16 = vand.u32 4294901760, %v16352_v13 }
0x173f   :  { %v28355_v37 = vpop.eup %28354 }
0x1740   :  { %v14914_v47 = vsel %vm1841_vm2, %v28355_v37, 0.0 }
0x1741   :  { %14915 = vadd.xlane.f32.xlu1 %v14914_v47 }
0x1752   :  { %16277 = vrot.lane.b32.xlu1 %v29731_v42, %s28616_s19 }
0x1776   :  { %14900 = vmax.xlane.f32.xlu1 %v14899_v33 }
0x1787   :  { %15823 = vrot.lane.b32.xlu1 %v29737_v54, %s28616_s19 }
0x17ce   :  { %v14916_v38 = vpop.xlane.xlu1 %14915 }
0x17cf   :  { %28356 = vrcp.f32 %v14916_v38 }
0x17d2   :  { %v16278_v52 = vpop.permute.xlu1 %16277 }
0x17d3   :  { %v16281_v26 = vsel %vm1841_vm2, %v16278_v52, 0 }
0x17d4   :  { %v16284_v56 = vand.u32 4294901760, %v16281_v26 }
0x17d6   :  { %v16361_v62 = vsub.f32 %v16281_v26, %v16284_v56 }
0x17d8   :  { %v16362_v0 = vand.u32 4294901760, %v16361_v62 }
0x17d9   :  { %v28357_v31 = vpop.eup %28356 }
0x17da   :  { %v14920_v57 = vmul.f32 %v28357_v31, %v28355_v37  ;;  %v16363_v2 = vsub.f32 %v16361_v62, %v16362_v0 }
0x17dc   :  { %v15371_v60 = vsel %vm1841_vm2, %v14920_v57, 0  ;;  %v16364_v10 = vand.u32 4294901760, %v16363_v2 }
0x17dd   :  { %v15439_v40 = vand.u32 4294901760, %v15371_v60 }
0x17df   :  { %v15440_v43 = vsub.f32 %v15371_v60, %v15439_v40 }
0x17e1   :  { %v15441_v44 = vand.u32 4294901760, %v15440_v43 }
0x17e3   :  { %v15442_v28 = vsub.f32 %v15440_v43, %v15441_v44 }
0x17e5   :  { %v15443_v21 = vand.u32 4294901760, %v15442_v28 }
0x17e7   :  { %26643 = vmatmul.mubr.f32.vlgmr.msra.gmra.mrb[32].mxu1 %v15443_v21 }
0x17e8   :  { %26646 = vmatpush3.msra.mxu1 %v15454_v46  ;;  %26647 = vmatprep.mubr.msk.f32.mxu1 %vm28615_vm1, %v28614_v9 }
0x17e9   :  { %26650 = vmatprep.subr.mxu1 %v28614_v9 }
0x17ef   :  { %26648 = vmatmul.mubr.f32.vlgmr.msra.gmra.mrb[32].mxu1 %v15439_v40 }
0x17f0   :  { %26651 = vmatpush3.msra.mxu1 %v15451_v39  ;;  %26652 = vmatprep.mubr.msk.f32.mxu1 %vm28615_vm1, %v28614_v9 }
0x17f1   :  { %26655 = vmatprep.subr.mxu1 %v28614_v9 }
0x17f7   :  { %26653 = vmatmul.mubr.f32.vlgmr.msra.gmra.mrb[32].mxu1 %v15440_v43 }
0x17f8   :  { %26656 = vmatpush3.msra.mxu1 %v29795_v36  ;;  %26657 = vmatprep.mubr.msk.f32.mxu1 %vm28615_vm1, %v28614_v9 }
0x17f9   :  { %26660 = vmatprep.subr.mxu1 %v28614_v9 }
0x17ff   :  { %26658 = vmatmul.mubr.f32.vlgmr.msra.gmra.mrb[32].mxu1 %v15441_v44 }
0x1800   :  { %26661 = vmatpush3.msra.mxu1 %v15452_v20  ;;  %26662 = vmatprep.mubr.msk.f32.mxu1 %vm28615_vm1, %v28614_v9 }
0x1801   :  { %26665 = vmatprep.subr.mxu1 %v28614_v9 }
0x1803   :  { %v14901_v58 = vpop.xlane.xlu1 %14900 }
0x1804   :  { %v14905_v59 = vsub.f32 %v14443_v7, %v14901_v58  ;;  %v15005_v7 = vand.u32 4294901760, %v15004_v3 }
0x1806   :  { %v14907_v63 = vmul.f32 1.442695, %v14905_v59 }
0x1807   :  { %26663 = vmatmul.mubr.f32.vlgmr.msra.gmra.mrb[32].mxu1 %v15439_v40  ;;  %v15824_v32 = vpop.permute.xlu1 %15823 }
0x1808   :  { %28358 = vpow2.f32 %v14907_v63  ;;  %26666 = vmatpush3.msra.mxu1 %v29795_v36  ;;  %26667 = vmatprep.mubr.msk.f32.mxu1 %vm28615_vm1, %v28614_v9  ;;  %v15827_v34 = vsel %vm1841_vm2, %v15824_v32, 0 }
0x1809   :  { %26700 = vmatprep.subr.mxu1 %v28614_v9  ;;  %v15830_v50 = vand.u32 4294901760, %v15827_v34 }
0x180b   :  { %v15907_v47 = vsub.f32 %v15827_v34, %v15830_v50 }
0x180d   :  { %v15908_v38 = vand.u32 4294901760, %v15907_v47 }
0x180f   :  { %26668 = vmatmul.mubr.f32.vlgmr.msra.gmra.mrb[32].mxu1 %v15439_v40  ;;  %v15909_v57 = vsub.f32 %v15907_v47, %v15908_v38 }
0x1810   :  { %26701 = vmatpush3.xpose.msra.mxu1 %v16284_v56  ;;  %26702 = vmatprep.mubr.msk.f32.mxu1 %vm28615_vm1, %v28614_v9 }
0x1811   :  { %26705 = vmatprep.subr.mxu1 %v28614_v9 }
0x1812   :  { %v28359_v6 = vpop.eup %28358 }
0x1813   :  { %26703 = vmatmul.mubr.f32.vlgmr.msra.gmra.mrb[34].mxu1 %v16353_v16  ;;  %v14911_v11 = vsel %vm1841_vm2, %v28359_v6, 0.0 }
0x1814   :  { %26706 = vmatpush3.xpose.msra.mxu1 %v16364_v10  ;;  %14912 = vadd.xlane.f32.xlu0 %v14911_v11 }
0x1815   :  { %26707 = vmatprep.mubr.msk.f32.mxu1 %vm28615_vm1, %v28614_v9  ;;  %26710 = vmatprep.subr.mxu1 %v28614_v9 }
0x181b   :  { %26708 = vmatmul.mubr.f32.vlgmr.msra.gmra.mrb[34].mxu1 %v16349_v55 }
0x181c   :  { %26711 = vmatpush3.xpose.msra.mxu1 %v16361_v62  ;;  %26712 = vmatprep.mubr.msk.f32.mxu1 %vm28615_vm1, %v28614_v9 }
0x181d   :  { %26715 = vmatprep.subr.mxu1 %v28614_v9 }
0x1823   :  { %26713 = vmatmul.mubr.f32.vlgmr.msra.gmra.mrb[34].mxu1 %v16350_v61 }
0x1824   :  { %26716 = vmatpush3.xpose.msra.mxu1 %v16284_v56  ;;  %26717 = vmatprep.mubr.msk.f32.mxu1 %vm28615_vm1, %v28614_v9 }
0x1825   :  { %26720 = vmatprep.subr.mxu1 %v28614_v9 }
0x182a   :  { %15821 = vrot.lane.b32.xlu0 %v29733_v51, %s28616_s19 }
0x182b   :  { %26718 = vmatmul.mubr.f32.vlgmr.msra.gmra.mrb[34].mxu1 %v16351_v48 }
0x182c   :  { %26721 = vmatpush3.xpose.msra.mxu1 %v16362_v0  ;;  %26722 = vmatprep.mubr.msk.f32.mxu1 %vm28615_vm1, %v28614_v9 }
0x182d   :  { %26725 = vmatprep.subr.mxu1 %v28614_v9 }
0x1833   :  { %26723 = vmatmul.mubr.f32.vlgmr.msra.gmra.mrb[34].mxu1 %v16349_v55 }
0x1834   :  { %26726 = vmatpush3.xpose.msra.mxu1 %v16284_v56  ;;  %26727 = vmatprep.mubr.msk.f32.mxu1 %vm28615_vm1, %v28614_v9 }
0x1835   :  { %26760 = vmatprep.subr.mxu1 %v28614_v9 }
0x183b   :  { %26728 = vmatmul.mubr.f32.vlgmr.msra.gmra.mrb[34].mxu1 %v16349_v55 }
0x183c   :  { %26762 = vmatprep.mubr.msk.f32.mxu1 %vm28615_vm1, %v28614_v9 }
0x18a1   :  { %v14913_v12 = vpop.xlane.xlu0 %14912 }
0x18a2   :  { %28360 = vrcp.f32 %v14913_v12 }
0x18a5   :  { %v15822_v29 = vpop.permute.xlu0 %15821 }
0x18a6   :  { %v15825_v30 = vsel %vm1841_vm2, %v15822_v29, 0 }
0x18a7   :  { %v15895_v35 = vand.u32 4294901760, %v15825_v30 }
0x18a9   :  { %v15896_v37 = vsub.f32 %v15825_v30, %v15895_v35 }
0x18ab   :  { %v15897_v33 = vand.u32 4294901760, %v15896_v37 }
0x18ac   :  { %v28361_v15 = vpop.eup %28360 }
0x18ad   :  { %v14918_v17 = vmul.f32 %v28361_v15, %v28359_v6  ;;  %v15898_v31 = vsub.f32 %v15896_v37, %v15897_v33 }
0x18af   :  { %v14922_v5 = vsel %vm1841_vm2, %v14918_v17, 0  ;;  %v15899_v40 = vand.u32 4294901760, %v15898_v31 }
0x18b0   :  { %v14990_v19 = vand.u32 4294901760, %v14922_v5 }
0x18b2   :  { %v14991_v1 = vsub.f32 %v14922_v5, %v14990_v19 }
0x18b4   :  { %v14992_v41 = vand.u32 4294901760, %v14991_v1 }
0x18b6   :  { %v14993_v36 = vsub.f32 %v14991_v1, %v14992_v41 }
0x18b8   :  { %v14994_v23 = vand.u32 4294901760, %v14993_v36 }
0x18ba   :  { %26613 = vmatmul.mubr.f32.vlgmr.msra.gmra.mrb[24].mxu0 %v14994_v23 }
0x18bb   :  { %26616 = vmatpush3.msra.mxu0 %v15005_v7  ;;  %26617 = vmatprep.mubr.msk.f32.mxu0 %vm28615_vm1, %v28614_v9 }
0x18bc   :  { %26620 = vmatprep.subr.mxu0 %v28614_v9 }
0x18c2   :  { %26618 = vmatmul.mubr.f32.vlgmr.msra.gmra.mrb[24].mxu0 %v14990_v19 }
0x18c3   :  { %26621 = vmatpush3.msra.mxu0 %v15002_v18  ;;  %26622 = vmatprep.mubr.msk.f32.mxu0 %vm28615_vm1, %v28614_v9 }
0x18c4   :  { %26625 = vmatprep.subr.mxu0 %v28614_v9 }
0x18ca   :  { %26623 = vmatmul.mubr.f32.vlgmr.msra.gmra.mrb[24].mxu0 %v14991_v1 }
0x18cb   :  { %26626 = vmatpush3.msra.mxu0 %v29799_v22  ;;  %26627 = vmatprep.mubr.msk.f32.mxu0 %vm28615_vm1, %v28614_v9 }
0x18cc   :  { %26630 = vmatprep.subr.mxu0 %v28614_v9 }
0x18d2   :  { %26628 = vmatmul.mubr.f32.vlgmr.msra.gmra.mrb[24].mxu0 %v14992_v41 }
0x18d3   :  { %26631 = vmatpush3.msra.mxu0 %v15003_v8  ;;  %26632 = vmatprep.mubr.msk.f32.mxu0 %vm28615_vm1, %v28614_v9 }
0x18d4   :  { %26635 = vmatprep.subr.mxu0 %v28614_v9 }
0x18da   :  { %26633 = vmatmul.mubr.f32.vlgmr.msra.gmra.mrb[24].mxu0 %v14990_v19 }
0x18db   :  { %26636 = vmatpush3.msra.mxu0 %v29799_v22  ;;  %26637 = vmatprep.mubr.msk.f32.mxu0 %vm28615_vm1, %v28614_v9  ;;  %v15910_v22 = vand.u32 4294901760, %v15909_v57 }
0x18dc   :  { %26670 = vmatprep.subr.mxu0 %v28614_v9 }
0x18e2   :  { %26638 = vmatmul.mubr.f32.vlgmr.msra.gmra.mrb[24].mxu0 %v14990_v19  ;;  %v29886_v39 = vpop.f32.mrb[32].mxu1 }
0x18e3   :  { %26671 = vmatpush3.xpose.msra.mxu0 %v15830_v50  ;;  %v26669_v60 = vpop.f32.mrb[33].mxu1  ;;  %26672 = vmatprep.mubr.msk.f32.mxu0 %vm28615_vm1, %v28614_v9 }
0x18e4   :  { %26675 = vmatprep.subr.mxu0 %v28614_v9 }
0x18e6   :  { %26673 = vmatmul.mubr.f32.vlgmr.msra.gmra.mrb[26].mxu0 %v15899_v40 }
0x18e7   :  { %26676 = vmatpush3.xpose.msra.mxu0 %v15910_v22  ;;  %26677 = vmatprep.mubr.msk.f32.mxu0 %vm28615_vm1, %v28614_v9 }
0x18e8   :  { %26680 = vmatprep.subr.mxu0 %v28614_v9 }
0x18ee   :  { %26678 = vmatmul.mubr.f32.vlgmr.msra.gmra.mrb[26].mxu0 %v15895_v35 }
0x18ef   :  { %26681 = vmatpush3.xpose.msra.mxu0 %v15907_v47  ;;  %26682 = vmatprep.mubr.msk.f32.mxu0 %vm28615_vm1, %v28614_v9 }
0x18f0   :  { %26685 = vmatprep.subr.mxu0 %v28614_v9 }
0x18f6   :  { %26683 = vmatmul.mubr.f32.vlgmr.msra.gmra.mrb[26].mxu0 %v15896_v37 }
0x18f7   :  { %26686 = vmatpush3.xpose.msra.mxu0 %v15830_v50  ;;  %26687 = vmatprep.mubr.msk.f32.mxu0 %vm28615_vm1, %v28614_v9 }
0x18f8   :  { %26690 = vmatprep.subr.mxu0 %v28614_v9 }
0x18fe   :  { %26688 = vmatmul.mubr.f32.vlgmr.msra.gmra.mrb[26].mxu0 %v15897_v33 }
0x18ff   :  { %26691 = vmatpush3.xpose.msra.mxu0 %v15908_v38  ;;  %26692 = vmatprep.mubr.msk.f32.mxu0 %vm28615_vm1, %v28614_v9 }
0x1900   :  { %26695 = vmatprep.subr.mxu0 %v28614_v9 }
0x1906   :  { %26693 = vmatmul.mubr.f32.vlgmr.msra.gmra.mrb[26].mxu0 %v15895_v35 }
0x1907   :  { %26696 = vmatpush3.xpose.msra.mxu0 %v15830_v50  ;;  %26697 = vmatprep.mubr.msk.f32.mxu0 %vm28615_vm1, %v28614_v9 }
0x1908   :  { %26730 = vmatprep.subr.mxu0 %v28614_v9 }
0x190e   :  { %26698 = vmatmul.mubr.f32.vlgmr.msra.gmra.mrb[26].mxu0 %v15895_v35  ;;  %v16725_v20 = vpop.f32.mrb[34].mxu1 }
0x190f   :  { %v26729_v43 = vpop.f32.mrb[35].mxu1  ;;  %v16732_v44 = vsel %vm1841_vm2, %v16725_v20, -inf  ;;  %26732 = vmatprep.mubr.msk.f32.mxu0 %vm28615_vm1, %v28614_v9 }
0x1910   :  { %16733 = vmax.xlane.f32.xlu1 %v16732_v44 }
0x1921   :  { %18649 = vrot.lane.b32.xlu1 %v29733_v51, %s28617_s4 }
0x1925   :  { %18651 = vrot.lane.b32.xlu1 %v29737_v54, %s28617_s4 }
0x199d   :  { %v16734_v45 = vpop.xlane.xlu1 %16733 }
0x199e   :  { %v16736_v28 = vsub.f32 %v16725_v20, %v16734_v45 }
0x19a0   :  { %v16739_v21 = vmul.f32 1.442695, %v16736_v28 }
0x19a1   :  { %v18650_v10 = vpop.permute.xlu1 %18649 }
0x19a2   :  { %28362 = vpow2.f32 %v16739_v21  ;;  %v18653_v12 = vsel %vm1841_vm2, %v18650_v10, 0 }
0x19a3   :  { %v18723_v17 = vand.u32 4294901760, %v18653_v12 }
0x19a5   :  { %v18652_v11 = vpop.permute.xlu1 %18651  ;;  %v18724_v8 = vsub.f32 %v18653_v12, %v18723_v17 }
0x19a6   :  { %v18655_v15 = vsel %vm1841_vm2, %v18652_v11, 0 }
0x19a7   :  { %v18658_v18 = vand.u32 4294901760, %v18655_v15  ;;  %v18725_v23 = vand.u32 4294901760, %v18724_v8 }
0x19a9   :  { %v18735_v1 = vsub.f32 %v18655_v15, %v18658_v18  ;;  %v18726_v29 = vsub.f32 %v18724_v8, %v18725_v23 }
0x19ab   :  { %v18736_v7 = vand.u32 4294901760, %v18735_v1  ;;  %v18727_v30 = vand.u32 4294901760, %v18726_v29 }
0x19ac   :  { %v28363_v46 = vpop.eup %28362 }
0x19ad   :  { %v16744_v49 = vsel %vm1841_vm2, %v28363_v46, 0.0  ;;  %v18737_v32 = vsub.f32 %v18735_v1, %v18736_v7 }
0x19ae   :  { %16745 = vadd.xlane.f32.xlu0 %v16744_v49 }
0x19af   :  { %v18738_v35 = vand.u32 4294901760, %v18737_v32 }
0x19b5   :  { %v29914_v52 = vpop.f32.mrb[24].mxu0 }
0x19b6   :  { %v26639_v53 = vpop.f32.mrb[25].mxu0 }
0x19c4   :  { %17205 = vrot.lane.b32.xlu0 %v29786_v4, %s28616_s19 }
0x19c8   :  { %19103 = vrot.lane.b32.xlu0 %v29729_v27, %s28617_s4 }
0x19cc   :  { %19105 = vrot.lane.b32.xlu0 %v29731_v42, %s28617_s4 }
0x19e1   :  { %v16271_v26 = vpop.f32.mrb[26].mxu0 }
0x19e2   :  { %v26699_v55 = vpop.f32.mrb[27].mxu0  ;;  %v16729_v56 = vsel %vm1841_vm2, %v16271_v26, -inf }
0x19e3   :  { %16730 = vmax.xlane.f32.xlu1 %v16729_v56 }
0x19f4   :  { %16752 = vrot.lane.b32.xlu1 %v29791_v14, %s28616_s19 }
0x19f8   :  { %19579 = vrot.lane.b32.xlu1 %v29791_v14, %s28617_s4 }
0x19fc   :  { %20982 = vrot.lane.b32.xlu1 %v29733_v51, %s28618_s27 }
0x1a00   :  { %21436 = vrot.lane.b32.xlu1 %v29729_v27, %s28618_s27 }
0x1a04   :  { %20984 = vrot.lane.b32.xlu1 %v29737_v54, %s28618_s27 }
0x1a08   :  { %21438 = vrot.lane.b32.xlu1 %v29731_v42, %s28618_s27 }
0x1a3b   :  { %v16746_v58 = vpop.xlane.xlu0 %16745 }
0x1a3c   :  { %28364 = vrcp.f32 %v16746_v58 }
0x1a3f   :  { %v17206_v59 = vpop.permute.xlu0 %17205 }
0x1a40   :  { %v17212_v61 = vand.u32 4294901760, %v17206_v59 }
0x1a42   :  { %26761 = vmatpush3.msra.mxu1 %v17212_v61  ;;  %v17289_v48 = vsub.f32 %v17206_v59, %v17212_v61 }
0x1a43   :  { %26765 = vmatprep.subr.mxu1 %v28614_v9  ;;  %v19104_v37 = vpop.permute.xlu0 %19103 }
0x1a44   :  { %v17290_v27 = vand.u32 4294901760, %v17289_v48  ;;  %v19107_v33 = vsel %vm1841_vm2, %v19104_v37, 0 }
0x1a45   :  { %v19177_v31 = vand.u32 4294901760, %v19107_v33 }
0x1a46   :  { %v28365_v62 = vpop.eup %28364  ;;  %v17291_v54 = vsub.f32 %v17289_v48, %v17290_v27 }
0x1a47   :  { %v16750_v63 = vmul.f32 %v28365_v62, %v28363_v46  ;;  %v19106_v47 = vpop.permute.xlu0 %19105  ;;  %v19178_v60 = vsub.f32 %v19107_v33, %v19177_v31 }
0x1a48   :  { %v17292_v42 = vand.u32 4294901760, %v17291_v54  ;;  %v19109_v38 = vsel %vm1841_vm2, %v19106_v47, 0 }
0x1a49   :  { %v17209_v51 = vsel %vm1841_vm2, %v16750_v63, 0  ;;  %v19112_v57 = vand.u32 4294901760, %v19109_v38  ;;  %v19179_v22 = vand.u32 4294901760, %v19178_v60 }
0x1a4a   :  { %v17277_v0 = vand.u32 4294901760, %v17209_v51 }
0x1a4b   :  { %v19189_v40 = vsub.f32 %v19109_v38, %v19112_v57  ;;  %v19180_v43 = vsub.f32 %v19178_v60, %v19179_v22 }
0x1a4c   :  { %v17278_v13 = vsub.f32 %v17209_v51, %v17277_v0 }
0x1a4d   :  { %v19190_v20 = vand.u32 4294901760, %v19189_v40  ;;  %v19181_v45 = vand.u32 4294901760, %v19180_v43 }
0x1a4e   :  { %v17279_v2 = vand.u32 4294901760, %v17278_v13 }
0x1a4f   :  { %v19191_v44 = vsub.f32 %v19189_v40, %v19190_v20 }
0x1a50   :  { %v17280_v16 = vsub.f32 %v17278_v13, %v17279_v2 }
0x1a51   :  { %v19192_v28 = vand.u32 4294901760, %v19191_v44 }
0x1a52   :  { %v17281_v6 = vand.u32 4294901760, %v17280_v16 }
0x1a54   :  { %26763 = vmatmul.mubr.f32.vlgmr.msra.gmra.mrb[36].mxu1 %v17281_v6 }
0x1a55   :  { %26766 = vmatpush3.msra.mxu1 %v17292_v42  ;;  %26767 = vmatprep.mubr.msk.f32.mxu1 %vm28615_vm1, %v28614_v9  ;;  %v17658_v42 = vld [vmem:[#allocation11 + $0x28] sm:$0xff] }
0x1a56   :  { %26770 = vmatprep.subr.mxu1 %v28614_v9  ;;  %v30027_v10 = vand.u32 4294901760, %v17658_v42 }
0x1a58   :  { %v17753_v11 = vsub.f32 %v17658_v42, %v30027_v10 }
0x1a5a   :  { %v17754_v12 = vand.u32 4294901760, %v17753_v11 }
0x1a5c   :  { %26768 = vmatmul.mubr.f32.vlgmr.msra.gmra.mrb[36].mxu1 %v17277_v0  ;;  %v17755_v15 = vsub.f32 %v17753_v11, %v17754_v12 }
0x1a5d   :  { %26771 = vmatpush3.msra.mxu1 %v17289_v48  ;;  %26772 = vmatprep.mubr.msk.f32.mxu1 %vm28615_vm1, %v28614_v9 }
0x1a5e   :  { %26775 = vmatprep.subr.mxu1 %v28614_v9 }
0x1a64   :  { %26773 = vmatmul.mubr.f32.vlgmr.msra.gmra.mrb[36].mxu1 %v17278_v13 }
0x1a65   :  { %26776 = vmatpush3.msra.mxu1 %v17212_v61  ;;  %26777 = vmatprep.mubr.msk.f32.mxu1 %vm28615_vm1, %v28614_v9 }
0x1a66   :  { %26780 = vmatprep.subr.mxu1 %v28614_v9 }
0x1a6c   :  { %26778 = vmatmul.mubr.f32.vlgmr.msra.gmra.mrb[36].mxu1 %v17279_v2 }
0x1a6d   :  { %26781 = vmatpush3.msra.mxu1 %v17290_v27  ;;  %26782 = vmatprep.mubr.msk.f32.mxu1 %vm28615_vm1, %v28614_v9 }
0x1a6e   :  { %26785 = vmatprep.subr.mxu1 %v28614_v9 }
0x1a70   :  { %v16731_v5 = vpop.xlane.xlu1 %16730 }
0x1a71   :  { %v16735_v19 = vsub.f32 %v16271_v26, %v16731_v5 }
0x1a73   :  { %v16737_v41 = vmul.f32 1.442695, %v16735_v19 }
0x1a74   :  { %26783 = vmatmul.mubr.f32.vlgmr.msra.gmra.mrb[36].mxu1 %v17277_v0  ;;  %v29951_v3 = vpop.permute.xlu1 %16752 }
0x1a75   :  { %28366 = vpow2.f32 %v16737_v41  ;;  %26786 = vmatpush3.msra.mxu1 %v17212_v61  ;;  %v29954_v36 = vand.u32 4294901760, %v29951_v3  ;;  %26787 = vmatprep.mubr.msk.f32.mxu1 %vm28615_vm1, %v28614_v9 }
0x1a76   :  { %26850 = vmatprep.subr.mxu1 %v28614_v9 }
0x1a77   :  { %26731 = vmatpush3.msra.mxu0 %v29954_v36  ;;  %v16836_v49 = vsub.f32 %v29951_v3, %v29954_v36 }
0x1a78   :  { %26735 = vmatprep.subr.mxu0 %v28614_v9 }
0x1a79   :  { %v16837_v56 = vand.u32 4294901760, %v16836_v49 }
0x1a7b   :  { %v16838_v61 = vsub.f32 %v16836_v49, %v16837_v56 }
0x1a7c   :  { %26788 = vmatmul.mubr.f32.vlgmr.msra.gmra.mrb[36].mxu1 %v17277_v0 }
0x1a7d   :  { %26851 = vmatpush3.xpose.msra.mxu1 %v18658_v18  ;;  %26852 = vmatprep.mubr.msk.f32.mxu1 %vm28615_vm1, %v28614_v9  ;;  %v16839_v48 = vand.u32 4294901760, %v16838_v61 }
0x1a7e   :  { %26855 = vmatprep.subr.mxu1 %v28614_v9 }
0x1a7f   :  { %v29964_v34 = vpop.eup %28366 }
0x1a80   :  { %26853 = vmatmul.mubr.f32.vlgmr.msra.gmra.mrb[38].mxu1 %v18727_v30  ;;  %v16741_v50 = vsel %vm1841_vm2, %v29964_v34, 0.0 }
0x1a81   :  { %26856 = vmatpush3.xpose.msra.mxu1 %v18738_v35  ;;  %16742 = vadd.xlane.f32.xlu0 %v16741_v50 }
0x1a82   :  { %26857 = vmatprep.mubr.msk.f32.mxu1 %vm28615_vm1, %v28614_v9  ;;  %26860 = vmatprep.subr.mxu1 %v28614_v9 }
0x1a88   :  { %26858 = vmatmul.mubr.f32.vlgmr.msra.gmra.mrb[38].mxu1 %v18723_v17 }
0x1a89   :  { %26861 = vmatpush3.xpose.msra.mxu1 %v18735_v1  ;;  %26862 = vmatprep.mubr.msk.f32.mxu1 %vm28615_vm1, %v28614_v9 }
0x1a8a   :  { %26865 = vmatprep.subr.mxu1 %v28614_v9 }
0x1a90   :  { %26863 = vmatmul.mubr.f32.vlgmr.msra.gmra.mrb[38].mxu1 %v18724_v8 }
0x1a91   :  { %26866 = vmatpush3.xpose.msra.mxu1 %v18658_v18  ;;  %26867 = vmatprep.mubr.msk.f32.mxu1 %vm28615_vm1, %v28614_v9 }
0x1a92   :  { %26870 = vmatprep.subr.mxu1 %v28614_v9 }
0x1a98   :  { %26868 = vmatmul.mubr.f32.vlgmr.msra.gmra.mrb[38].mxu1 %v18725_v23 }
0x1a99   :  { %26871 = vmatpush3.xpose.msra.mxu1 %v18736_v7  ;;  %26872 = vmatprep.mubr.msk.f32.mxu1 %vm28615_vm1, %v28614_v9 }
0x1a9a   :  { %26875 = vmatprep.subr.mxu1 %v28614_v9 }
0x1aa0   :  { %26873 = vmatmul.mubr.f32.vlgmr.msra.gmra.mrb[38].mxu1 %v18723_v17 }
0x1aa1   :  { %26876 = vmatpush3.xpose.msra.mxu1 %v18658_v18  ;;  %26877 = vmatprep.mubr.msk.f32.mxu1 %vm28615_vm1, %v28614_v9 }
0x1aa2   :  { %26880 = vmatprep.subr.mxu1 %v28614_v9 }
0x1aa8   :  { %26878 = vmatmul.mubr.f32.vlgmr.msra.gmra.mrb[38].mxu1 %v18723_v17  ;;  %v17756_v17 = vand.u32 4294901760, %v17755_v15 }
0x1aa9   :  { %26881 = vmatpush3.xpose.msra.mxu1 %v19112_v57  ;;  %26882 = vmatprep.mubr.msk.f32.mxu1 %vm28615_vm1, %v28614_v9 }
0x1aaa   :  { %26885 = vmatprep.subr.mxu1 %v28614_v9 }
0x1aac   :  { %26883 = vmatmul.mubr.f32.vlgmr.msra.gmra.mrb[40].mxu1 %v19181_v45 }
0x1aad   :  { %26886 = vmatpush3.xpose.msra.mxu1 %v19192_v28  ;;  %26887 = vmatprep.mubr.msk.f32.mxu1 %vm28615_vm1, %v28614_v9  ;;  %v18158_v28 = vsel %vm1841_vm2, %v29886_v39, 0 }
0x1aae   :  { %26890 = vmatprep.subr.mxu1 %v28614_v9 }
0x1ab4   :  { %26888 = vmatmul.mubr.f32.vlgmr.msra.gmra.mrb[40].mxu1 %v19177_v31 }
0x1ab5   :  { %26891 = vmatpush3.xpose.msra.mxu1 %v19189_v40  ;;  %26892 = vmatprep.mubr.msk.f32.mxu1 %vm28615_vm1, %v28614_v9  ;;  %v18155_v40 = vsel %vm1841_vm2, %v29914_v52, 0 }
0x1ab6   :  { %26895 = vmatprep.subr.mxu1 %v28614_v9  ;;  %v18226_v43 = vand.u32 4294901760, %v18155_v40 }
0x1abc   :  { %26893 = vmatmul.mubr.f32.vlgmr.msra.gmra.mrb[40].mxu1 %v19178_v60  ;;  %v15820_v60 = vld [vmem:[#allocation11 + $0x20] sm:$0xff] }
0x1abd   :  { %26896 = vmatpush3.xpose.msra.mxu1 %v19112_v57  ;;  %26897 = vmatprep.mubr.msk.f32.mxu1 %vm28615_vm1, %v28614_v9 }
0x1abe   :  { %26900 = vmatprep.subr.mxu1 %v28614_v9 }
0x1ac4   :  { %26898 = vmatmul.mubr.f32.vlgmr.msra.gmra.mrb[40].mxu1 %v19179_v22 }
0x1ac5   :  { %26901 = vmatpush3.xpose.msra.mxu1 %v19190_v20  ;;  %26902 = vmatprep.mubr.msk.f32.mxu1 %vm28615_vm1, %v28614_v9  ;;  %v18161_v20 = vand.u32 4294901760, %v15820_v60 }
0x1ac6   :  { %26905 = vmatprep.subr.mxu1 %v28614_v9 }
0x1ac7   :  { %v18248_v45 = vsub.f32 %v15820_v60, %v18161_v20 }
0x1ac9   :  { %v18249_v52 = vand.u32 4294901760, %v18248_v45 }
0x1acc   :  { %26903 = vmatmul.mubr.f32.vlgmr.msra.gmra.mrb[40].mxu1 %v19177_v31 }
0x1acd   :  { %26906 = vmatpush3.xpose.msra.mxu1 %v19112_v57  ;;  %26907 = vmatprep.mubr.msk.f32.mxu1 %vm28615_vm1, %v28614_v9 }
0x1ace   :  { %26940 = vmatprep.subr.mxu1 %v28614_v9 }
0x1ad4   :  { %26908 = vmatmul.mubr.f32.vlgmr.msra.gmra.mrb[40].mxu1 %v19177_v31 }
0x1ad5   :  { %26942 = vmatprep.mubr.msk.f32.mxu1 %vm28615_vm1, %v28614_v9 }
0x1b0e   :  { %v16743_v21 = vpop.xlane.xlu0 %16742 }
0x1b0f   :  { %28368 = vrcp.f32 %v16743_v21  ;;  %v18227_v21 = vsub.f32 %v18155_v40, %v18226_v43 }
0x1b19   :  { %v28369_v46 = vpop.eup %28368 }
0x1b1a   :  { %v16748_v53 = vmul.f32 %v28369_v46, %v29964_v34  ;;  %v18236_v46 = vand.u32 4294901760, %v18158_v28 }
0x1b1c   :  { %v16756_v26 = vsel %vm1841_vm2, %v16748_v53, 0  ;;  %v18237_v53 = vsub.f32 %v18158_v28, %v18236_v46 }
0x1b1d   :  { %v16824_v55 = vand.u32 4294901760, %v16756_v26 }
0x1b1f   :  { %v16825_v58 = vsub.f32 %v16756_v26, %v16824_v55  ;;  %v18250_v26 = vsub.f32 %v18248_v45, %v18249_v52 }
0x1b21   :  { %v16826_v59 = vand.u32 4294901760, %v16825_v58 }
0x1b23   :  { %v16827_v62 = vsub.f32 %v16825_v58, %v16826_v59 }
0x1b25   :  { %v16828_v63 = vand.u32 4294901760, %v16827_v62  ;;  %v19580_v62 = vpop.permute.xlu1 %19579 }
0x1b27   :  { %26733 = vmatmul.mubr.f32.vlgmr.msra.gmra.mrb[28].mxu0 %v16828_v63  ;;  %v19586_v63 = vand.u32 4294901760, %v19580_v62 }
0x1b28   :  { %26736 = vmatpush3.msra.mxu0 %v16839_v48  ;;  %26737 = vmatprep.mubr.msk.f32.mxu0 %vm28615_vm1, %v28614_v9 }
0x1b29   :  { %26740 = vmatprep.subr.mxu0 %v28614_v9 }
0x1b2f   :  { %26738 = vmatmul.mubr.f32.vlgmr.msra.gmra.mrb[28].mxu0 %v16824_v55 }
0x1b30   :  { %26741 = vmatpush3.msra.mxu0 %v16836_v49  ;;  %26742 = vmatprep.mubr.msk.f32.mxu0 %vm28615_vm1, %v28614_v9  ;;  %v18228_v49 = vand.u32 4294901760, %v18227_v21 }
0x1b31   :  { %26745 = vmatprep.subr.mxu0 %v28614_v9 }
0x1b37   :  { %26743 = vmatmul.mubr.f32.vlgmr.msra.gmra.mrb[28].mxu0 %v16825_v58  ;;  %v18251_v58 = vand.u32 4294901760, %v18250_v26 }
0x1b38   :  { %26746 = vmatpush3.msra.mxu0 %v29954_v36  ;;  %26747 = vmatprep.mubr.msk.f32.mxu0 %vm28615_vm1, %v28614_v9 }
0x1b39   :  { %26750 = vmatprep.subr.mxu0 %v28614_v9 }
0x1b3f   :  { %26748 = vmatmul.mubr.f32.vlgmr.msra.gmra.mrb[28].mxu0 %v16826_v59 }
0x1b40   :  { %26751 = vmatpush3.msra.mxu0 %v16837_v56  ;;  %26752 = vmatprep.mubr.msk.f32.mxu0 %vm28615_vm1, %v28614_v9  ;;  %v18238_v56 = vand.u32 4294901760, %v18237_v53 }
0x1b41   :  { %26755 = vmatprep.subr.mxu0 %v28614_v9 }
0x1b42   :  { %v18239_v61 = vsub.f32 %v18237_v53, %v18238_v56 }
0x1b44   :  { %v18240_v39 = vand.u32 4294901760, %v18239_v61 }
0x1b47   :  { %26753 = vmatmul.mubr.f32.vlgmr.msra.gmra.mrb[28].mxu0 %v16824_v55 }
0x1b48   :  { %26756 = vmatpush3.msra.mxu0 %v29954_v36  ;;  %26757 = vmatprep.mubr.msk.f32.mxu0 %vm28615_vm1, %v28614_v9 }
0x1b49   :  { %26790 = vmatprep.subr.mxu0 %v30027_v10 }
0x1b4f   :  { %26758 = vmatmul.mubr.f32.vlgmr.msra.gmra.mrb[28].mxu0 %v16824_v55  ;;  %v17653_v51 = vpop.f32.mrb[36].mxu1  ;;  %v18229_v55 = vsub.f32 %v18227_v21, %v18228_v49 }
0x1b50   :  { %v26789_v0 = vpop.f32.mrb[37].mxu1  ;;  %26791 = vmatpush3.msra.mxu0 %v30027_v10  ;;  %v17663_v1 = vsel %vm1841_vm2, %v17653_v51, 0 }
0x1b51   :  { %26795 = vmatprep.subr.mxu0 %v17756_v17  ;;  %v17741_v3 = vand.u32 4294901760, %v17663_v1  ;;  %v18230_v59 = vand.u32 4294901760, %v18229_v55  ;;  %v19663_v0 = vsub.f32 %v19580_v62, %v19586_v63 }
0x1b53   :  { %v17742_v36 = vsub.f32 %v17663_v1, %v17741_v3 }
0x1b55   :  { %v17743_v30 = vand.u32 4294901760, %v17742_v36 }
0x1b57   :  { %v17744_v50 = vsub.f32 %v17742_v36, %v17743_v30 }
0x1b59   :  { %v17745_v33 = vand.u32 4294901760, %v17744_v50 }
0x1b7b   :  { %v19099_v27 = vpop.f32.mrb[38].mxu1 }
0x1b7c   :  { %v26879_v13 = vpop.f32.mrb[39].mxu1  ;;  %v19557_v2 = vsel %vm1841_vm2, %v19099_v27, -inf }
0x1b7d   :  { %19558 = vmax.xlane.f32.xlu0 %v19557_v2 }
0x1ba7   :  { %v19553_v54 = vpop.f32.mrb[40].mxu1 }
0x1ba8   :  { %v26909_v16 = vpop.f32.mrb[41].mxu1  ;;  %v19560_v6 = vsel %vm1841_vm2, %v19553_v54, -inf }
0x1ba9   :  { %19561 = vmax.xlane.f32.xlu0 %v19560_v6 }
0x1c0a   :  { %v19559_v18 = vpop.xlane.xlu0 %19558 }
0x1c0b   :  { %v19563_v5 = vsub.f32 %v19099_v27, %v19559_v18 }
0x1c0d   :  { %v19565_v19 = vmul.f32 1.442695, %v19563_v5 }
0x1c0f   :  { %28370 = vpow2.f32 %v19565_v19 }
0x1c19   :  { %v30032_v8 = vpop.eup %28370 }
0x1c1a   :  { %v19569_v41 = vsel %vm1841_vm2, %v30032_v8, 0.0 }
0x1c1b   :  { %19570 = vadd.xlane.f32.xlu0 %v19569_v41 }
0x1c22   :  { %v17200_v23 = vpop.f32.mrb[28].mxu0 }
0x1c23   :  { %v17660_v7 = vsel %vm1841_vm2, %v17200_v23, 0  ;;  %v26759_v29 = vpop.f32.mrb[29].mxu0 }
0x1c24   :  { %v17731_v32 = vand.u32 4294901760, %v17660_v7 }
0x1c26   :  { %v17732_v34 = vsub.f32 %v17660_v7, %v17731_v32 }
0x1c28   :  { %v17733_v35 = vand.u32 4294901760, %v17732_v34 }
0x1c2a   :  { %v17734_v37 = vsub.f32 %v17732_v34, %v17733_v35 }
0x1c2c   :  { %v17735_v47 = vand.u32 4294901760, %v17734_v37 }
0x1c2e   :  { %26792 = vmatprep.mubr.f32.mxu0 %v17735_v47 }
0x1c2f   :  { %26793 = vmatmul.mubr.f32.vlgmr.msra.gmra.mrb[30].mxu0 %v17745_v33 }
0x1c30   :  { %26797 = vmatprep.mubr.f32.mxu0 %v17731_v32  ;;  %26796 = vmatpush3.msra.mxu0 %v17756_v17 }
0x1c31   :  { %26800 = vmatprep.subr.mxu0 %v17753_v11 }
0x1c36   :  { %v19562_v38 = vpop.xlane.xlu0 %19561 }
0x1c37   :  { %v19564_v31 = vsub.f32 %v19553_v54, %v19562_v38  ;;  %26798 = vmatmul.mubr.f32.vlgmr.msra.gmra.mrb[30].mxu0 %v17741_v3  ;;  %v19664_v54 = vand.u32 4294901760, %v19663_v0 }
0x1c38   :  { %26802 = vmatprep.mubr.f32.mxu0 %v17732_v34  ;;  %26801 = vmatpush3.msra.mxu0 %v17753_v11  ;;  %v20983_v34 = vpop.permute.xlu1 %20982 }
0x1c39   :  { %v19567_v57 = vmul.f32 1.442695, %v19564_v31  ;;  %26805 = vmatprep.subr.mxu0 %v30027_v10  ;;  %v19665_v42 = vsub.f32 %v19663_v0, %v19664_v54  ;;  %v20986_v37 = vsel %vm1841_vm2, %v20983_v34, 0 }
0x1c3a   :  { %v21056_v33 = vand.u32 4294901760, %v20986_v37 }
0x1c3b   :  { %28372 = vpow2.f32 %v19567_v57 }
0x1c3c   :  { %v21057_v31 = vsub.f32 %v20986_v37, %v21056_v33 }
0x1c3e   :  { %v21058_v60 = vand.u32 4294901760, %v21057_v31 }
0x1c3f   :  { %26803 = vmatmul.mubr.f32.vlgmr.msra.gmra.mrb[30].mxu0 %v17742_v36 }
0x1c40   :  { %26807 = vmatprep.mubr.f32.mxu0 %v17733_v35  ;;  %26806 = vmatpush3.msra.mxu0 %v30027_v10  ;;  %v30081_v35 = vpop.permute.xlu1 %21436 }
0x1c41   :  { %26810 = vmatprep.subr.mxu0 %v17754_v12 }
0x1c44   :  { %v20985_v50 = vpop.permute.xlu1 %20984 }
0x1c45   :  { %v30042_v22 = vpop.eup %28372  ;;  %v20988_v47 = vsel %vm1841_vm2, %v20985_v50, 0 }
0x1c46   :  { %v19572_v44 = vsel %vm1841_vm2, %v30042_v22, 0.0  ;;  %v20991_v38 = vand.u32 4294901760, %v20988_v47 }
0x1c47   :  { %19573 = vadd.xlane.f32.xlu0 %v19572_v44  ;;  %26808 = vmatmul.mubr.f32.vlgmr.msra.gmra.mrb[30].mxu0 %v17743_v30 }
0x1c48   :  { %26812 = vmatprep.mubr.f32.mxu0 %v17731_v32  ;;  %26811 = vmatpush3.msra.mxu0 %v17754_v12  ;;  %v19666_v12 = vand.u32 4294901760, %v19665_v42  ;;  %v21068_v57 = vsub.f32 %v20988_v47, %v20991_v38 }
0x1c49   :  { %26815 = vmatprep.subr.mxu0 %v30027_v10 }
0x1c4a   :  { %v21069_v40 = vand.u32 4294901760, %v21068_v57 }
0x1c4f   :  { %26813 = vmatmul.mubr.f32.vlgmr.msra.gmra.mrb[30].mxu0 %v17741_v3 }
0x1c50   :  { %26817 = vmatprep.mubr.f32.mxu0 %v17731_v32  ;;  %26816 = vmatpush3.msra.mxu0 %v30027_v10 }
0x1c51   :  { %26820 = vmatprep.subr.mxu0 %v18161_v20 }
0x1c57   :  { %26818 = vmatmul.mubr.f32.vlgmr.msra.gmra.mrb[30].mxu0 %v17741_v3 }
0x1c58   :  { %26822 = vmatprep.mubr.f32.mxu0 %v18230_v59  ;;  %26821 = vmatpush3.msra.mxu0 %v18161_v20 }
0x1c59   :  { %26825 = vmatprep.subr.mxu0 %v18251_v58 }
0x1c5d   :  { %20031 = vrot.lane.b32.xlu0 %v29786_v4, %s28617_s4 }
0x1c5f   :  { %26823 = vmatmul.mubr.f32.vlgmr.msra.gmra.mrb[30].mxu0 %v18240_v39 }
0x1c60   :  { %26827 = vmatprep.mubr.f32.mxu0 %v18226_v43  ;;  %26826 = vmatpush3.msra.mxu0 %v18251_v58 }
0x1c61   :  { %26830 = vmatprep.subr.mxu0 %v18248_v45 }
0x1c67   :  { %26828 = vmatmul.mubr.f32.vlgmr.msra.gmra.mrb[30].mxu0 %v18236_v46 }
0x1c68   :  { %26832 = vmatprep.mubr.f32.mxu0 %v18227_v21  ;;  %26831 = vmatpush3.msra.mxu0 %v18248_v45  ;;  %v20484_v45 = vld [vmem:[#allocation11 + $0x30] sm:$0xff] }
0x1c69   :  { %26835 = vmatprep.subr.mxu0 %v18161_v20  ;;  %v20492_v28 = vand.u32 4294901760, %v20484_v45 }
0x1c6b   :  { %v20579_v21 = vsub.f32 %v20484_v45, %v20492_v28 }
0x1c6f   :  { %26833 = vmatmul.mubr.f32.vlgmr.msra.gmra.mrb[30].mxu0 %v18237_v53 }
0x1c70   :  { %26837 = vmatprep.mubr.f32.mxu0 %v18228_v49  ;;  %26836 = vmatpush3.msra.mxu0 %v18161_v20 }
0x1c71   :  { %26840 = vmatprep.subr.mxu0 %v18249_v52 }
0x1c77   :  { %26838 = vmatmul.mubr.f32.vlgmr.msra.gmra.mrb[30].mxu0 %v18238_v56 }
0x1c78   :  { %26842 = vmatprep.mubr.f32.mxu0 %v18226_v43  ;;  %26841 = vmatpush3.msra.mxu0 %v18249_v52 }
0x1c79   :  { %26845 = vmatprep.subr.mxu0 %v18161_v20 }
0x1c7f   :  { %26843 = vmatmul.mubr.f32.vlgmr.msra.gmra.mrb[30].mxu0 %v18236_v46 }
0x1c80   :  { %26847 = vmatprep.mubr.f32.mxu0 %v18226_v43  ;;  %26846 = vmatpush3.msra.mxu0 %v18161_v20  ;;  %v21070_v20 = vsub.f32 %v21068_v57, %v21069_v40 }
0x1c81   :  { %26910 = vmatprep.subr.mxu0 %v28614_v9 }
0x1c82   :  { %v21071_v44 = vand.u32 4294901760, %v21070_v20 }
0x1c87   :  { %26848 = vmatmul.mubr.f32.vlgmr.msra.gmra.mrb[30].mxu0 %v18236_v46  ;;  %v20580_v46 = vand.u32 4294901760, %v20579_v21 }
0x1c88   :  { %26911 = vmatpush3.msra.mxu0 %v19586_v63  ;;  %26912 = vmatprep.mubr.msk.f32.mxu0 %vm28615_vm1, %v28614_v9 }
0x1c89   :  { %26915 = vmatprep.subr.mxu0 %v28614_v9  ;;  %v20581_v52 = vsub.f32 %v20579_v21, %v20580_v46 }
0x1c8b   :  { %v20582_v49 = vand.u32 4294901760, %v20581_v52 }
0x1ca8   :  { %v19571_v48 = vpop.xlane.xlu0 %19570 }
0x1ca9   :  { %28374 = vrcp.f32 %v19571_v48 }
0x1cb3   :  { %v28375_v51 = vpop.eup %28374 }
0x1cb4   :  { %v19576_v27 = vmul.f32 %v28375_v51, %v30032_v8 }
0x1cb6   :  { %v19583_v13 = vsel %vm1841_vm2, %v19576_v27, 0 }
0x1cb7   :  { %v19651_v2 = vand.u32 4294901760, %v19583_v13 }
0x1cb9   :  { %v19652_v16 = vsub.f32 %v19583_v13, %v19651_v2 }
0x1cbb   :  { %v19653_v6 = vand.u32 4294901760, %v19652_v16 }
0x1cbd   :  { %v19654_v10 = vsub.f32 %v19652_v16, %v19653_v6 }
0x1cbf   :  { %v19655_v11 = vand.u32 4294901760, %v19654_v10 }
0x1cc1   :  { %26913 = vmatmul.mubr.f32.vlgmr.msra.gmra.mrb[32].mxu0 %v19655_v11 }
0x1cc2   :  { %26916 = vmatpush3.msra.mxu0 %v19666_v12  ;;  %26917 = vmatprep.mubr.msk.f32.mxu0 %vm28615_vm1, %v28614_v9 }
0x1cc3   :  { %26920 = vmatprep.subr.mxu0 %v28614_v9 }
0x1cc9   :  { %26918 = vmatmul.mubr.f32.vlgmr.msra.gmra.mrb[32].mxu0 %v19651_v2 }
0x1cca   :  { %26921 = vmatpush3.msra.mxu0 %v19663_v0  ;;  %26922 = vmatprep.mubr.msk.f32.mxu0 %vm28615_vm1, %v28614_v9 }
0x1ccb   :  { %26925 = vmatprep.subr.mxu0 %v28614_v9 }
0x1cd1   :  { %26923 = vmatmul.mubr.f32.vlgmr.msra.gmra.mrb[32].mxu0 %v19652_v16  ;;  %v21440_v16 = vsel %vm1841_vm2, %v30081_v35, 0 }
0x1cd2   :  { %26926 = vmatpush3.msra.mxu0 %v19586_v63  ;;  %26927 = vmatprep.mubr.msk.f32.mxu0 %vm28615_vm1, %v28614_v9  ;;  %v21510_v42 = vand.u32 4294901760, %v21440_v16 }
0x1cd3   :  { %26930 = vmatprep.subr.mxu0 %v28614_v9 }
0x1cd4   :  { %v19574_v15 = vpop.xlane.xlu0 %19573  ;;  %v21511_v11 = vsub.f32 %v21440_v16, %v21510_v42 }
0x1cd5   :  { %28376 = vrcp.f32 %v19574_v15 }
0x1cd8   :  { %v20032_v17 = vpop.permute.xlu0 %20031 }
0x1cd9   :  { %v20038_v18 = vand.u32 4294901760, %v20032_v17  ;;  %26928 = vmatmul.mubr.f32.vlgmr.msra.gmra.mrb[32].mxu0 %v19653_v6 }
0x1cda   :  { %26931 = vmatpush3.msra.mxu0 %v19664_v54  ;;  %26932 = vmatprep.mubr.msk.f32.mxu0 %vm28615_vm1, %v28614_v9  ;;  %v21439_v54 = vpop.permute.xlu1 %21438 }
0x1cdb   :  { %26941 = vmatpush3.msra.mxu1 %v20038_v18  ;;  %26935 = vmatprep.subr.mxu0 %v28614_v9  ;;  %v20115_v8 = vsub.f32 %v20032_v17, %v20038_v18  ;;  %v21442_v6 = vsel %vm1841_vm2, %v21439_v54, 0 }
0x1cdc   :  { %26945 = vmatprep.subr.mxu1 %v28614_v9  ;;  %v21445_v10 = vand.u32 4294901760, %v21442_v6 }
0x1cdd   :  { %v20116_v3 = vand.u32 4294901760, %v20115_v8 }
0x1cde   :  { %v21522_v12 = vsub.f32 %v21442_v6, %v21445_v10 }
0x1cdf   :  { %v28377_v5 = vpop.eup %28376  ;;  %v20117_v7 = vsub.f32 %v20115_v8, %v20116_v3 }
0x1ce0   :  { %v19578_v19 = vmul.f32 %v28377_v5, %v30042_v22  ;;  %v21059_v22 = vsub.f32 %v21057_v31, %v21058_v60  ;;  %v21512_v5 = vand.u32 4294901760, %v21511_v11 }
0x1ce1   :  { %26933 = vmatmul.mubr.f32.vlgmr.msra.gmra.mrb[32].mxu0 %v19651_v2  ;;  %v20118_v30 = vand.u32 4294901760, %v20117_v7 }
0x1ce2   :  { %26936 = vmatpush3.msra.mxu0 %v19586_v63  ;;  %26937 = vmatprep.mubr.msk.f32.mxu0 %vm28615_vm1, %v28614_v9  ;;  %v20035_v1 = vsel %vm1841_vm2, %v19578_v19, 0  ;;  %v21060_v43 = vand.u32 4294901760, %v21059_v22  ;;  %v21523_v19 = vand.u32 4294901760, %v21522_v12 }
0x1ce3   :  { %v20103_v41 = vand.u32 4294901760, %v20035_v1  ;;  %26970 = vmatprep.subr.mxu0 %v20492_v28 }
0x1ce5   :  { %v20104_v36 = vsub.f32 %v20035_v1, %v20103_v41  ;;  %v21524_v1 = vsub.f32 %v21522_v12, %v21523_v19 }
0x1ce7   :  { %v20105_v23 = vand.u32 4294901760, %v20104_v36 }
0x1ce9   :  { %26938 = vmatmul.mubr.f32.vlgmr.msra.gmra.mrb[32].mxu0 %v19651_v2  ;;  %v20106_v29 = vsub.f32 %v20104_v36, %v20105_v23 }
0x1cea   :  { %26971 = vmatpush3.msra.mxu0 %v20492_v28 }
0x1ceb   :  { %v20107_v32 = vand.u32 4294901760, %v20106_v29  ;;  %26975 = vmatprep.subr.mxu0 %v20582_v49 }
0x1ced   :  { %26943 = vmatmul.mubr.f32.vlgmr.msra.gmra.mrb[42].mxu1 %v20107_v32 }
0x1cee   :  { %26946 = vmatpush3.msra.mxu1 %v20118_v30  ;;  %26947 = vmatprep.mubr.msk.f32.mxu1 %vm28615_vm1, %v28614_v9 }
0x1cef   :  { %26950 = vmatprep.subr.mxu1 %v28614_v9 }
0x1cf5   :  { %26948 = vmatmul.mubr.f32.vlgmr.msra.gmra.mrb[42].mxu1 %v20103_v41 }
0x1cf6   :  { %26951 = vmatpush3.msra.mxu1 %v20115_v8  ;;  %26952 = vmatprep.mubr.msk.f32.mxu1 %vm28615_vm1, %v28614_v9  ;;  %v21513_v8 = vsub.f32 %v21511_v11, %v21512_v5 }
0x1cf7   :  { %26955 = vmatprep.subr.mxu1 %v28614_v9 }
0x1cfd   :  { %26953 = vmatmul.mubr.f32.vlgmr.msra.gmra.mrb[42].mxu1 %v20104_v36 }
0x1cfe   :  { %26956 = vmatpush3.msra.mxu1 %v20038_v18  ;;  %26957 = vmatprep.mubr.msk.f32.mxu1 %vm28615_vm1, %v28614_v9 }
0x1cff   :  { %26960 = vmatprep.subr.mxu1 %v28614_v9 }
0x1d05   :  { %26958 = vmatmul.mubr.f32.vlgmr.msra.gmra.mrb[42].mxu1 %v20105_v23 }
0x1d06   :  { %26961 = vmatpush3.msra.mxu1 %v20116_v3  ;;  %26962 = vmatprep.mubr.msk.f32.mxu1 %vm28615_vm1, %v28614_v9  ;;  %v21525_v3 = vand.u32 4294901760, %v21524_v1 }
0x1d07   :  { %26965 = vmatprep.subr.mxu1 %v28614_v9 }
0x1d0d   :  { %26963 = vmatmul.mubr.f32.vlgmr.msra.gmra.mrb[42].mxu1 %v20103_v41 }
0x1d0e   :  { %26966 = vmatpush3.msra.mxu1 %v20038_v18  ;;  %26967 = vmatprep.mubr.msk.f32.mxu1 %vm28615_vm1, %v28614_v9 }
0x1d0f   :  { %27000 = vmatprep.subr.mxu1 %v28614_v9 }
0x1d15   :  { %26968 = vmatmul.mubr.f32.vlgmr.msra.gmra.mrb[42].mxu1 %v20103_v41  ;;  %v21514_v41 = vand.u32 4294901760, %v21513_v8 }
0x1d16   :  { %27001 = vmatpush3.xpose.msra.mxu1 %v20991_v38  ;;  %27002 = vmatprep.mubr.msk.f32.mxu1 %vm28615_vm1, %v28614_v9 }
0x1d17   :  { %27005 = vmatprep.subr.mxu1 %v28614_v9 }
0x1d19   :  { %27003 = vmatmul.mubr.f32.vlgmr.msra.gmra.mrb[44].mxu1 %v21060_v43 }
0x1d1a   :  { %27006 = vmatpush3.xpose.msra.mxu1 %v21071_v44  ;;  %27007 = vmatprep.mubr.msk.f32.mxu1 %vm28615_vm1, %v28614_v9 }
0x1d1b   :  { %27010 = vmatprep.subr.mxu1 %v28614_v9 }
0x1d21   :  { %27008 = vmatmul.mubr.f32.vlgmr.msra.gmra.mrb[44].mxu1 %v21056_v33 }
0x1d22   :  { %27011 = vmatpush3.xpose.msra.mxu1 %v21068_v57  ;;  %27012 = vmatprep.mubr.msk.f32.mxu1 %vm28615_vm1, %v28614_v9 }
0x1d23   :  { %27015 = vmatprep.subr.mxu1 %v28614_v9 }
0x1d29   :  { %27013 = vmatmul.mubr.f32.vlgmr.msra.gmra.mrb[44].mxu1 %v21057_v31 }
0x1d2a   :  { %27016 = vmatpush3.xpose.msra.mxu1 %v20991_v38  ;;  %27017 = vmatprep.mubr.msk.f32.mxu1 %vm28615_vm1, %v28614_v9 }
0x1d2b   :  { %27020 = vmatprep.subr.mxu1 %v28614_v9 }
0x1d31   :  { %27018 = vmatmul.mubr.f32.vlgmr.msra.gmra.mrb[44].mxu1 %v21058_v60 }
0x1d32   :  { %27021 = vmatpush3.xpose.msra.mxu1 %v21069_v40  ;;  %27022 = vmatprep.mubr.msk.f32.mxu1 %vm28615_vm1, %v28614_v9 }
0x1d33   :  { %27025 = vmatprep.subr.mxu1 %v28614_v9 }
0x1d39   :  { %27023 = vmatmul.mubr.f32.vlgmr.msra.gmra.mrb[44].mxu1 %v21056_v33 }
0x1d3a   :  { %27026 = vmatpush3.xpose.msra.mxu1 %v20991_v38  ;;  %27027 = vmatprep.mubr.msk.f32.mxu1 %vm28615_vm1, %v28614_v9 }
0x1d3b   :  { %27060 = vmatprep.subr.mxu1 %v28614_v9 }
0x1d41   :  { %27028 = vmatmul.mubr.f32.vlgmr.msra.gmra.mrb[44].mxu1 %v21056_v33 }
0x1d42   :  { %27062 = vmatprep.mubr.msk.f32.mxu1 %vm28615_vm1, %v28614_v9 }
0x1dbc   :  { %v20027_v53 = vpop.f32.mrb[32].mxu0 }
0x1dbd   :  { %v20486_v26 = vsel %vm1841_vm2, %v20027_v53, 0  ;;  %v26939_v55 = vpop.f32.mrb[33].mxu0 }
0x1dbe   :  { %v20557_v56 = vand.u32 4294901760, %v20486_v26 }
0x1dc0   :  { %v20558_v58 = vsub.f32 %v20486_v26, %v20557_v56 }
0x1dc2   :  { %v20559_v59 = vand.u32 4294901760, %v20558_v58 }
0x1dc4   :  { %v20560_v61 = vsub.f32 %v20558_v58, %v20559_v59 }
0x1dc6   :  { %v20561_v39 = vand.u32 4294901760, %v20560_v61 }
0x1dc8   :  { %26972 = vmatprep.mubr.f32.mxu0 %v20561_v39 }
0x1de8   :  { %v20479_v62 = vpop.f32.mrb[42].mxu1 }
0x1de9   :  { %v20489_v63 = vsel %vm1841_vm2, %v20479_v62, 0  ;;  %v26969_v48 = vpop.f32.mrb[43].mxu1 }
0x1dea   :  { %v20567_v51 = vand.u32 4294901760, %v20489_v63 }
0x1dec   :  { %v20568_v0 = vsub.f32 %v20489_v63, %v20567_v51 }
0x1dee   :  { %v20569_v27 = vand.u32 4294901760, %v20568_v0 }
0x1df0   :  { %v20570_v13 = vsub.f32 %v20568_v0, %v20569_v27 }
0x1df2   :  { %v20571_v2 = vand.u32 4294901760, %v20570_v13 }
0x1df4   :  { %26973 = vmatmul.mubr.f32.vlgmr.msra.gmra.mrb[30].mxu0 %v20571_v2 }
0x1df5   :  { %26977 = vmatprep.mubr.f32.mxu0 %v20557_v56  ;;  %26976 = vmatpush3.msra.mxu0 %v20582_v49 }
0x1df6   :  { %26980 = vmatprep.subr.mxu0 %v20579_v21 }
0x1dfc   :  { %26978 = vmatmul.mubr.f32.vlgmr.msra.gmra.mrb[30].mxu0 %v20567_v51 }
0x1dfd   :  { %26982 = vmatprep.mubr.f32.mxu0 %v20558_v58  ;;  %26981 = vmatpush3.msra.mxu0 %v20579_v21 }
0x1dfe   :  { %26985 = vmatprep.subr.mxu0 %v20492_v28 }
0x1e04   :  { %26983 = vmatmul.mubr.f32.vlgmr.msra.gmra.mrb[30].mxu0 %v20568_v0 }
0x1e05   :  { %26987 = vmatprep.mubr.f32.mxu0 %v20559_v59  ;;  %26986 = vmatpush3.msra.mxu0 %v20492_v28 }
0x1e06   :  { %26990 = vmatprep.subr.mxu0 %v20580_v46 }
0x1e0c   :  { %26988 = vmatmul.mubr.f32.vlgmr.msra.gmra.mrb[30].mxu0 %v20569_v27 }
0x1e0d   :  { %26992 = vmatprep.mubr.f32.mxu0 %v20557_v56  ;;  %26991 = vmatpush3.msra.mxu0 %v20580_v46 }
0x1e0e   :  { %26995 = vmatprep.subr.mxu0 %v20492_v28 }
0x1e14   :  { %26993 = vmatmul.mubr.f32.vlgmr.msra.gmra.mrb[30].mxu0 %v20567_v51  ;;  %v21432_v15 = vpop.f32.mrb[44].mxu1 }
0x1e15   :  { %26996 = vmatpush3.msra.mxu0 %v20492_v28  ;;  %26997 = vmatprep.mubr.f32.mxu0 %v20557_v56  ;;  %v27029_v17 = vpop.f32.mrb[45].mxu1  ;;  %v21890_v18 = vsel %vm1841_vm2, %v21432_v15, -inf }
0x1e16   :  { %21891 = vmax.xlane.f32.xlu1 %v21890_v18  ;;  %27030 = vmatprep.subr.mxu0 %v28614_v9 }
0x1e1c   :  { %26998 = vmatmul.mubr.f32.vlgmr.msra.gmra.mrb[30].mxu0 %v20567_v51 }
0x1e1d   :  { %27031 = vmatpush3.xpose.msra.mxu0 %v21445_v10  ;;  %27032 = vmatprep.mubr.msk.f32.mxu0 %vm28615_vm1, %v28614_v9 }
0x1e1e   :  { %27035 = vmatprep.subr.mxu0 %v28614_v9 }
0x1e20   :  { %27033 = vmatmul.mubr.f32.vlgmr.msra.gmra.mrb[34].mxu0 %v21514_v41 }
0x1e21   :  { %27036 = vmatpush3.xpose.msra.mxu0 %v21525_v3  ;;  %27037 = vmatprep.mubr.msk.f32.mxu0 %vm28615_vm1, %v28614_v9 }
0x1e22   :  { %27040 = vmatprep.subr.mxu0 %v28614_v9 }
0x1e28   :  { %27038 = vmatmul.mubr.f32.vlgmr.msra.gmra.mrb[34].mxu0 %v21510_v42 }
0x1e29   :  { %27041 = vmatpush3.xpose.msra.mxu0 %v21522_v12  ;;  %27042 = vmatprep.mubr.msk.f32.mxu0 %vm28615_vm1, %v28614_v9  ;;  %v22817_v12 = vld [vmem:[#allocation11 + $0x38] sm:$0xff] }
0x1e2a   :  { %27045 = vmatprep.subr.mxu0 %v28614_v9 }
0x1e30   :  { %27043 = vmatmul.mubr.f32.vlgmr.msra.gmra.mrb[34].mxu0 %v21511_v11 }
0x1e31   :  { %27046 = vmatpush3.xpose.msra.mxu0 %v21445_v10  ;;  %27047 = vmatprep.mubr.msk.f32.mxu0 %vm28615_vm1, %v28614_v9 }
0x1e32   :  { %27050 = vmatprep.subr.mxu0 %v28614_v9 }
0x1e38   :  { %27048 = vmatmul.mubr.f32.vlgmr.msra.gmra.mrb[34].mxu0 %v21512_v5 }
0x1e39   :  { %27051 = vmatpush3.xpose.msra.mxu0 %v21523_v19  ;;  %27052 = vmatprep.mubr.msk.f32.mxu0 %vm28615_vm1, %v28614_v9 }
0x1e3a   :  { %27055 = vmatprep.subr.mxu0 %v28614_v9 }
0x1e40   :  { %27053 = vmatmul.mubr.f32.vlgmr.msra.gmra.mrb[34].mxu0 %v21510_v42 }
0x1e41   :  { %27056 = vmatpush3.xpose.msra.mxu0 %v21445_v10  ;;  %27057 = vmatprep.mubr.msk.f32.mxu0 %vm28615_vm1, %v28614_v9 }
0x1e42   :  { %27090 = vmatprep.subr.mxu0 %v28614_v9 }
0x1e48   :  { %27058 = vmatmul.mubr.f32.vlgmr.msra.gmra.mrb[34].mxu0 %v21510_v42 }
0x1e49   :  { %27092 = vmatprep.mubr.msk.f32.mxu0 %vm28615_vm1, %v28614_v9 }
0x1ea3   :  { %v21892_v36 = vpop.xlane.xlu1 %21891 }
0x1ea4   :  { %v21896_v23 = vsub.f32 %v21432_v15, %v21892_v36  ;;  %v22825_v15 = vand.u32 4294901760, %v22817_v12 }
0x1ea6   :  { %v21898_v7 = vmul.f32 1.442695, %v21896_v23  ;;  %v22912_v17 = vsub.f32 %v22817_v12, %v22825_v15 }
0x1ea8   :  { %28378 = vpow2.f32 %v21898_v7  ;;  %v22913_v18 = vand.u32 4294901760, %v22912_v17 }
0x1eaa   :  { %v22914_v5 = vsub.f32 %v22912_v17, %v22913_v18 }
0x1eac   :  { %v22915_v19 = vand.u32 4294901760, %v22914_v5 }
0x1eb2   :  { %v28379_v34 = vpop.eup %28378 }
0x1eb3   :  { %v21902_v35 = vsel %vm1841_vm2, %v28379_v34, 0.0 }
0x1f1b   :  { %v21886_v29 = vpop.f32.mrb[34].mxu0 }
0x1f1c   :  { %v27059_v32 = vpop.f32.mrb[35].mxu0  ;;  %v21893_v30 = vsel %vm1841_vm2, %v21886_v29, -inf }
0x1f1d   :  { %21894 = vmax.xlane.f32.xlu0 %v21893_v30  ;;  %v24525_v32 = vld [vmem:[%s30277_s11 + $0x1] ss:$0 sm:$0xff] }
0x1f21   :  { %21903 = vadd.xlane.f32.xlu0 %v21902_v35 }
0x1f37   :  { %21912 = vrot.lane.b32.xlu0 %v29791_v14, %s28618_s27 }
0x1faa   :  { %v21895_v50 = vpop.xlane.xlu0 %21894 }
0x1fab   :  { %v21897_v37 = vsub.f32 %v21886_v29, %v21895_v50 }
0x1fad   :  { %v21900_v47 = vmul.f32 1.442695, %v21897_v37 }
0x1fae   :  { %v21904_v33 = vpop.xlane.xlu0 %21903 }
0x1faf   :  { %28380 = vpow2.f32 %v21900_v47 }
0x1fb0   :  { %28382 = vrcp.f32 %v21904_v33 }
0x1fb2   :  { %v21913_v38 = vpop.permute.xlu0 %21912 }
0x1fb3   :  { %v21919_v31 = vand.u32 4294901760, %v21913_v38 }
0x1fb5   :  { %27061 = vmatpush3.msra.mxu1 %v21919_v31  ;;  %v21996_v20 = vsub.f32 %v21913_v38, %v21919_v31 }
0x1fb6   :  { %27065 = vmatprep.subr.mxu1 %v28614_v9 }
0x1fb7   :  { %v21997_v44 = vand.u32 4294901760, %v21996_v20 }
0x1fb9   :  { %v28381_v57 = vpop.eup %28380  ;;  %v21998_v21 = vsub.f32 %v21996_v20, %v21997_v44 }
0x1fba   :  { %v28383_v60 = vpop.eup %28382  ;;  %v21905_v40 = vsel %vm1841_vm2, %v28381_v57, 0.0 }
0x1fbb   :  { %v21909_v22 = vmul.f32 %v28383_v60, %v28379_v34  ;;  %21906 = vadd.xlane.f32.xlu1 %v21905_v40  ;;  %v21999_v49 = vand.u32 4294901760, %v21998_v21 }
0x1fbd   :  { %v21916_v14 = vsel %vm1841_vm2, %v21909_v22, 0 }
0x1fbe   :  { %v21984_v43 = vand.u32 4294901760, %v21916_v14 }
0x1fc0   :  { %v21985_v45 = vsub.f32 %v21916_v14, %v21984_v43 }
0x1fc2   :  { %v21986_v28 = vand.u32 4294901760, %v21985_v45 }
0x1fc4   :  { %v21987_v46 = vsub.f32 %v21985_v45, %v21986_v28 }
0x1fc6   :  { %v21988_v52 = vand.u32 4294901760, %v21987_v46  ;;  %v23377_v46 = vld [vmem:[#allocation13 + $0x38] sm:$0xff] }
0x1fc8   :  { %27063 = vmatmul.mubr.f32.vlgmr.msra.gmra.mrb[46].mxu1 %v21988_v52 }
0x1fc9   :  { %27066 = vmatpush3.msra.mxu1 %v21999_v49  ;;  %27067 = vmatprep.mubr.msk.f32.mxu1 %vm28615_vm1, %v28614_v9  ;;  %v23402_v49 = vand.u32 4294901760, %v23377_v46 }
0x1fca   :  { %27070 = vmatprep.subr.mxu1 %v28614_v9 }
0x1fcc   :  { %22364 = vrot.lane.b32.xlu1 %v29786_v4, %s28618_s27 }
0x1fd0   :  { %27068 = vmatmul.mubr.f32.vlgmr.msra.gmra.mrb[46].mxu1 %v21984_v43 }
0x1fd1   :  { %27071 = vmatpush3.msra.mxu1 %v21996_v20  ;;  %27072 = vmatprep.mubr.msk.f32.mxu1 %vm28615_vm1, %v28614_v9 }
0x1fd2   :  { %27075 = vmatprep.subr.mxu1 %v28614_v9 }
0x1fd8   :  { %27073 = vmatmul.mubr.f32.vlgmr.msra.gmra.mrb[46].mxu1 %v21985_v45  ;;  %v23376_v45 = vld [vmem:[#allocation13 + $0x30] sm:$0xff] }
0x1fd9   :  { %27076 = vmatpush3.msra.mxu1 %v21919_v31  ;;  %27077 = vmatprep.mubr.msk.f32.mxu1 %vm28615_vm1, %v28614_v9  ;;  %v23399_v52 = vand.u32 4294901760, %v23376_v45 }
0x1fda   :  { %27080 = vmatprep.subr.mxu1 %v28614_v9 }
0x1fe0   :  { %27078 = vmatmul.mubr.f32.vlgmr.msra.gmra.mrb[46].mxu1 %v21986_v28 }
0x1fe1   :  { %27081 = vmatpush3.msra.mxu1 %v21997_v44  ;;  %27082 = vmatprep.mubr.msk.f32.mxu1 %vm28615_vm1, %v28614_v9  ;;  %v23375_v44 = vld [vmem:[#allocation13 + $0x28] sm:$0xff] }
0x1fe2   :  { %27085 = vmatprep.subr.mxu1 %v28614_v9  ;;  %v23396_v21 = vand.u32 4294901760, %v23375_v44 }
0x1fe8   :  { %27083 = vmatmul.mubr.f32.vlgmr.msra.gmra.mrb[46].mxu1 %v21984_v43 }
0x1fe9   :  { %27086 = vmatpush3.msra.mxu1 %v21919_v31  ;;  %27087 = vmatprep.mubr.msk.f32.mxu1 %vm28615_vm1, %v28614_v9 }
0x1ff0   :  { %27088 = vmatmul.mubr.f32.vlgmr.msra.gmra.mrb[46].mxu1 %v21984_v43  ;;  %v23374_v43 = vld [vmem:[#allocation13 + $0x20] sm:$0xff] }
0x1ff1   :  { %v23393_v28 = vand.u32 4294901760, %v23374_v43 }
0x2048   :  { %v21907_v4 = vpop.xlane.xlu1 %21906 }
0x2049   :  { %28384 = vrcp.f32 %v21907_v4  ;;  %v30199_v4 = vpack.c.bf16 %v23396_v21, %v23393_v28 }
0x204b   :  { %27667 = vmatprep.subr.bf16.mxu1 %v30199_v4 }
0x204c   :  { %v22365_v53 = vpop.permute.xlu1 %22364  ;;  %27669 = vmatpush3.bf16.msra.mxu1 %v30199_v4 }
0x204d   :  { %v22371_v26 = vand.u32 4294901760, %v22365_v53 }
0x204f   :  { %27091 = vmatpush3.msra.mxu0 %v22371_v26  ;;  %v22448_v58 = vsub.f32 %v22365_v53, %v22371_v26  ;;  %v30201_v53 = vpack.c.bf16 %v23402_v49, %v23399_v52 }
0x2050   :  { %27095 = vmatprep.subr.mxu0 %v28614_v9 }
0x2051   :  { %v22449_v39 = vand.u32 4294901760, %v22448_v58  ;;  %27671 = vmatprep.subr.bf16.mxu1 %v30201_v53 }
0x2052   :  { %27673 = vmatpush3.bf16.msra.mxu1 %v30201_v53 }
0x2053   :  { %v28385_v55 = vpop.eup %28384  ;;  %v22450_v48 = vsub.f32 %v22448_v58, %v22449_v39 }
0x2054   :  { %v21911_v56 = vmul.f32 %v28385_v55, %v28381_v57  ;;  %v23490_v55 = vsub.f32 %v23375_v44, %v23396_v21 }
0x2055   :  { %v22451_v27 = vand.u32 4294901760, %v22450_v48 }
0x2056   :  { %v22368_v59 = vsel %vm1841_vm2, %v21911_v56, 0 }
0x2057   :  { %v22436_v61 = vand.u32 4294901760, %v22368_v59 }
0x2059   :  { %v22437_v62 = vsub.f32 %v22368_v59, %v22436_v61 }
0x205b   :  { %v22438_v63 = vand.u32 4294901760, %v22437_v62 }
0x205d   :  { %v22439_v51 = vsub.f32 %v22437_v62, %v22438_v63 }
0x205f   :  { %v22440_v0 = vand.u32 4294901760, %v22439_v51 }
0x2061   :  { %27093 = vmatmul.mubr.f32.vlgmr.msra.gmra.mrb[36].mxu0 %v22440_v0 }
0x2062   :  { %27096 = vmatpush3.msra.mxu0 %v22451_v27  ;;  %27097 = vmatprep.mubr.msk.f32.mxu0 %vm28615_vm1, %v28614_v9 }
0x2063   :  { %27100 = vmatprep.subr.mxu0 %v28614_v9 }
0x2069   :  { %27098 = vmatmul.mubr.f32.vlgmr.msra.gmra.mrb[36].mxu0 %v22436_v61 }
0x206a   :  { %27101 = vmatpush3.msra.mxu0 %v22448_v58  ;;  %27102 = vmatprep.mubr.msk.f32.mxu0 %vm28615_vm1, %v28614_v9  ;;  %v23491_v58 = vand.u32 4294901760, %v23490_v55 }
0x206b   :  { %27105 = vmatprep.subr.mxu0 %v28614_v9 }
0x2071   :  { %27103 = vmatmul.mubr.f32.vlgmr.msra.gmra.mrb[36].mxu0 %v22437_v62  ;;  %v23504_v62 = vsub.f32 %v23377_v46, %v23402_v49 }
0x2072   :  { %27106 = vmatpush3.msra.mxu0 %v22371_v26  ;;  %27107 = vmatprep.mubr.msk.f32.mxu0 %vm28615_vm1, %v28614_v9 }
0x2073   :  { %27110 = vmatprep.subr.mxu0 %v28614_v9  ;;  %v23505_v0 = vand.u32 4294901760, %v23504_v62 }
0x2079   :  { %27108 = vmatmul.mubr.f32.vlgmr.msra.gmra.mrb[36].mxu0 %v22438_v63 }
0x207a   :  { %27111 = vmatpush3.msra.mxu0 %v22449_v39  ;;  %27112 = vmatprep.mubr.msk.f32.mxu0 %vm28615_vm1, %v28614_v9  ;;  %v23497_v39 = vsub.f32 %v23376_v45, %v23399_v52  ;;  %v23933_v45 = vld [vmem:[#allocation14 + $0x30] sm:$0xff] }
0x207b   :  { %27115 = vmatprep.subr.mxu0 %v28614_v9  ;;  %v23948_v46 = vand.u32 4294901760, %v23933_v45 }
0x207c   :  { %v23498_v51 = vand.u32 4294901760, %v23497_v39 }
0x207e   :  { %v27702_v12 = vpack.c.bf16 %v23505_v0, %v23498_v51 }
0x2081   :  { %27113 = vmatmul.mubr.f32.vlgmr.msra.gmra.mrb[36].mxu0 %v22436_v61 }
0x2082   :  { %27116 = vmatpush3.msra.mxu0 %v22371_v26  ;;  %27117 = vmatprep.mubr.msk.f32.mxu0 %vm28615_vm1, %v28614_v9  ;;  %v23483_v26 = vsub.f32 %v23374_v43, %v23393_v28  ;;  %v23934_v28 = vld [vmem:[#allocation14 + $0x38] sm:$0xff] }
0x2083   :  { %27120 = vmatprep.subr.mxu0 %v22825_v15  ;;  %v23951_v52 = vand.u32 4294901760, %v23934_v28 }
0x2084   :  { %v23484_v56 = vand.u32 4294901760, %v23483_v26 }
0x2086   :  { %v23485_v59 = vsub.f32 %v23483_v26, %v23484_v56 }
0x2088   :  { %v23486_v63 = vand.u32 4294901760, %v23485_v59  ;;  %v24053_v59 = vsub.f32 %v23934_v28, %v23951_v52 }
0x2089   :  { %27118 = vmatmul.mubr.f32.vlgmr.msra.gmra.mrb[36].mxu0 %v22436_v61  ;;  %v23492_v61 = vsub.f32 %v23490_v55, %v23491_v58 }
0x208a   :  { %27121 = vmatpush3.msra.mxu0 %v22825_v15 }
0x208b   :  { %27125 = vmatprep.subr.mxu0 %v22915_v19  ;;  %v23493_v48 = vand.u32 4294901760, %v23492_v61 }
0x208d   :  { %v27674_v27 = vpack.c.bf16 %v23493_v48, %v23486_v63  ;;  %v24054_v63 = vand.u32 4294901760, %v24053_v59 }
0x208f   :  { %27675 = vmatprep.subr.bf16.mxu1 %v27674_v27 }
0x20c3   :  { %v22360_v13 = vpop.f32.mrb[46].mxu1 }
0x20c4   :  { %v22819_v2 = vsel %vm1841_vm2, %v22360_v13, 0  ;;  %v27089_v54 = vpop.f32.mrb[47].mxu1  ;;  %v23499_v13 = vsub.f32 %v23497_v39, %v23498_v51 }
0x20c5   :  { %v22890_v16 = vand.u32 4294901760, %v22819_v2 }
0x20c6   :  { %v23500_v54 = vand.u32 4294901760, %v23499_v13 }
0x20c7   :  { %v22891_v6 = vsub.f32 %v22819_v2, %v22890_v16  ;;  %v23506_v2 = vsub.f32 %v23504_v62, %v23505_v0  ;;  %v24055_v0 = vsub.f32 %v24053_v59, %v24054_v63 }
0x20c9   :  { %v22892_v42 = vand.u32 4294901760, %v22891_v6 }
0x20cb   :  { %v22893_v10 = vsub.f32 %v22891_v6, %v22892_v42 }
0x20cd   :  { %v22894_v11 = vand.u32 4294901760, %v22893_v10  ;;  %v27686_v10 = vpack.c.bf16 %v23504_v62, %v23497_v39 }
0x20cf   :  { %27122 = vmatprep.mubr.f32.mxu0 %v22894_v11  ;;  %v27698_v11 = vpack.c.bf16 %v23491_v58, %v23484_v56  ;;  %v24046_v58 = vsub.f32 %v23933_v45, %v23948_v46 }
0x20d1   :  { %v24047_v62 = vand.u32 4294901760, %v24046_v58 }
0x20d3   :  { %v24048_v51 = vsub.f32 %v24046_v58, %v24047_v62 }
0x20d5   :  { %v24049_v13 = vand.u32 4294901760, %v24048_v51 }
0x215c   :  { %v22812_v9 = vpop.f32.mrb[36].mxu0 }
0x215d   :  { %v22822_v8 = vsel %vm1841_vm2, %v22812_v9, 0  ;;  %v27119_v1 = vpop.f32.mrb[37].mxu0 }
0x215e   :  { %v22900_v41 = vand.u32 4294901760, %v22822_v8  ;;  %v24528_v1 = vld [vmem:[%s30278_s12 + $0x1] ss:$0 sm:$0xff] }
0x2160   :  { %v22901_v3 = vsub.f32 %v22822_v8, %v22900_v41 }
0x2162   :  { %v22902_v36 = vand.u32 4294901760, %v22901_v3 }
0x2164   :  { %v22903_v23 = vsub.f32 %v22901_v3, %v22902_v36 }
0x2166   :  { %v22904_v7 = vand.u32 4294901760, %v22903_v23  ;;  %v24529_v23 = vld [vmem:[%s30279_s13 + $0x1] ss:$0 sm:$0xff] }
0x2168   :  { %27123 = vmatmul.mubr.f32.vlgmr.msra.gmra.mrb[30].mxu0 %v22904_v7 }
0x2169   :  { %27127 = vmatprep.mubr.f32.mxu0 %v22890_v16  ;;  %27126 = vmatpush3.msra.mxu0 %v22915_v19 }
0x216a   :  { %27130 = vmatprep.subr.mxu0 %v22912_v17 }
0x2170   :  { %27128 = vmatmul.mubr.f32.vlgmr.msra.gmra.mrb[30].mxu0 %v22900_v41 }
0x2171   :  { %27132 = vmatprep.mubr.f32.mxu0 %v22891_v6  ;;  %27131 = vmatpush3.msra.mxu0 %v22912_v17 }
0x2172   :  { %27135 = vmatprep.subr.mxu0 %v22825_v15 }
0x2178   :  { %27133 = vmatmul.mubr.f32.vlgmr.msra.gmra.mrb[30].mxu0 %v22901_v3 }
0x2179   :  { %27137 = vmatprep.mubr.f32.mxu0 %v22892_v42  ;;  %27136 = vmatpush3.msra.mxu0 %v22825_v15  ;;  %v27682_v42 = vpack.c.bf16 %v23490_v55, %v23483_v26 }
0x217a   :  { %27140 = vmatprep.subr.mxu0 %v22913_v18 }
0x2180   :  { %27138 = vmatmul.mubr.f32.vlgmr.msra.gmra.mrb[30].mxu0 %v22902_v36 }
0x2181   :  { %27142 = vmatprep.mubr.f32.mxu0 %v22890_v16  ;;  %27141 = vmatpush3.msra.mxu0 %v22913_v18 }
0x2182   :  { %27145 = vmatprep.subr.mxu0 %v22825_v15 }
0x2188   :  { %27143 = vmatmul.mubr.f32.vlgmr.msra.gmra.mrb[30].mxu0 %v22900_v41 }
0x2189   :  { %27147 = vmatprep.mubr.f32.mxu0 %v22890_v16  ;;  %27146 = vmatpush3.msra.mxu0 %v22825_v15  ;;  %v23507_v16 = vand.u32 4294901760, %v23506_v2  ;;  %v24056_v2 = vand.u32 4294901760, %v24055_v0 }
0x218b   :  { %v27678_v6 = vpack.c.bf16 %v23507_v16, %v23500_v54  ;;  %v27726_v54 = vpack.c.bf16 %v24056_v2, %v24049_v13 }
0x2190   :  { %27148 = vmatmul.mubr.f32.vlgmr.msra.gmra.mrb[30].mxu0 %v22900_v41 }
0x2263   :  { %v27149_v29 = vpop.f32.mrb[30].mxu0 }
0x2264   :  { %v23316_v30 = vadd.f32 %v27149_v29, %v29569_v24  ;;  %v23303_v34 = vpop.f32.mrb[31].mxu0 }
0x2265   :  { %v23315_v35 = vadd.f32 %v23303_v34, %v29571_v25 }
0x2266   :  { %v30187_v50 = vadd.f32 %v24525_v32, %v23316_v30 }
0x2267   :  { %v30189_v37 = vadd.f32 %v24525_v32, %v23315_v35 }
0x2268   :  { %v23334_v47 = vsel %vm174_vm0, %v30187_v50, 0.0 }
0x2269   :  { %23335 = vadd.xlane.f32.xlu0 %v23334_v47  ;;  %v23331_v33 = vsel %vm174_vm0, %v30189_v37, 0.0 }
0x226a   :  { %23332 = vadd.xlane.f32.xlu1 %v23331_v33 }
0x22f6   :  { %v23336_v38 = vpop.xlane.xlu0 %23335 }
0x22f7   :  { %v23338_v31 = vmul.f32 0.03125, %v23336_v38  ;;  %v23333_v57 = vpop.xlane.xlu1 %23332 }
0x22f8   :  { %v23337_v60 = vmul.f32 0.03125, %v23333_v57 }
0x22f9   :  { %v23340_v24 = vsub.f32 %v30187_v50, %v23338_v31 }
0x22fa   :  { %v23339_v25 = vsub.f32 %v30189_v37, %v23337_v60 }
0x22fb   :  { %v23342_v40 = vmul.f32 %v23340_v24, %v23340_v24 }
0x22fc   :  { %v23341_v22 = vmul.f32 %v23339_v25, %v23339_v25 }
0x22fd   :  { %v23346_v20 = vsel %vm174_vm0, %v23342_v40, 0.0 }
0x22fe   :  { %23347 = vadd.xlane.f32.xlu1 %v23346_v20  ;;  %v23343_v14 = vsel %vm174_vm0, %v23341_v22, 0.0  ;;  %v23931_v20 = vld [vmem:[#allocation14 + $0x20] sm:$0xff] }
0x22ff   :  { %23344 = vadd.xlane.f32.xlu0 %v23343_v14  ;;  %v23932_v14 = vld [vmem:[#allocation14 + $0x28] sm:$0xff]  ;;  %v23942_v43 = vand.u32 4294901760, %v23931_v20 }
0x2300   :  { %v23945_v44 = vand.u32 4294901760, %v23932_v14 }
0x2301   :  { %v24032_v49 = vsub.f32 %v23931_v20, %v23942_v43 }
0x2302   :  { %v30223_v21 = vpack.c.bf16 %v23945_v44, %v23942_v43  ;;  %v24039_v26 = vsub.f32 %v23932_v14, %v23945_v44 }
0x2303   :  { %v24033_v55 = vand.u32 4294901760, %v24032_v49 }
0x2304   :  { %27715 = vmatprep.subr.bf16.mxu0 %v30223_v21  ;;  %v27730_v16 = vpack.c.bf16 %v24039_v26, %v24032_v49 }
0x2305   :  { %27717 = vmatpush3.bf16.msra.mxu0 %v30223_v21  ;;  %v24034_v56 = vsub.f32 %v24032_v49, %v24033_v55 }
0x2307   :  { %v24035_v39 = vand.u32 4294901760, %v24034_v56 }
0x238b   :  { %v23348_v15 = vpop.xlane.xlu1 %23347 }
0x238c   :  { %v23350_v17 = vmul.f32 0.03125, %v23348_v15  ;;  %v23345_v18 = vpop.xlane.xlu0 %23344 }
0x238d   :  { %v23349_v5 = vmul.f32 0.03125, %v23345_v18 }
0x238e   :  { %v23352_v19 = vadd.f32 1e-05, %v23350_v17 }
0x238f   :  { %v23351_v9 = vadd.f32 1e-05, %v23349_v5 }
0x2390   :  { %28386 = vrsqrt.f32 %v23352_v19 }
0x2391   :  { %28388 = vrsqrt.f32 %v23351_v9 }
0x239a   :  { %v28387_v8 = vpop.eup %28386 }
0x239b   :  { %v28389_v41 = vpop.eup %28388  ;;  %v23356_v3 = vmul.f32 %v28387_v8, %v23340_v24 }
0x239c   :  { %v23355_v36 = vmul.f32 %v28389_v41, %v23339_v25 }
0x239d   :  { %v23364_v7 = vmul.f32 %v24528_v1, %v23356_v3 }
0x239e   :  { %v23363_v29 = vmul.f32 %v24528_v1, %v23355_v36 }
0x239f   :  { %v23372_v32 = vadd.f32 %v24529_v23, %v23364_v7 }
0x23a0   :  { %v23371_v30 = vadd.f32 %v24529_v23, %v23363_v29 }
0x23a1   :  { %v23390_v34 = vsel %vm174_vm0, %v23372_v32, 0 }
0x23a2   :  { %v23387_v35 = vsel %vm174_vm0, %v23371_v30, 0  ;;  %v23471_v47 = vand.u32 4294901760, %v23390_v34 }
0x23a3   :  { %v23461_v33 = vand.u32 4294901760, %v23387_v35 }
0x23a4   :  { %v23472_v38 = vsub.f32 %v23390_v34, %v23471_v47 }
0x23a5   :  { %v23462_v31 = vsub.f32 %v23387_v35, %v23461_v33 }
0x23a6   :  { %v23473_v57 = vand.u32 4294901760, %v23472_v38 }
0x23a7   :  { %v23463_v60 = vand.u32 4294901760, %v23462_v31 }
0x23a8   :  { %v23474_v24 = vsub.f32 %v23472_v38, %v23473_v57 }
0x23a9   :  { %v23464_v25 = vsub.f32 %v23462_v31, %v23463_v60 }
0x23aa   :  { %v23475_v22 = vand.u32 4294901760, %v23474_v24 }
0x23ab   :  { %v23465_v40 = vand.u32 4294901760, %v23464_v25 }
0x23ad   :  { %27158 = vmatprep.mubr.f32.mxu1 %v23465_v40  ;;  %v24533_v40 = vld [vmem:[%s30283_s17 + $0x1] ss:$0 sm:$0xff] }
0x23ae   :  { %27159 = vmatmul.mubr.f32.vlgmr.msra.gmra.mrb[48].mxu1 %v23475_v22 }
0x23af   :  { %27677 = vmatpush3.bf16.msra.mxu1 %v27674_v27  ;;  %27169 = vmatprep.mubr.f32.mxu1 %v23461_v33 }
0x23b0   :  { %27679 = vmatprep.subr.bf16.mxu1 %v27678_v6 }
0x23b3   :  { %27681 = vmatpush3.bf16.msra.mxu1 %v27678_v6  ;;  %v27734_v6 = vpack.c.bf16 %v24053_v59, %v24046_v58 }
0x23b4   :  { %27683 = vmatprep.subr.bf16.mxu1 %v27682_v42 }
0x23b6   :  { %27170 = vmatmul.mubr.f32.vlgmr.msra.gmra.mrb[48].mxu1 %v23471_v47 }
0x23b7   :  { %27685 = vmatpush3.bf16.msra.mxu1 %v27682_v42  ;;  %27180 = vmatprep.mubr.f32.mxu1 %v23462_v31 }
0x23b8   :  { %27687 = vmatprep.subr.bf16.mxu1 %v27686_v10 }
0x23bb   :  { %27689 = vmatpush3.bf16.msra.mxu1 %v27686_v10  ;;  %v27750_v10 = vpack.c.bf16 %v24054_v63, %v24047_v62 }
0x23bc   :  { %27691 = vmatprep.subr.bf16.mxu1 %v30199_v4 }
0x23be   :  { %27181 = vmatmul.mubr.f32.vlgmr.msra.gmra.mrb[48].mxu1 %v23472_v38 }
0x23bf   :  { %27693 = vmatpush3.bf16.msra.mxu1 %v30199_v4  ;;  %27191 = vmatprep.mubr.f32.mxu1 %v23463_v60 }
0x23c0   :  { %27695 = vmatprep.subr.bf16.mxu1 %v30201_v53 }
0x23c3   :  { %27697 = vmatpush3.bf16.msra.mxu1 %v30201_v53 }
0x23c4   :  { %27699 = vmatprep.subr.bf16.mxu1 %v27698_v11 }
0x23c6   :  { %27192 = vmatmul.mubr.f32.vlgmr.msra.gmra.mrb[48].mxu1 %v23473_v57 }
0x23c7   :  { %27701 = vmatpush3.bf16.msra.mxu1 %v27698_v11  ;;  %27202 = vmatprep.mubr.f32.mxu1 %v23461_v33  ;;  %v24531_v11 = vld [vmem:[%s30281_s15 + $0x1] ss:$0 sm:$0xff] }
0x23c8   :  { %27703 = vmatprep.subr.bf16.mxu1 %v27702_v12 }
0x23cb   :  { %27705 = vmatpush3.bf16.msra.mxu1 %v27702_v12 }
0x23cc   :  { %27707 = vmatprep.subr.bf16.mxu1 %v30199_v4 }
0x23ce   :  { %27203 = vmatmul.mubr.f32.vlgmr.msra.gmra.mrb[48].mxu1 %v23471_v47 }
0x23cf   :  { %27709 = vmatpush3.bf16.msra.mxu1 %v30199_v4  ;;  %27213 = vmatprep.mubr.f32.mxu1 %v23461_v33  ;;  %v30226_v4 = vpack.c.bf16 %v23951_v52, %v23948_v46 }
0x23d0   :  { %27711 = vmatprep.subr.bf16.mxu1 %v30201_v53 }
0x23d1   :  { %27719 = vmatprep.subr.bf16.mxu0 %v30226_v4 }
0x23d2   :  { %27721 = vmatpush3.bf16.msra.mxu0 %v30226_v4 }
0x23d3   :  { %27713 = vmatpush3.bf16.msra.mxu1 %v30201_v53  ;;  %v24040_v53 = vand.u32 4294901760, %v24039_v26 }
0x23d5   :  { %v24041_v61 = vsub.f32 %v24039_v26, %v24040_v53  ;;  %v27746_v42 = vpack.c.bf16 %v24040_v53, %v24033_v55 }
0x23d6   :  { %27214 = vmatmul.mubr.f32.vlgmr.msra.gmra.mrb[48].mxu1 %v23471_v47 }
0x23d7   :  { %v24042_v48 = vand.u32 4294901760, %v24041_v61 }
0x23d9   :  { %v27722_v27 = vpack.c.bf16 %v24042_v48, %v24035_v39 }
0x23db   :  { %27723 = vmatprep.subr.bf16.mxu0 %v27722_v27 }
0x24a9   :  { %v27215_v12 = vpop.f32.mrb[48].mxu1 }
0x24aa   :  { %v27778_v15 = vadd.f32 %v27215_v12, %v24531_v11  ;;  %v23910_v17 = vpop.f32.mrb[49].mxu1 }
0x24ab   :  { %v27779_v18 = vadd.f32 %v24531_v11, %v23910_v17 }
0x24ac   :  { %v23923_v5 = vmul.f32 0.70710677, %v27778_v15  ;;  %v23921_v1 = vmul.f32 0.5, %v27778_v15 }
0x24ad   :  { %v23922_v19 = vmul.f32 0.70710677, %v27779_v18  ;;  %v23920_v3 = vmul.f32 0.5, %v27779_v18 }
0x24ae   :  { %28390 = verf.f32 %v23923_v5 }
0x24af   :  { %28392 = verf.f32 %v23922_v19 }
0x24b8   :  { %v28391_v9 = vpop.eup %28390 }
0x24b9   :  { %v28393_v8 = vpop.eup %28392  ;;  %v23927_v41 = vadd.f32 1.0, %v28391_v9 }
0x24ba   :  { %v23926_v36 = vadd.f32 1.0, %v28393_v8 }
0x24bb   :  { %v23929_v23 = vmul.f32 %v23927_v41, %v23921_v1 }
0x24bc   :  { %v23928_v7 = vmul.f32 %v23926_v36, %v23920_v3 }
0x24bd   :  { %v23939_v29 = vsel %vm174_vm0, %v23929_v23, 0 }
0x24be   :  { %v24020_v32 = vand.u32 4294901760, %v23939_v29  ;;  %v23936_v30 = vsel %vm174_vm0, %v23928_v7, 0 }
0x24bf   :  { %v24010_v34 = vand.u32 4294901760, %v23936_v30 }
0x24c0   :  { %v24021_v35 = vsub.f32 %v23939_v29, %v24020_v32 }
0x24c1   :  { %v24011_v47 = vsub.f32 %v23936_v30, %v24010_v34 }
0x24c2   :  { %v24022_v33 = vand.u32 4294901760, %v24021_v35 }
0x24c3   :  { %v24012_v38 = vand.u32 4294901760, %v24011_v47 }
0x24c4   :  { %v24023_v31 = vsub.f32 %v24021_v35, %v24022_v33 }
0x24c5   :  { %v24013_v57 = vsub.f32 %v24011_v47, %v24012_v38 }
0x24c6   :  { %v24024_v24 = vand.u32 4294901760, %v24023_v31 }
0x24c7   :  { %v24014_v60 = vand.u32 4294901760, %v24013_v57 }
0x24c9   :  { %27224 = vmatprep.mubr.f32.mxu0 %v24014_v60 }
0x24ca   :  { %27225 = vmatmul.mubr.f32.vlgmr.msra.gmra.mrb[38].mxu0 %v24024_v24 }
0x24cb   :  { %27725 = vmatpush3.bf16.msra.mxu0 %v27722_v27  ;;  %27235 = vmatprep.mubr.f32.mxu0 %v24010_v34 }
0x24cc   :  { %27727 = vmatprep.subr.bf16.mxu0 %v27726_v54 }
0x24cf   :  { %27729 = vmatpush3.bf16.msra.mxu0 %v27726_v54 }
0x24d0   :  { %27731 = vmatprep.subr.bf16.mxu0 %v27730_v16 }
0x24d2   :  { %27236 = vmatmul.mubr.f32.vlgmr.msra.gmra.mrb[38].mxu0 %v24020_v32 }
0x24d3   :  { %27733 = vmatpush3.bf16.msra.mxu0 %v27730_v16  ;;  %27246 = vmatprep.mubr.f32.mxu0 %v24011_v47 }
0x24d4   :  { %27735 = vmatprep.subr.bf16.mxu0 %v27734_v6 }
0x24d7   :  { %27737 = vmatpush3.bf16.msra.mxu0 %v27734_v6 }
0x24d8   :  { %27739 = vmatprep.subr.bf16.mxu0 %v30223_v21 }
0x24da   :  { %27247 = vmatmul.mubr.f32.vlgmr.msra.gmra.mrb[38].mxu0 %v24021_v35 }
0x24db   :  { %27741 = vmatpush3.bf16.msra.mxu0 %v30223_v21  ;;  %27257 = vmatprep.mubr.f32.mxu0 %v24012_v38 }
0x24dc   :  { %27743 = vmatprep.subr.bf16.mxu0 %v30226_v4 }
0x24df   :  { %27745 = vmatpush3.bf16.msra.mxu0 %v30226_v4 }
0x24e0   :  { %27747 = vmatprep.subr.bf16.mxu0 %v27746_v42 }
0x24e2   :  { %27258 = vmatmul.mubr.f32.vlgmr.msra.gmra.mrb[38].mxu0 %v24022_v33 }
0x24e3   :  { %27749 = vmatpush3.bf16.msra.mxu0 %v27746_v42  ;;  %27268 = vmatprep.mubr.f32.mxu0 %v24010_v34 }
0x24e4   :  { %27751 = vmatprep.subr.bf16.mxu0 %v27750_v10 }
0x24e7   :  { %27753 = vmatpush3.bf16.msra.mxu0 %v27750_v10 }
0x24e8   :  { %27755 = vmatprep.subr.bf16.mxu0 %v30223_v21 }
0x24ea   :  { %27269 = vmatmul.mubr.f32.vlgmr.msra.gmra.mrb[38].mxu0 %v24020_v32 }
0x24eb   :  { %27757 = vmatpush3.bf16.msra.mxu0 %v30223_v21  ;;  %27279 = vmatprep.mubr.f32.mxu0 %v24010_v34 }
0x24ec   :  { %27759 = vmatprep.subr.bf16.mxu0 %v30226_v4 }
0x24ef   :  { %27761 = vmatpush3.bf16.msra.mxu0 %v30226_v4 }
0x24f2   :  { %27280 = vmatmul.mubr.f32.vlgmr.msra.gmra.mrb[38].mxu0 %v24020_v32 }
0x25c5   :  { %v27281_v25 = vpop.f32.mrb[38].mxu0 }
0x25c6   :  { %v24470_v22 = vadd.f32 %v27281_v25, %v30187_v50  ;;  %v24459_v20 = vpop.f32.mrb[39].mxu0 }
0x25c7   :  { %v24469_v14 = vadd.f32 %v24459_v20, %v30189_v37 }
0x25c8   :  { %v24480_v43 = vadd.f32 %v24533_v40, %v24470_v22 }
0x25c9   :  { %v24479_v44 = vadd.f32 %v24533_v40, %v24469_v14 }
0x25ca   :  { %24482 = vst.msk [vmem:[#allocation16 + $0x8] sm:$0xff] %vm174_vm0, %v24480_v43 }
0x25cb   :  { %24481 = vst.msk [vmem:[#allocation16] sm:$0xff] %vm174_vm0, %v24479_v44 }
0x25cc   :  { %28581 = shalt.err (!%p28578_p12)
}
0x25cd   :  { %s30296_s16 = sld [smem:[#allocation26_spill]] }
0x25d3   :  { %s28582_s22 = scalar_lea.hbm %s30296_s16, 256 }
0x25d4   :  { %p28583_p13 = scmp.ne.s32.totalorder %s30296_s16, %s28582_s22  ;;  %p28586_p0 = scmp.lt.u32.totalorder %s28582_s22, %s30296_s16 }
0x25d6   :  { %p28588_p1 = pnand %p28586_p0, %p28583_p13 }
0x25d8   :  { %28591 = shalt.err (!%p28588_p1)
}
0x25d9   :  { %24494 = dma.vmem_to_hbm [thread:$0]  %s24489_s1, 256, %s30296_s16, [#allocation4], %s28607_s0, %s28607_s0, %s28608_s23  }
0x25da   :  { %28602 = dma.done.wait [#allocation4], 256  }
0x25db   :  { %28603 = vsyncadd [#allocation4], 4294967040 }
0x25dc   :  { %24498 = vsyncpa [#allocation3], 1 }
0x25dd   :  { %24499 = vsyncpa [#allocation6], 1 }
0x25de   :  { %24500 = vsyncpa [#allocation9], 1 }
0x25df   :  { %24501 = vsyncpa [#allocation12], 1 }
0x25e0   :  { %24502 = vsyncpa [#allocation15], 1 }
0x25e1   :  { %24503 = vsyncpa [#allocation4], 1 }

</bundles_post_ra>
